<compile_context>
chip_gen: v7x
topology: tpu7x:2x2x1
jax: 0.10.0
libtpu: 0.0.40
codegen_flags: <defaults>
</compile_context>

<pallas_src>
import functools

import jax
import jax.numpy as jnp
from jax.experimental import pallas as pl
from jax.experimental.pallas import tpu as pltpu


def _pad128(n):
    return ((n + 127) // 128) * 128


def _gru_gates(gi, gh, h, H):
    """PyTorch GRU gate math (gate order r, z, n); gi/gh already include biases.

    r and z share a single fused sigmoid over the first 2H lanes (one EUP push
    per step instead of two)."""
    rz = jax.nn.sigmoid(gi[:, 0:2 * H] + gh[:, 0:2 * H])
    r = rz[:, 0:H]
    z = rz[:, H:2 * H]
    n = jnp.tanh(gi[:, 2 * H:3 * H] + r * gh[:, 2 * H:3 * H])
    return (1.0 - z) * n + z * h


# ----------------------------------------------------------------------------
# Fused encoder + reparameterization + greedy decoder kernel.
# ----------------------------------------------------------------------------
def rvae_kernel(tok_ref, encfold_ref, bih_ref,
                whhf_ref, bhhf_ref, whhb_ref, bhhb_ref,
                wmulv_ref, bmulv_ref, eps_ref,
                dembwih_ref, whhd_ref, bhhd_ref, wlo_ref, wgen_ref, bgen_ref,
                logits_ref, hfin_ref, kld_ref,
                *, S, B, Hh, hsz, T, start_token):
    f32 = jnp.float32
    SVP = encfold_ref.shape[0]         # padded source vocab
    VP = wgen_ref.shape[1]             # padded target vocab (lane-dense logits)
    G = 3 * Hh                         # per-direction encoder gate width

    # ---------------- encoder ----------------
    # One-hot token gather straight into gate space: the embedding table and
    # the input-to-hidden projection were folded in the wrapper, so the whole
    # input path for all (t, b) is a single big-M MXU matmul (bias added once).
    tok = tok_ref[...]                                               # (S*B, 1) int32
    sv_iota = jax.lax.broadcasted_iota(jnp.int32, (S * B, SVP), 1)
    onehot_src = (tok == sv_iota).astype(f32)                        # (S*B, SVP)
    gi_all = (jnp.dot(onehot_src, encfold_ref[...],
                      preferred_element_type=f32)
              + bih_ref[...])                                        # (S*B, 6*Hh) [fwd|bwd]

    # loop-invariant weight loads / bias broadcasts hoisted out of the loop
    whh_f = whhf_ref[...]
    whh_b = whhb_ref[...]
    bhh_f = jnp.broadcast_to(bhhf_ref[...], (B, G))
    bhh_b = jnp.broadcast_to(bhhb_ref[...], (B, G))

    h_f = jnp.zeros((B, Hh), f32)
    h_b = jnp.zeros((B, Hh), f32)
    # Fused fwd/bwd recurrence, fully unrolled: only h @ whh stays on the
    # serial chain; the two directions are independent and interleave.
    for t in range(S):
        gi_f = gi_all[t * B:(t + 1) * B, 0:G]
        gi_b = gi_all[(S - 1 - t) * B:(S - t) * B, G:2 * G]
        gh_f = jnp.dot(h_f, whh_f, preferred_element_type=f32) + bhh_f
        gh_b = jnp.dot(h_b, whh_b, preferred_element_type=f32) + bhh_b
        h_f = _gru_gates(gi_f, gh_f, h_f, Hh)
        h_b = _gru_gates(gi_b, gh_b, h_b, Hh)

    # torch.cat([h[0::2], h[1::2]], 2) with layers == 1
    h_cat = jnp.concatenate([h_f, h_b], axis=-1)                     # (B, hsz)

    # fused mu | logvar projection (single MXU push)
    ml = jnp.dot(h_cat, wmulv_ref[...], preferred_element_type=f32) + bmulv_ref[...]
    mu = ml[:, 0:hsz]
    logvar = ml[:, hsz:2 * hsz]
    std = jnp.exp(0.5 * logvar)
    z = eps_ref[...] * std + mu                                      # (B, hsz)

    # kld = (-0.5 * sum_over_batch(logvar - mu^2 - exp(logvar) + 1)).mean()
    # torch mu/logvar are (layers=1, B, hsz): sum over dim 1 (batch) then
    # .mean() over (1, hsz) divides by hsz.
    term = logvar - mu * mu - std * std + 1.0
    kld_ref[...] = jnp.reshape(-0.5 * jnp.sum(term) / hsz, (1, 1))

    # ---------------- greedy decoder ----------------
    H3 = 3 * hsz
    demb_wih = dembwih_ref[...]        # (VP, 3*hsz), decemb @ wih + bih folded
    whh_d = whhd_ref[...]              # (hsz, 3*hsz)
    wlo = wlo_ref[...]                 # (hsz, hsz)
    wgen = wgen_ref[...]               # (hsz, VP)
    bhh_d = jnp.broadcast_to(bhhd_ref[...], (B, H3))
    bgen = jnp.broadcast_to(bgen_ref[...], (B, VP))                  # pad cols = -1e30
    v_iota = jax.lax.broadcasted_iota(jnp.int32, (B, VP), 1)
    v_iota_f = v_iota.astype(f32)

    h = z
    prev = jnp.full((B, 1), start_token, jnp.int32)
    for t in range(T):
        onehot = (prev == v_iota).astype(f32)                        # (B, VP)
        # two independent gate matmuls (no concat, no zero-padded block-diag)
        gi = jnp.dot(onehot, demb_wih, preferred_element_type=f32)   # (B, 3*hsz)
        gh = jnp.dot(h, whh_d, preferred_element_type=f32) + bhh_d   # (B, 3*hsz)
        h = _gru_gates(gi, gh, h, hsz)
        # op = drop(tanh(linout(decout))); dropout is identity at eval time
        op = jnp.tanh(jnp.dot(h, wlo, preferred_element_type=f32))
        logits = jnp.dot(op, wgen, preferred_element_type=f32) + bgen
        logits_ref[t * B:(t + 1) * B, :] = logits                    # lane-dense store
        # greedy feedback, first-occurrence argmax (torch .max tie-breaking)
        mx = jnp.max(logits, axis=-1, keepdims=True)
        prev = jnp.min(jnp.where(logits == mx, v_iota_f, jnp.float32(VP)),
                       axis=-1, keepdims=True).astype(jnp.int32)

    hfin_ref[...] = h


# ----------------------------------------------------------------------------
# Deterministic parameter init (synthetic; shapes from RVAEModel.__init__).
# Weights are stored transposed as (in, out) for right-multiplication.
# ----------------------------------------------------------------------------
def init_params(key, svsz, vsz, hsz, layers=1):
    assert layers == 1, "this kernel implements layers == 1"
    Hh = hsz // 2
    ks = jax.random.split(key, 24)

    def u(k, shape, fan):
        bound = 1.0 / jnp.sqrt(jnp.float32(fan))
        return jax.random.uniform(k, shape, jnp.float32, -bound, bound)

    p = {}
    p["encemb"] = u(ks[0], (svsz, hsz), hsz).at[0].set(0.0)   # padding_idx=0
    p["decemb"] = u(ks[1], (vsz, hsz), hsz).at[0].set(0.0)    # padding_idx=0
    # encoder bi-GRU
    p["enc_wih_f"] = u(ks[2], (hsz, 3 * Hh), Hh)
    p["enc_whh_f"] = u(ks[3], (Hh, 3 * Hh), Hh)
    p["enc_bih_f"] = u(ks[4], (1, 3 * Hh), Hh)
    p["enc_bhh_f"] = u(ks[5], (1, 3 * Hh), Hh)
    p["enc_wih_b"] = u(ks[6], (hsz, 3 * Hh), Hh)
    p["enc_whh_b"] = u(ks[7], (Hh, 3 * Hh), Hh)
    p["enc_bih_b"] = u(ks[8], (1, 3 * Hh), Hh)
    p["enc_bhh_b"] = u(ks[9], (1, 3 * Hh), Hh)
    # decoder GRU (hsz -> hsz)
    p["dec_wih"] = u(ks[10], (hsz, 3 * hsz), hsz)
    p["dec_whh"] = u(ks[11], (hsz, 3 * hsz), hsz)
    p["dec_bih"] = u(ks[12], (1, 3 * hsz), hsz)
    p["dec_bhh"] = u(ks[13], (1, 3 * hsz), hsz)
    # linears
    p["to_mu_w"] = u(ks[14], (hsz, hsz), hsz)
    p["to_mu_b"] = u(ks[15], (1, hsz), hsz)
    p["to_lv_w"] = u(ks[16], (hsz, hsz), hsz)
    p["to_lv_b"] = u(ks[17], (1, hsz), hsz)
    p["linout_w"] = u(ks[18], (hsz, hsz), hsz)     # bias=False
    p["gen_w"] = u(ks[19], (hsz, vsz), hsz)
    p["gen_b"] = u(ks[20], (1, vsz), hsz)
    # TODO(synk): self.linin / self.sm are defined in __init__ but never used
    # in forward(); omitted here.
    return p


# ----------------------------------------------------------------------------
# Forward wrapper: weight fusion/padding in XLA glue, hot path in one kernel.
# ----------------------------------------------------------------------------
def rvae_forward(params, inp, eps, maxlen):
    B, S = inp.shape
    svsz, hsz = params["encemb"].shape
    vsz = params["decemb"].shape[0]
    Hh = hsz // 2
    SVP = _pad128(svsz)
    VP = _pad128(vsz)
    f32 = jnp.float32

    # ---- fused / lane-padded weights (tiny one-time XLA glue) ----
    encemb_p = jnp.zeros((SVP, hsz), f32).at[:svsz].set(params["encemb"])
    wih_cat = jnp.concatenate([params["enc_wih_f"], params["enc_wih_b"]], axis=1)  # (hsz, 6Hh)
    # fold encoder embedding into the input projection: (SVP, 6Hh)
    # (revisit if svsz grows large: table is SVP x 3*hsz per direction)
    enc_fold = jnp.dot(encemb_p, wih_cat)
    bih_cat = jnp.concatenate([params["enc_bih_f"], params["enc_bih_b"]], axis=1)  # (1, 6Hh)
    wmulv = jnp.concatenate([params["to_mu_w"], params["to_lv_w"]], axis=1)        # (hsz, 2hsz)
    bmulv = jnp.concatenate([params["to_mu_b"], params["to_lv_b"]], axis=1)        # (1, 2hsz)

    decemb_p = jnp.zeros((VP, hsz), f32).at[:vsz].set(params["decemb"])
    # fold decoder embedding + input projection + input bias: (VP, 3hsz)
    demb_wih = jnp.dot(decemb_p, params["dec_wih"]) + params["dec_bih"]
    # generator padded to a lane-dense vocab; pad logits biased to -1e30
    wgen_p = jnp.zeros((hsz, VP), f32).at[:, :vsz].set(params["gen_w"])
    bgen_p = jnp.full((1, VP), -1e30, f32).at[:, :vsz].set(params["gen_b"])

    # time-major flattened tokens (S*B, 1); no (S, B, hsz) embedding round-trip
    tok = jnp.transpose(inp).reshape(S * B, 1).astype(jnp.int32)

    vmem = pl.BlockSpec(memory_space=pltpu.MemorySpace.VMEM)
    kernel = functools.partial(rvae_kernel, S=S, B=B, Hh=Hh, hsz=hsz,
                               T=maxlen, start_token=3)

    logits_tm, h_fin, kld = pl.pallas_call(
        kernel,
        in_specs=[vmem] * 16,
        out_specs=(vmem, vmem, vmem),
        out_shape=(jax.ShapeDtypeStruct((maxlen * B, VP), f32),   # time-major flat
                   jax.ShapeDtypeStruct((B, hsz), f32),
                   jax.ShapeDtypeStruct((1, 1), f32)),
        compiler_params=pltpu.CompilerParams(
            # explicit VMEM budget guard; all-resident weights are <1 MiB at
            # these sizes but scale with vocab/hsz (tile the vocab dim before
            # scaling up, especially on v7x's 64 MiB VMEM).
            vmem_limit_bytes=32 * 1024 * 1024),
    )(tok, enc_fold, bih_cat,
      params["enc_whh_f"], params["enc_bhh_f"],
      params["enc_whh_b"], params["enc_bhh_b"],
      wmulv, bmulv, eps,
      demb_wih, params["dec_whh"], params["dec_bhh"],
      params["linout_w"], wgen_p, bgen_p)

    outputs = jnp.transpose(logits_tm.reshape(maxlen, B, VP),
                            (1, 0, 2))[:, :, :vsz]               # (B, maxlen, vsz)
    final_state = h_fin.reshape(1, B, hsz)                       # (layers=1, B, hsz)
    return outputs, final_state, kld[0, 0]


if __name__ == "__main__":
    B, S = 2, 8
    hsz = 32
    svsz, vsz = 16, 16
    maxlen = 6

    key = jax.random.PRNGKey(0)
    kp, ki, ke = jax.random.split(key, 3)
    params = init_params(kp, svsz, vsz, hsz, layers=1)
    inp = jax.random.randint(ki, (B, S), 1, svsz, dtype=jnp.int32)   # source tokens
    eps = jax.random.normal(ke, (B, hsz), jnp.float32)               # z ~ N(0, I) draw

    fwd = jax.jit(functools.partial(rvae_forward, maxlen=maxlen))
    outputs, final_state, kld = fwd(params, inp, eps)
    jax.block_until_ready((outputs, final_state, kld))

    assert outputs.shape == (B, maxlen, vsz)
    assert final_state.shape == (1, B, hsz)
    assert kld.shape == ()
    print("KERNEL_OK")
</pallas_src>

<mosaic_0001>
module attributes {stable_mosaic.version = 11 : i64} {
  func.func @rvae_kernel(%arg0: memref<16x1xi32, #tpu.memory_space<vmem>>, %arg1: memref<128x96xf32, #tpu.memory_space<vmem>>, %arg2: memref<1x96xf32, #tpu.memory_space<vmem>>, %arg3: memref<16x48xf32, #tpu.memory_space<vmem>>, %arg4: memref<1x48xf32, #tpu.memory_space<vmem>>, %arg5: memref<16x48xf32, #tpu.memory_space<vmem>>, %arg6: memref<1x48xf32, #tpu.memory_space<vmem>>, %arg7: memref<32x64xf32, #tpu.memory_space<vmem>>, %arg8: memref<1x64xf32, #tpu.memory_space<vmem>>, %arg9: memref<2x32xf32, #tpu.memory_space<vmem>>, %arg10: memref<128x96xf32, #tpu.memory_space<vmem>>, %arg11: memref<32x96xf32, #tpu.memory_space<vmem>>, %arg12: memref<1x96xf32, #tpu.memory_space<vmem>>, %arg13: memref<32x32xf32, #tpu.memory_space<vmem>>, %arg14: memref<32x128xf32, #tpu.memory_space<vmem>>, %arg15: memref<1x128xf32, #tpu.memory_space<vmem>>, %arg16: memref<12x128xf32, #tpu.memory_space<vmem>>, %arg17: memref<2x32xf32, #tpu.memory_space<vmem>>, %arg18: memref<1x1xf32, #tpu.memory_space<vmem>>) attributes {dimension_semantics = [], scalar_prefetch = 0 : i64, scratch_operands = 0 : i64, tpu.core_type = #tpu.core_type<tc>} {
    %c0 = arith.constant 0 : index
    %c0_0 = arith.constant 0 : index
    %0 = vector.load %arg0[%c0, %c0_0] : memref<16x1xi32, #tpu.memory_space<vmem>>, vector<16x1xi32>
    %1 = tpu.iota {dimensions = array<i32: 1>} : vector<16x128xi32>
    %2 = vector.broadcast %0 : vector<16x1xi32> to vector<16x128xi32>
    %3 = arith.cmpi eq, %2, %1 : vector<16x128xi32>
    %4 = arith.extui %3 : vector<16x128xi1> to vector<16x128xi32>
    %5 = arith.sitofp %4 : vector<16x128xi32> to vector<16x128xf32>
    %c0_1 = arith.constant 0 : index
    %c0_2 = arith.constant 0 : index
    %6 = vector.load %arg1[%c0_1, %c0_2] : memref<128x96xf32, #tpu.memory_space<vmem>>, vector<128x96xf32>
    %cst = arith.constant dense<0.000000e+00> : vector<16x96xf32>
    %7 = tpu.matmul %5, %6, %cst {dimension_numbers = #tpu.dot_dimension_numbers<[1], [0], [0], [1], [0, 0, 1, 1], [], []>} : vector<16x128xf32>, vector<128x96xf32>, vector<16x96xf32> -> vector<16x96xf32>
    %c0_3 = arith.constant 0 : index
    %c0_4 = arith.constant 0 : index
    %8 = vector.load %arg2[%c0_3, %c0_4] : memref<1x96xf32, #tpu.memory_space<vmem>>, vector<1x96xf32>
    %9 = vector.broadcast %8 : vector<1x96xf32> to vector<16x96xf32>
    %10 = arith.addf %7, %9 : vector<16x96xf32>
    %c0_5 = arith.constant 0 : index
    %c0_6 = arith.constant 0 : index
    %11 = vector.load %arg3[%c0_5, %c0_6] : memref<16x48xf32, #tpu.memory_space<vmem>>, vector<16x48xf32>
    %c0_7 = arith.constant 0 : index
    %c0_8 = arith.constant 0 : index
    %12 = vector.load %arg5[%c0_7, %c0_8] : memref<16x48xf32, #tpu.memory_space<vmem>>, vector<16x48xf32>
    %c0_9 = arith.constant 0 : index
    %c0_10 = arith.constant 0 : index
    %13 = vector.load %arg4[%c0_9, %c0_10] : memref<1x48xf32, #tpu.memory_space<vmem>>, vector<1x48xf32>
    %14 = vector.shape_cast %13 : vector<1x48xf32> to vector<1x48xf32>
    %15 = vector.broadcast %14 : vector<1x48xf32> to vector<2x48xf32>
    %c0_11 = arith.constant 0 : index
    %c0_12 = arith.constant 0 : index
    %16 = vector.load %arg6[%c0_11, %c0_12] : memref<1x48xf32, #tpu.memory_space<vmem>>, vector<1x48xf32>
    %17 = vector.shape_cast %16 : vector<1x48xf32> to vector<1x48xf32>
    %18 = vector.broadcast %17 : vector<1x48xf32> to vector<2x48xf32>
    %cst_13 = arith.constant 0.000000e+00 : f32
    %19 = vector.broadcast %cst_13 : f32 to vector<2x16xf32>
    %cst_14 = arith.constant 0.000000e+00 : f32
    %20 = vector.broadcast %cst_14 : f32 to vector<2x16xf32>
    %21 = vector.extract_strided_slice %10 {offsets = [0, 0], sizes = [2, 48], strides = [1, 1]} : vector<16x96xf32> to vector<2x48xf32>
    %22 = vector.extract_strided_slice %10 {offsets = [14, 48], sizes = [2, 48], strides = [1, 1]} : vector<16x96xf32> to vector<2x48xf32>
    %cst_15 = arith.constant dense<0.000000e+00> : vector<2x48xf32>
    %23 = tpu.matmul %19, %11, %cst_15 {dimension_numbers = #tpu.dot_dimension_numbers<[1], [0], [0], [1], [0, 0, 1, 1], [], []>} : vector<2x16xf32>, vector<16x48xf32>, vector<2x48xf32> -> vector<2x48xf32>
    %24 = arith.addf %23, %15 : vector<2x48xf32>
    %cst_16 = arith.constant dense<0.000000e+00> : vector<2x48xf32>
    %25 = tpu.matmul %20, %12, %cst_16 {dimension_numbers = #tpu.dot_dimension_numbers<[1], [0], [0], [1], [0, 0, 1, 1], [], []>} : vector<2x16xf32>, vector<16x48xf32>, vector<2x48xf32> -> vector<2x48xf32>
    %26 = arith.addf %25, %18 : vector<2x48xf32>
    %27 = vector.extract_strided_slice %21 {offsets = [0, 0], sizes = [2, 32], strides = [1, 1]} : vector<2x48xf32> to vector<2x32xf32>
    %28 = vector.extract_strided_slice %24 {offsets = [0, 0], sizes = [2, 32], strides = [1, 1]} : vector<2x48xf32> to vector<2x32xf32>
    %29 = arith.addf %27, %28 : vector<2x32xf32>
    %30 = arith.negf %29 : vector<2x32xf32>
    %31 = math.exp %30 : vector<2x32xf32>
    %cst_17 = arith.constant 1.000000e+00 : f32
    %32 = vector.broadcast %cst_17 : f32 to vector<2x32xf32>
    %33 = arith.addf %32, %31 : vector<2x32xf32>
    %34 = arith.divf %32, %33 : vector<2x32xf32>
    %35 = vector.extract_strided_slice %34 {offsets = [0, 0], sizes = [2, 16], strides = [1, 1]} : vector<2x32xf32> to vector<2x16xf32>
    %36 = vector.extract_strided_slice %34 {offsets = [0, 16], sizes = [2, 16], strides = [1, 1]} : vector<2x32xf32> to vector<2x16xf32>
    %37 = vector.extract_strided_slice %21 {offsets = [0, 32], sizes = [2, 16], strides = [1, 1]} : vector<2x48xf32> to vector<2x16xf32>
    %38 = vector.extract_strided_slice %24 {offsets = [0, 32], sizes = [2, 16], strides = [1, 1]} : vector<2x48xf32> to vector<2x16xf32>
    %39 = arith.mulf %35, %38 : vector<2x16xf32>
    %40 = arith.addf %37, %39 : vector<2x16xf32>
    %41 = math.tanh %40 : vector<2x16xf32>
    %cst_18 = arith.constant 1.000000e+00 : f32
    %42 = vector.broadcast %cst_18 : f32 to vector<2x16xf32>
    %43 = arith.subf %42, %36 : vector<2x16xf32>
    %44 = arith.mulf %43, %41 : vector<2x16xf32>
    %45 = arith.mulf %36, %19 : vector<2x16xf32>
    %46 = arith.addf %44, %45 : vector<2x16xf32>
    %47 = vector.extract_strided_slice %22 {offsets = [0, 0], sizes = [2, 32], strides = [1, 1]} : vector<2x48xf32> to vector<2x32xf32>
    %48 = vector.extract_strided_slice %26 {offsets = [0, 0], sizes = [2, 32], strides = [1, 1]} : vector<2x48xf32> to vector<2x32xf32>
    %49 = arith.addf %47, %48 : vector<2x32xf32>
    %50 = arith.negf %49 : vector<2x32xf32>
    %51 = math.exp %50 : vector<2x32xf32>
    %cst_19 = arith.constant 1.000000e+00 : f32
    %52 = vector.broadcast %cst_19 : f32 to vector<2x32xf32>
    %53 = arith.addf %52, %51 : vector<2x32xf32>
    %54 = arith.divf %52, %53 : vector<2x32xf32>
    %55 = vector.extract_strided_slice %54 {offsets = [0, 0], sizes = [2, 16], strides = [1, 1]} : vector<2x32xf32> to vector<2x16xf32>
    %56 = vector.extract_strided_slice %54 {offsets = [0, 16], sizes = [2, 16], strides = [1, 1]} : vector<2x32xf32> to vector<2x16xf32>
    %57 = vector.extract_strided_slice %22 {offsets = [0, 32], sizes = [2, 16], strides = [1, 1]} : vector<2x48xf32> to vector<2x16xf32>
    %58 = vector.extract_strided_slice %26 {offsets = [0, 32], sizes = [2, 16], strides = [1, 1]} : vector<2x48xf32> to vector<2x16xf32>
    %59 = arith.mulf %55, %58 : vector<2x16xf32>
    %60 = arith.addf %57, %59 : vector<2x16xf32>
    %61 = math.tanh %60 : vector<2x16xf32>
    %cst_20 = arith.constant 1.000000e+00 : f32
    %62 = vector.broadcast %cst_20 : f32 to vector<2x16xf32>
    %63 = arith.subf %62, %56 : vector<2x16xf32>
    %64 = arith.mulf %63, %61 : vector<2x16xf32>
    %65 = arith.mulf %56, %20 : vector<2x16xf32>
    %66 = arith.addf %64, %65 : vector<2x16xf32>
    %67 = vector.extract_strided_slice %10 {offsets = [2, 0], sizes = [2, 48], strides = [1, 1]} : vector<16x96xf32> to vector<2x48xf32>
    %68 = vector.extract_strided_slice %10 {offsets = [12, 48], sizes = [2, 48], strides = [1, 1]} : vector<16x96xf32> to vector<2x48xf32>
    %cst_21 = arith.constant dense<0.000000e+00> : vector<2x48xf32>
    %69 = tpu.matmul %46, %11, %cst_21 {dimension_numbers = #tpu.dot_dimension_numbers<[1], [0], [0], [1], [0, 0, 1, 1], [], []>} : vector<2x16xf32>, vector<16x48xf32>, vector<2x48xf32> -> vector<2x48xf32>
    %70 = arith.addf %69, %15 : vector<2x48xf32>
    %cst_22 = arith.constant dense<0.000000e+00> : vector<2x48xf32>
    %71 = tpu.matmul %66, %12, %cst_22 {dimension_numbers = #tpu.dot_dimension_numbers<[1], [0], [0], [1], [0, 0, 1, 1], [], []>} : vector<2x16xf32>, vector<16x48xf32>, vector<2x48xf32> -> vector<2x48xf32>
    %72 = arith.addf %71, %18 : vector<2x48xf32>
    %73 = vector.extract_strided_slice %67 {offsets = [0, 0], sizes = [2, 32], strides = [1, 1]} : vector<2x48xf32> to vector<2x32xf32>
    %74 = vector.extract_strided_slice %70 {offsets = [0, 0], sizes = [2, 32], strides = [1, 1]} : vector<2x48xf32> to vector<2x32xf32>
    %75 = arith.addf %73, %74 : vector<2x32xf32>
    %76 = arith.negf %75 : vector<2x32xf32>
    %77 = math.exp %76 : vector<2x32xf32>
    %cst_23 = arith.constant 1.000000e+00 : f32
    %78 = vector.broadcast %cst_23 : f32 to vector<2x32xf32>
    %79 = arith.addf %78, %77 : vector<2x32xf32>
    %80 = arith.divf %78, %79 : vector<2x32xf32>
    %81 = vector.extract_strided_slice %80 {offsets = [0, 0], sizes = [2, 16], strides = [1, 1]} : vector<2x32xf32> to vector<2x16xf32>
    %82 = vector.extract_strided_slice %80 {offsets = [0, 16], sizes = [2, 16], strides = [1, 1]} : vector<2x32xf32> to vector<2x16xf32>
    %83 = vector.extract_strided_slice %67 {offsets = [0, 32], sizes = [2, 16], strides = [1, 1]} : vector<2x48xf32> to vector<2x16xf32>
    %84 = vector.extract_strided_slice %70 {offsets = [0, 32], sizes = [2, 16], strides = [1, 1]} : vector<2x48xf32> to vector<2x16xf32>
    %85 = arith.mulf %81, %84 : vector<2x16xf32>
    %86 = arith.addf %83, %85 : vector<2x16xf32>
    %87 = math.tanh %86 : vector<2x16xf32>
    %cst_24 = arith.constant 1.000000e+00 : f32
    %88 = vector.broadcast %cst_24 : f32 to vector<2x16xf32>
    %89 = arith.subf %88, %82 : vector<2x16xf32>
    %90 = arith.mulf %89, %87 : vector<2x16xf32>
    %91 = arith.mulf %82, %46 : vector<2x16xf32>
    %92 = arith.addf %90, %91 : vector<2x16xf32>
    %93 = vector.extract_strided_slice %68 {offsets = [0, 0], sizes = [2, 32], strides = [1, 1]} : vector<2x48xf32> to vector<2x32xf32>
    %94 = vector.extract_strided_slice %72 {offsets = [0, 0], sizes = [2, 32], strides = [1, 1]} : vector<2x48xf32> to vector<2x32xf32>
    %95 = arith.addf %93, %94 : vector<2x32xf32>
    %96 = arith.negf %95 : vector<2x32xf32>
    %97 = math.exp %96 : vector<2x32xf32>
    %cst_25 = arith.constant 1.000000e+00 : f32
    %98 = vector.broadcast %cst_25 : f32 to vector<2x32xf32>
    %99 = arith.addf %98, %97 : vector<2x32xf32>
    %100 = arith.divf %98, %99 : vector<2x32xf32>
    %101 = vector.extract_strided_slice %100 {offsets = [0, 0], sizes = [2, 16], strides = [1, 1]} : vector<2x32xf32> to vector<2x16xf32>
    %102 = vector.extract_strided_slice %100 {offsets = [0, 16], sizes = [2, 16], strides = [1, 1]} : vector<2x32xf32> to vector<2x16xf32>
    %103 = vector.extract_strided_slice %68 {offsets = [0, 32], sizes = [2, 16], strides = [1, 1]} : vector<2x48xf32> to vector<2x16xf32>
    %104 = vector.extract_strided_slice %72 {offsets = [0, 32], sizes = [2, 16], strides = [1, 1]} : vector<2x48xf32> to vector<2x16xf32>
    %105 = arith.mulf %101, %104 : vector<2x16xf32>
    %106 = arith.addf %103, %105 : vector<2x16xf32>
    %107 = math.tanh %106 : vector<2x16xf32>
    %cst_26 = arith.constant 1.000000e+00 : f32
    %108 = vector.broadcast %cst_26 : f32 to vector<2x16xf32>
    %109 = arith.subf %108, %102 : vector<2x16xf32>
    %110 = arith.mulf %109, %107 : vector<2x16xf32>
    %111 = arith.mulf %102, %66 : vector<2x16xf32>
    %112 = arith.addf %110, %111 : vector<2x16xf32>
    %113 = vector.extract_strided_slice %10 {offsets = [4, 0], sizes = [2, 48], strides = [1, 1]} : vector<16x96xf32> to vector<2x48xf32>
    %114 = vector.extract_strided_slice %10 {offsets = [10, 48], sizes = [2, 48], strides = [1, 1]} : vector<16x96xf32> to vector<2x48xf32>
    %cst_27 = arith.constant dense<0.000000e+00> : vector<2x48xf32>
    %115 = tpu.matmul %92, %11, %cst_27 {dimension_numbers = #tpu.dot_dimension_numbers<[1], [0], [0], [1], [0, 0, 1, 1], [], []>} : vector<2x16xf32>, vector<16x48xf32>, vector<2x48xf32> -> vector<2x48xf32>
    %116 = arith.addf %115, %15 : vector<2x48xf32>
    %cst_28 = arith.constant dense<0.000000e+00> : vector<2x48xf32>
    %117 = tpu.matmul %112, %12, %cst_28 {dimension_numbers = #tpu.dot_dimension_numbers<[1], [0], [0], [1], [0, 0, 1, 1], [], []>} : vector<2x16xf32>, vector<16x48xf32>, vector<2x48xf32> -> vector<2x48xf32>
    %118 = arith.addf %117, %18 : vector<2x48xf32>
    %119 = vector.extract_strided_slice %113 {offsets = [0, 0], sizes = [2, 32], strides = [1, 1]} : vector<2x48xf32> to vector<2x32xf32>
    %120 = vector.extract_strided_slice %116 {offsets = [0, 0], sizes = [2, 32], strides = [1, 1]} : vector<2x48xf32> to vector<2x32xf32>
    %121 = arith.addf %119, %120 : vector<2x32xf32>
    %122 = arith.negf %121 : vector<2x32xf32>
    %123 = math.exp %122 : vector<2x32xf32>
    %cst_29 = arith.constant 1.000000e+00 : f32
    %124 = vector.broadcast %cst_29 : f32 to vector<2x32xf32>
    %125 = arith.addf %124, %123 : vector<2x32xf32>
    %126 = arith.divf %124, %125 : vector<2x32xf32>
    %127 = vector.extract_strided_slice %126 {offsets = [0, 0], sizes = [2, 16], strides = [1, 1]} : vector<2x32xf32> to vector<2x16xf32>
    %128 = vector.extract_strided_slice %126 {offsets = [0, 16], sizes = [2, 16], strides = [1, 1]} : vector<2x32xf32> to vector<2x16xf32>
    %129 = vector.extract_strided_slice %113 {offsets = [0, 32], sizes = [2, 16], strides = [1, 1]} : vector<2x48xf32> to vector<2x16xf32>
    %130 = vector.extract_strided_slice %116 {offsets = [0, 32], sizes = [2, 16], strides = [1, 1]} : vector<2x48xf32> to vector<2x16xf32>
    %131 = arith.mulf %127, %130 : vector<2x16xf32>
    %132 = arith.addf %129, %131 : vector<2x16xf32>
    %133 = math.tanh %132 : vector<2x16xf32>
    %cst_30 = arith.constant 1.000000e+00 : f32
    %134 = vector.broadcast %cst_30 : f32 to vector<2x16xf32>
    %135 = arith.subf %134, %128 : vector<2x16xf32>
    %136 = arith.mulf %135, %133 : vector<2x16xf32>
    %137 = arith.mulf %128, %92 : vector<2x16xf32>
    %138 = arith.addf %136, %137 : vector<2x16xf32>
    %139 = vector.extract_strided_slice %114 {offsets = [0, 0], sizes = [2, 32], strides = [1, 1]} : vector<2x48xf32> to vector<2x32xf32>
    %140 = vector.extract_strided_slice %118 {offsets = [0, 0], sizes = [2, 32], strides = [1, 1]} : vector<2x48xf32> to vector<2x32xf32>
    %141 = arith.addf %139, %140 : vector<2x32xf32>
    %142 = arith.negf %141 : vector<2x32xf32>
    %143 = math.exp %142 : vector<2x32xf32>
    %cst_31 = arith.constant 1.000000e+00 : f32
    %144 = vector.broadcast %cst_31 : f32 to vector<2x32xf32>
    %145 = arith.addf %144, %143 : vector<2x32xf32>
    %146 = arith.divf %144, %145 : vector<2x32xf32>
    %147 = vector.extract_strided_slice %146 {offsets = [0, 0], sizes = [2, 16], strides = [1, 1]} : vector<2x32xf32> to vector<2x16xf32>
    %148 = vector.extract_strided_slice %146 {offsets = [0, 16], sizes = [2, 16], strides = [1, 1]} : vector<2x32xf32> to vector<2x16xf32>
    %149 = vector.extract_strided_slice %114 {offsets = [0, 32], sizes = [2, 16], strides = [1, 1]} : vector<2x48xf32> to vector<2x16xf32>
    %150 = vector.extract_strided_slice %118 {offsets = [0, 32], sizes = [2, 16], strides = [1, 1]} : vector<2x48xf32> to vector<2x16xf32>
    %151 = arith.mulf %147, %150 : vector<2x16xf32>
    %152 = arith.addf %149, %151 : vector<2x16xf32>
    %153 = math.tanh %152 : vector<2x16xf32>
    %cst_32 = arith.constant 1.000000e+00 : f32
    %154 = vector.broadcast %cst_32 : f32 to vector<2x16xf32>
    %155 = arith.subf %154, %148 : vector<2x16xf32>
    %156 = arith.mulf %155, %153 : vector<2x16xf32>
    %157 = arith.mulf %148, %112 : vector<2x16xf32>
    %158 = arith.addf %156, %157 : vector<2x16xf32>
    %159 = vector.extract_strided_slice %10 {offsets = [6, 0], sizes = [2, 48], strides = [1, 1]} : vector<16x96xf32> to vector<2x48xf32>
    %160 = vector.extract_strided_slice %10 {offsets = [8, 48], sizes = [2, 48], strides = [1, 1]} : vector<16x96xf32> to vector<2x48xf32>
    %cst_33 = arith.constant dense<0.000000e+00> : vector<2x48xf32>
    %161 = tpu.matmul %138, %11, %cst_33 {dimension_numbers = #tpu.dot_dimension_numbers<[1], [0], [0], [1], [0, 0, 1, 1], [], []>} : vector<2x16xf32>, vector<16x48xf32>, vector<2x48xf32> -> vector<2x48xf32>
    %162 = arith.addf %161, %15 : vector<2x48xf32>
    %cst_34 = arith.constant dense<0.000000e+00> : vector<2x48xf32>
    %163 = tpu.matmul %158, %12, %cst_34 {dimension_numbers = #tpu.dot_dimension_numbers<[1], [0], [0], [1], [0, 0, 1, 1], [], []>} : vector<2x16xf32>, vector<16x48xf32>, vector<2x48xf32> -> vector<2x48xf32>
    %164 = arith.addf %163, %18 : vector<2x48xf32>
    %165 = vector.extract_strided_slice %159 {offsets = [0, 0], sizes = [2, 32], strides = [1, 1]} : vector<2x48xf32> to vector<2x32xf32>
    %166 = vector.extract_strided_slice %162 {offsets = [0, 0], sizes = [2, 32], strides = [1, 1]} : vector<2x48xf32> to vector<2x32xf32>
    %167 = arith.addf %165, %166 : vector<2x32xf32>
    %168 = arith.negf %167 : vector<2x32xf32>
    %169 = math.exp %168 : vector<2x32xf32>
    %cst_35 = arith.constant 1.000000e+00 : f32
    %170 = vector.broadcast %cst_35 : f32 to vector<2x32xf32>
    %171 = arith.addf %170, %169 : vector<2x32xf32>
    %172 = arith.divf %170, %171 : vector<2x32xf32>
    %173 = vector.extract_strided_slice %172 {offsets = [0, 0], sizes = [2, 16], strides = [1, 1]} : vector<2x32xf32> to vector<2x16xf32>
    %174 = vector.extract_strided_slice %172 {offsets = [0, 16], sizes = [2, 16], strides = [1, 1]} : vector<2x32xf32> to vector<2x16xf32>
    %175 = vector.extract_strided_slice %159 {offsets = [0, 32], sizes = [2, 16], strides = [1, 1]} : vector<2x48xf32> to vector<2x16xf32>
    %176 = vector.extract_strided_slice %162 {offsets = [0, 32], sizes = [2, 16], strides = [1, 1]} : vector<2x48xf32> to vector<2x16xf32>
    %177 = arith.mulf %173, %176 : vector<2x16xf32>
    %178 = arith.addf %175, %177 : vector<2x16xf32>
    %179 = math.tanh %178 : vector<2x16xf32>
    %cst_36 = arith.constant 1.000000e+00 : f32
    %180 = vector.broadcast %cst_36 : f32 to vector<2x16xf32>
    %181 = arith.subf %180, %174 : vector<2x16xf32>
    %182 = arith.mulf %181, %179 : vector<2x16xf32>
    %183 = arith.mulf %174, %138 : vector<2x16xf32>
    %184 = arith.addf %182, %183 : vector<2x16xf32>
    %185 = vector.extract_strided_slice %160 {offsets = [0, 0], sizes = [2, 32], strides = [1, 1]} : vector<2x48xf32> to vector<2x32xf32>
    %186 = vector.extract_strided_slice %164 {offsets = [0, 0], sizes = [2, 32], strides = [1, 1]} : vector<2x48xf32> to vector<2x32xf32>
    %187 = arith.addf %185, %186 : vector<2x32xf32>
    %188 = arith.negf %187 : vector<2x32xf32>
    %189 = math.exp %188 : vector<2x32xf32>
    %cst_37 = arith.constant 1.000000e+00 : f32
    %190 = vector.broadcast %cst_37 : f32 to vector<2x32xf32>
    %191 = arith.addf %190, %189 : vector<2x32xf32>
    %192 = arith.divf %190, %191 : vector<2x32xf32>
    %193 = vector.extract_strided_slice %192 {offsets = [0, 0], sizes = [2, 16], strides = [1, 1]} : vector<2x32xf32> to vector<2x16xf32>
    %194 = vector.extract_strided_slice %192 {offsets = [0, 16], sizes = [2, 16], strides = [1, 1]} : vector<2x32xf32> to vector<2x16xf32>
    %195 = vector.extract_strided_slice %160 {offsets = [0, 32], sizes = [2, 16], strides = [1, 1]} : vector<2x48xf32> to vector<2x16xf32>
    %196 = vector.extract_strided_slice %164 {offsets = [0, 32], sizes = [2, 16], strides = [1, 1]} : vector<2x48xf32> to vector<2x16xf32>
    %197 = arith.mulf %193, %196 : vector<2x16xf32>
    %198 = arith.addf %195, %197 : vector<2x16xf32>
    %199 = math.tanh %198 : vector<2x16xf32>
    %cst_38 = arith.constant 1.000000e+00 : f32
    %200 = vector.broadcast %cst_38 : f32 to vector<2x16xf32>
    %201 = arith.subf %200, %194 : vector<2x16xf32>
    %202 = arith.mulf %201, %199 : vector<2x16xf32>
    %203 = arith.mulf %194, %158 : vector<2x16xf32>
    %204 = arith.addf %202, %203 : vector<2x16xf32>
    %205 = vector.extract_strided_slice %10 {offsets = [8, 0], sizes = [2, 48], strides = [1, 1]} : vector<16x96xf32> to vector<2x48xf32>
    %206 = vector.extract_strided_slice %10 {offsets = [6, 48], sizes = [2, 48], strides = [1, 1]} : vector<16x96xf32> to vector<2x48xf32>
    %cst_39 = arith.constant dense<0.000000e+00> : vector<2x48xf32>
    %207 = tpu.matmul %184, %11, %cst_39 {dimension_numbers = #tpu.dot_dimension_numbers<[1], [0], [0], [1], [0, 0, 1, 1], [], []>} : vector<2x16xf32>, vector<16x48xf32>, vector<2x48xf32> -> vector<2x48xf32>
    %208 = arith.addf %207, %15 : vector<2x48xf32>
    %cst_40 = arith.constant dense<0.000000e+00> : vector<2x48xf32>
    %209 = tpu.matmul %204, %12, %cst_40 {dimension_numbers = #tpu.dot_dimension_numbers<[1], [0], [0], [1], [0, 0, 1, 1], [], []>} : vector<2x16xf32>, vector<16x48xf32>, vector<2x48xf32> -> vector<2x48xf32>
    %210 = arith.addf %209, %18 : vector<2x48xf32>
    %211 = vector.extract_strided_slice %205 {offsets = [0, 0], sizes = [2, 32], strides = [1, 1]} : vector<2x48xf32> to vector<2x32xf32>
    %212 = vector.extract_strided_slice %208 {offsets = [0, 0], sizes = [2, 32], strides = [1, 1]} : vector<2x48xf32> to vector<2x32xf32>
    %213 = arith.addf %211, %212 : vector<2x32xf32>
    %214 = arith.negf %213 : vector<2x32xf32>
    %215 = math.exp %214 : vector<2x32xf32>
    %cst_41 = arith.constant 1.000000e+00 : f32
    %216 = vector.broadcast %cst_41 : f32 to vector<2x32xf32>
    %217 = arith.addf %216, %215 : vector<2x32xf32>
    %218 = arith.divf %216, %217 : vector<2x32xf32>
    %219 = vector.extract_strided_slice %218 {offsets = [0, 0], sizes = [2, 16], strides = [1, 1]} : vector<2x32xf32> to vector<2x16xf32>
    %220 = vector.extract_strided_slice %218 {offsets = [0, 16], sizes = [2, 16], strides = [1, 1]} : vector<2x32xf32> to vector<2x16xf32>
    %221 = vector.extract_strided_slice %205 {offsets = [0, 32], sizes = [2, 16], strides = [1, 1]} : vector<2x48xf32> to vector<2x16xf32>
    %222 = vector.extract_strided_slice %208 {offsets = [0, 32], sizes = [2, 16], strides = [1, 1]} : vector<2x48xf32> to vector<2x16xf32>
    %223 = arith.mulf %219, %222 : vector<2x16xf32>
    %224 = arith.addf %221, %223 : vector<2x16xf32>
    %225 = math.tanh %224 : vector<2x16xf32>
    %cst_42 = arith.constant 1.000000e+00 : f32
    %226 = vector.broadcast %cst_42 : f32 to vector<2x16xf32>
    %227 = arith.subf %226, %220 : vector<2x16xf32>
    %228 = arith.mulf %227, %225 : vector<2x16xf32>
    %229 = arith.mulf %220, %184 : vector<2x16xf32>
    %230 = arith.addf %228, %229 : vector<2x16xf32>
    %231 = vector.extract_strided_slice %206 {offsets = [0, 0], sizes = [2, 32], strides = [1, 1]} : vector<2x48xf32> to vector<2x32xf32>
    %232 = vector.extract_strided_slice %210 {offsets = [0, 0], sizes = [2, 32], strides = [1, 1]} : vector<2x48xf32> to vector<2x32xf32>
    %233 = arith.addf %231, %232 : vector<2x32xf32>
    %234 = arith.negf %233 : vector<2x32xf32>
    %235 = math.exp %234 : vector<2x32xf32>
    %cst_43 = arith.constant 1.000000e+00 : f32
    %236 = vector.broadcast %cst_43 : f32 to vector<2x32xf32>
    %237 = arith.addf %236, %235 : vector<2x32xf32>
    %238 = arith.divf %236, %237 : vector<2x32xf32>
    %239 = vector.extract_strided_slice %238 {offsets = [0, 0], sizes = [2, 16], strides = [1, 1]} : vector<2x32xf32> to vector<2x16xf32>
    %240 = vector.extract_strided_slice %238 {offsets = [0, 16], sizes = [2, 16], strides = [1, 1]} : vector<2x32xf32> to vector<2x16xf32>
    %241 = vector.extract_strided_slice %206 {offsets = [0, 32], sizes = [2, 16], strides = [1, 1]} : vector<2x48xf32> to vector<2x16xf32>
    %242 = vector.extract_strided_slice %210 {offsets = [0, 32], sizes = [2, 16], strides = [1, 1]} : vector<2x48xf32> to vector<2x16xf32>
    %243 = arith.mulf %239, %242 : vector<2x16xf32>
    %244 = arith.addf %241, %243 : vector<2x16xf32>
    %245 = math.tanh %244 : vector<2x16xf32>
    %cst_44 = arith.constant 1.000000e+00 : f32
    %246 = vector.broadcast %cst_44 : f32 to vector<2x16xf32>
    %247 = arith.subf %246, %240 : vector<2x16xf32>
    %248 = arith.mulf %247, %245 : vector<2x16xf32>
    %249 = arith.mulf %240, %204 : vector<2x16xf32>
    %250 = arith.addf %248, %249 : vector<2x16xf32>
    %251 = vector.extract_strided_slice %10 {offsets = [10, 0], sizes = [2, 48], strides = [1, 1]} : vector<16x96xf32> to vector<2x48xf32>
    %252 = vector.extract_strided_slice %10 {offsets = [4, 48], sizes = [2, 48], strides = [1, 1]} : vector<16x96xf32> to vector<2x48xf32>
    %cst_45 = arith.constant dense<0.000000e+00> : vector<2x48xf32>
    %253 = tpu.matmul %230, %11, %cst_45 {dimension_numbers = #tpu.dot_dimension_numbers<[1], [0], [0], [1], [0, 0, 1, 1], [], []>} : vector<2x16xf32>, vector<16x48xf32>, vector<2x48xf32> -> vector<2x48xf32>
    %254 = arith.addf %253, %15 : vector<2x48xf32>
    %cst_46 = arith.constant dense<0.000000e+00> : vector<2x48xf32>
    %255 = tpu.matmul %250, %12, %cst_46 {dimension_numbers = #tpu.dot_dimension_numbers<[1], [0], [0], [1], [0, 0, 1, 1], [], []>} : vector<2x16xf32>, vector<16x48xf32>, vector<2x48xf32> -> vector<2x48xf32>
    %256 = arith.addf %255, %18 : vector<2x48xf32>
    %257 = vector.extract_strided_slice %251 {offsets = [0, 0], sizes = [2, 32], strides = [1, 1]} : vector<2x48xf32> to vector<2x32xf32>
    %258 = vector.extract_strided_slice %254 {offsets = [0, 0], sizes = [2, 32], strides = [1, 1]} : vector<2x48xf32> to vector<2x32xf32>
    %259 = arith.addf %257, %258 : vector<2x32xf32>
    %260 = arith.negf %259 : vector<2x32xf32>
    %261 = math.exp %260 : vector<2x32xf32>
    %cst_47 = arith.constant 1.000000e+00 : f32
    %262 = vector.broadcast %cst_47 : f32 to vector<2x32xf32>
    %263 = arith.addf %262, %261 : vector<2x32xf32>
    %264 = arith.divf %262, %263 : vector<2x32xf32>
    %265 = vector.extract_strided_slice %264 {offsets = [0, 0], sizes = [2, 16], strides = [1, 1]} : vector<2x32xf32> to vector<2x16xf32>
    %266 = vector.extract_strided_slice %264 {offsets = [0, 16], sizes = [2, 16], strides = [1, 1]} : vector<2x32xf32> to vector<2x16xf32>
    %267 = vector.extract_strided_slice %251 {offsets = [0, 32], sizes = [2, 16], strides = [1, 1]} : vector<2x48xf32> to vector<2x16xf32>
    %268 = vector.extract_strided_slice %254 {offsets = [0, 32], sizes = [2, 16], strides = [1, 1]} : vector<2x48xf32> to vector<2x16xf32>
    %269 = arith.mulf %265, %268 : vector<2x16xf32>
    %270 = arith.addf %267, %269 : vector<2x16xf32>
    %271 = math.tanh %270 : vector<2x16xf32>
    %cst_48 = arith.constant 1.000000e+00 : f32
    %272 = vector.broadcast %cst_48 : f32 to vector<2x16xf32>
    %273 = arith.subf %272, %266 : vector<2x16xf32>
    %274 = arith.mulf %273, %271 : vector<2x16xf32>
    %275 = arith.mulf %266, %230 : vector<2x16xf32>
    %276 = arith.addf %274, %275 : vector<2x16xf32>
    %277 = vector.extract_strided_slice %252 {offsets = [0, 0], sizes = [2, 32], strides = [1, 1]} : vector<2x48xf32> to vector<2x32xf32>
    %278 = vector.extract_strided_slice %256 {offsets = [0, 0], sizes = [2, 32], strides = [1, 1]} : vector<2x48xf32> to vector<2x32xf32>
    %279 = arith.addf %277, %278 : vector<2x32xf32>
    %280 = arith.negf %279 : vector<2x32xf32>
    %281 = math.exp %280 : vector<2x32xf32>
    %cst_49 = arith.constant 1.000000e+00 : f32
    %282 = vector.broadcast %cst_49 : f32 to vector<2x32xf32>
    %283 = arith.addf %282, %281 : vector<2x32xf32>
    %284 = arith.divf %282, %283 : vector<2x32xf32>
    %285 = vector.extract_strided_slice %284 {offsets = [0, 0], sizes = [2, 16], strides = [1, 1]} : vector<2x32xf32> to vector<2x16xf32>
    %286 = vector.extract_strided_slice %284 {offsets = [0, 16], sizes = [2, 16], strides = [1, 1]} : vector<2x32xf32> to vector<2x16xf32>
    %287 = vector.extract_strided_slice %252 {offsets = [0, 32], sizes = [2, 16], strides = [1, 1]} : vector<2x48xf32> to vector<2x16xf32>
    %288 = vector.extract_strided_slice %256 {offsets = [0, 32], sizes = [2, 16], strides = [1, 1]} : vector<2x48xf32> to vector<2x16xf32>
    %289 = arith.mulf %285, %288 : vector<2x16xf32>
    %290 = arith.addf %287, %289 : vector<2x16xf32>
    %291 = math.tanh %290 : vector<2x16xf32>
    %cst_50 = arith.constant 1.000000e+00 : f32
    %292 = vector.broadcast %cst_50 : f32 to vector<2x16xf32>
    %293 = arith.subf %292, %286 : vector<2x16xf32>
    %294 = arith.mulf %293, %291 : vector<2x16xf32>
    %295 = arith.mulf %286, %250 : vector<2x16xf32>
    %296 = arith.addf %294, %295 : vector<2x16xf32>
    %297 = vector.extract_strided_slice %10 {offsets = [12, 0], sizes = [2, 48], strides = [1, 1]} : vector<16x96xf32> to vector<2x48xf32>
    %298 = vector.extract_strided_slice %10 {offsets = [2, 48], sizes = [2, 48], strides = [1, 1]} : vector<16x96xf32> to vector<2x48xf32>
    %cst_51 = arith.constant dense<0.000000e+00> : vector<2x48xf32>
    %299 = tpu.matmul %276, %11, %cst_51 {dimension_numbers = #tpu.dot_dimension_numbers<[1], [0], [0], [1], [0, 0, 1, 1], [], []>} : vector<2x16xf32>, vector<16x48xf32>, vector<2x48xf32> -> vector<2x48xf32>
    %300 = arith.addf %299, %15 : vector<2x48xf32>
    %cst_52 = arith.constant dense<0.000000e+00> : vector<2x48xf32>
    %301 = tpu.matmul %296, %12, %cst_52 {dimension_numbers = #tpu.dot_dimension_numbers<[1], [0], [0], [1], [0, 0, 1, 1], [], []>} : vector<2x16xf32>, vector<16x48xf32>, vector<2x48xf32> -> vector<2x48xf32>
    %302 = arith.addf %301, %18 : vector<2x48xf32>
    %303 = vector.extract_strided_slice %297 {offsets = [0, 0], sizes = [2, 32], strides = [1, 1]} : vector<2x48xf32> to vector<2x32xf32>
    %304 = vector.extract_strided_slice %300 {offsets = [0, 0], sizes = [2, 32], strides = [1, 1]} : vector<2x48xf32> to vector<2x32xf32>
    %305 = arith.addf %303, %304 : vector<2x32xf32>
    %306 = arith.negf %305 : vector<2x32xf32>
    %307 = math.exp %306 : vector<2x32xf32>
    %cst_53 = arith.constant 1.000000e+00 : f32
    %308 = vector.broadcast %cst_53 : f32 to vector<2x32xf32>
    %309 = arith.addf %308, %307 : vector<2x32xf32>
    %310 = arith.divf %308, %309 : vector<2x32xf32>
    %311 = vector.extract_strided_slice %310 {offsets = [0, 0], sizes = [2, 16], strides = [1, 1]} : vector<2x32xf32> to vector<2x16xf32>
    %312 = vector.extract_strided_slice %310 {offsets = [0, 16], sizes = [2, 16], strides = [1, 1]} : vector<2x32xf32> to vector<2x16xf32>
    %313 = vector.extract_strided_slice %297 {offsets = [0, 32], sizes = [2, 16], strides = [1, 1]} : vector<2x48xf32> to vector<2x16xf32>
    %314 = vector.extract_strided_slice %300 {offsets = [0, 32], sizes = [2, 16], strides = [1, 1]} : vector<2x48xf32> to vector<2x16xf32>
    %315 = arith.mulf %311, %314 : vector<2x16xf32>
    %316 = arith.addf %313, %315 : vector<2x16xf32>
    %317 = math.tanh %316 : vector<2x16xf32>
    %cst_54 = arith.constant 1.000000e+00 : f32
    %318 = vector.broadcast %cst_54 : f32 to vector<2x16xf32>
    %319 = arith.subf %318, %312 : vector<2x16xf32>
    %320 = arith.mulf %319, %317 : vector<2x16xf32>
    %321 = arith.mulf %312, %276 : vector<2x16xf32>
    %322 = arith.addf %320, %321 : vector<2x16xf32>
    %323 = vector.extract_strided_slice %298 {offsets = [0, 0], sizes = [2, 32], strides = [1, 1]} : vector<2x48xf32> to vector<2x32xf32>
    %324 = vector.extract_strided_slice %302 {offsets = [0, 0], sizes = [2, 32], strides = [1, 1]} : vector<2x48xf32> to vector<2x32xf32>
    %325 = arith.addf %323, %324 : vector<2x32xf32>
    %326 = arith.negf %325 : vector<2x32xf32>
    %327 = math.exp %326 : vector<2x32xf32>
    %cst_55 = arith.constant 1.000000e+00 : f32
    %328 = vector.broadcast %cst_55 : f32 to vector<2x32xf32>
    %329 = arith.addf %328, %327 : vector<2x32xf32>
    %330 = arith.divf %328, %329 : vector<2x32xf32>
    %331 = vector.extract_strided_slice %330 {offsets = [0, 0], sizes = [2, 16], strides = [1, 1]} : vector<2x32xf32> to vector<2x16xf32>
    %332 = vector.extract_strided_slice %330 {offsets = [0, 16], sizes = [2, 16], strides = [1, 1]} : vector<2x32xf32> to vector<2x16xf32>
    %333 = vector.extract_strided_slice %298 {offsets = [0, 32], sizes = [2, 16], strides = [1, 1]} : vector<2x48xf32> to vector<2x16xf32>
    %334 = vector.extract_strided_slice %302 {offsets = [0, 32], sizes = [2, 16], strides = [1, 1]} : vector<2x48xf32> to vector<2x16xf32>
    %335 = arith.mulf %331, %334 : vector<2x16xf32>
    %336 = arith.addf %333, %335 : vector<2x16xf32>
    %337 = math.tanh %336 : vector<2x16xf32>
    %cst_56 = arith.constant 1.000000e+00 : f32
    %338 = vector.broadcast %cst_56 : f32 to vector<2x16xf32>
    %339 = arith.subf %338, %332 : vector<2x16xf32>
    %340 = arith.mulf %339, %337 : vector<2x16xf32>
    %341 = arith.mulf %332, %296 : vector<2x16xf32>
    %342 = arith.addf %340, %341 : vector<2x16xf32>
    %343 = vector.extract_strided_slice %10 {offsets = [14, 0], sizes = [2, 48], strides = [1, 1]} : vector<16x96xf32> to vector<2x48xf32>
    %344 = vector.extract_strided_slice %10 {offsets = [0, 48], sizes = [2, 48], strides = [1, 1]} : vector<16x96xf32> to vector<2x48xf32>
    %cst_57 = arith.constant dense<0.000000e+00> : vector<2x48xf32>
    %345 = tpu.matmul %322, %11, %cst_57 {dimension_numbers = #tpu.dot_dimension_numbers<[1], [0], [0], [1], [0, 0, 1, 1], [], []>} : vector<2x16xf32>, vector<16x48xf32>, vector<2x48xf32> -> vector<2x48xf32>
    %346 = arith.addf %345, %15 : vector<2x48xf32>
    %cst_58 = arith.constant dense<0.000000e+00> : vector<2x48xf32>
    %347 = tpu.matmul %342, %12, %cst_58 {dimension_numbers = #tpu.dot_dimension_numbers<[1], [0], [0], [1], [0, 0, 1, 1], [], []>} : vector<2x16xf32>, vector<16x48xf32>, vector<2x48xf32> -> vector<2x48xf32>
    %348 = arith.addf %347, %18 : vector<2x48xf32>
    %349 = vector.extract_strided_slice %343 {offsets = [0, 0], sizes = [2, 32], strides = [1, 1]} : vector<2x48xf32> to vector<2x32xf32>
    %350 = vector.extract_strided_slice %346 {offsets = [0, 0], sizes = [2, 32], strides = [1, 1]} : vector<2x48xf32> to vector<2x32xf32>
    %351 = arith.addf %349, %350 : vector<2x32xf32>
    %352 = arith.negf %351 : vector<2x32xf32>
    %353 = math.exp %352 : vector<2x32xf32>
    %cst_59 = arith.constant 1.000000e+00 : f32
    %354 = vector.broadcast %cst_59 : f32 to vector<2x32xf32>
    %355 = arith.addf %354, %353 : vector<2x32xf32>
    %356 = arith.divf %354, %355 : vector<2x32xf32>
    %357 = vector.extract_strided_slice %356 {offsets = [0, 0], sizes = [2, 16], strides = [1, 1]} : vector<2x32xf32> to vector<2x16xf32>
    %358 = vector.extract_strided_slice %356 {offsets = [0, 16], sizes = [2, 16], strides = [1, 1]} : vector<2x32xf32> to vector<2x16xf32>
    %359 = vector.extract_strided_slice %343 {offsets = [0, 32], sizes = [2, 16], strides = [1, 1]} : vector<2x48xf32> to vector<2x16xf32>
    %360 = vector.extract_strided_slice %346 {offsets = [0, 32], sizes = [2, 16], strides = [1, 1]} : vector<2x48xf32> to vector<2x16xf32>
    %361 = arith.mulf %357, %360 : vector<2x16xf32>
    %362 = arith.addf %359, %361 : vector<2x16xf32>
    %363 = math.tanh %362 : vector<2x16xf32>
    %cst_60 = arith.constant 1.000000e+00 : f32
    %364 = vector.broadcast %cst_60 : f32 to vector<2x16xf32>
    %365 = arith.subf %364, %358 : vector<2x16xf32>
    %366 = arith.mulf %365, %363 : vector<2x16xf32>
    %367 = arith.mulf %358, %322 : vector<2x16xf32>
    %368 = arith.addf %366, %367 : vector<2x16xf32>
    %369 = vector.extract_strided_slice %344 {offsets = [0, 0], sizes = [2, 32], strides = [1, 1]} : vector<2x48xf32> to vector<2x32xf32>
    %370 = vector.extract_strided_slice %348 {offsets = [0, 0], sizes = [2, 32], strides = [1, 1]} : vector<2x48xf32> to vector<2x32xf32>
    %371 = arith.addf %369, %370 : vector<2x32xf32>
    %372 = arith.negf %371 : vector<2x32xf32>
    %373 = math.exp %372 : vector<2x32xf32>
    %cst_61 = arith.constant 1.000000e+00 : f32
    %374 = vector.broadcast %cst_61 : f32 to vector<2x32xf32>
    %375 = arith.addf %374, %373 : vector<2x32xf32>
    %376 = arith.divf %374, %375 : vector<2x32xf32>
    %377 = vector.extract_strided_slice %376 {offsets = [0, 0], sizes = [2, 16], strides = [1, 1]} : vector<2x32xf32> to vector<2x16xf32>
    %378 = vector.extract_strided_slice %376 {offsets = [0, 16], sizes = [2, 16], strides = [1, 1]} : vector<2x32xf32> to vector<2x16xf32>
    %379 = vector.extract_strided_slice %344 {offsets = [0, 32], sizes = [2, 16], strides = [1, 1]} : vector<2x48xf32> to vector<2x16xf32>
    %380 = vector.extract_strided_slice %348 {offsets = [0, 32], sizes = [2, 16], strides = [1, 1]} : vector<2x48xf32> to vector<2x16xf32>
    %381 = arith.mulf %377, %380 : vector<2x16xf32>
    %382 = arith.addf %379, %381 : vector<2x16xf32>
    %383 = math.tanh %382 : vector<2x16xf32>
    %cst_62 = arith.constant 1.000000e+00 : f32
    %384 = vector.broadcast %cst_62 : f32 to vector<2x16xf32>
    %385 = arith.subf %384, %378 : vector<2x16xf32>
    %386 = arith.mulf %385, %383 : vector<2x16xf32>
    %387 = arith.mulf %378, %342 : vector<2x16xf32>
    %388 = arith.addf %386, %387 : vector<2x16xf32>
    %389 = tpu.concatenate %368, %388 in 1 : vector<2x16xf32>, vector<2x16xf32> -> vector<2x32xf32>
    %c0_63 = arith.constant 0 : index
    %c0_64 = arith.constant 0 : index
    %390 = vector.load %arg7[%c0_63, %c0_64] : memref<32x64xf32, #tpu.memory_space<vmem>>, vector<32x64xf32>
    %cst_65 = arith.constant dense<0.000000e+00> : vector<2x64xf32>
    %391 = tpu.matmul %389, %390, %cst_65 {dimension_numbers = #tpu.dot_dimension_numbers<[1], [0], [0], [1], [0, 0, 1, 1], [], []>} : vector<2x32xf32>, vector<32x64xf32>, vector<2x64xf32> -> vector<2x64xf32>
    %c0_66 = arith.constant 0 : index
    %c0_67 = arith.constant 0 : index
    %392 = vector.load %arg8[%c0_66, %c0_67] : memref<1x64xf32, #tpu.memory_space<vmem>>, vector<1x64xf32>
    %393 = vector.broadcast %392 : vector<1x64xf32> to vector<2x64xf32>
    %394 = arith.addf %391, %393 : vector<2x64xf32>
    %395 = vector.extract_strided_slice %394 {offsets = [0, 0], sizes = [2, 32], strides = [1, 1]} : vector<2x64xf32> to vector<2x32xf32>
    %396 = vector.extract_strided_slice %394 {offsets = [0, 32], sizes = [2, 32], strides = [1, 1]} : vector<2x64xf32> to vector<2x32xf32>
    %cst_68 = arith.constant 5.000000e-01 : f32
    %397 = vector.broadcast %cst_68 : f32 to vector<2x32xf32>
    %398 = arith.mulf %397, %396 : vector<2x32xf32>
    %399 = math.exp %398 : vector<2x32xf32>
    %c0_69 = arith.constant 0 : index
    %c0_70 = arith.constant 0 : index
    %400 = vector.load %arg9[%c0_69, %c0_70] : memref<2x32xf32, #tpu.memory_space<vmem>>, vector<2x32xf32>
    %401 = arith.mulf %400, %399 : vector<2x32xf32>
    %402 = arith.addf %401, %395 : vector<2x32xf32>
    %403 = arith.mulf %395, %395 : vector<2x32xf32>
    %404 = arith.subf %396, %403 : vector<2x32xf32>
    %405 = arith.mulf %399, %399 : vector<2x32xf32>
    %406 = arith.subf %404, %405 : vector<2x32xf32>
    %cst_71 = arith.constant 1.000000e+00 : f32
    %407 = vector.broadcast %cst_71 : f32 to vector<2x32xf32>
    %408 = arith.addf %406, %407 : vector<2x32xf32>
    %409 = vector.shape_cast %408 : vector<2x32xf32> to vector<1x2x32xf32>
    %cst_72 = arith.constant dense<0.000000e+00> : vector<1xf32>
    %410 = vector.multi_reduction <add>, %409, %cst_72 [1, 2] : vector<1x2x32xf32> to vector<1xf32>
    %411 = vector.shape_cast %410 : vector<1xf32> to vector<1x1x1xf32>
    %412 = vector.extract %411[0, 0, 0] : f32 from vector<1x1x1xf32>
    %cst_73 = arith.constant -5.000000e-01 : f32
    %413 = arith.mulf %cst_73, %412 : f32
    %cst_74 = arith.constant 3.200000e+01 : f32
    %414 = arith.divf %413, %cst_74 : f32
    %415 = vector.broadcast %414 : f32 to vector<1x1xf32>
    %c0_75 = arith.constant 0 : index
    %c0_76 = arith.constant 0 : index
    %416 = vector.load %arg18[%c0_75, %c0_76] : memref<1x1xf32, #tpu.memory_space<vmem>>, vector<1x1xf32>
    tpu.vector_store %arg18[%c0_75, %c0_76], %415 {strides = array<i32>} : memref<1x1xf32, #tpu.memory_space<vmem>>, vector<1x1xf32>,
    %c0_77 = arith.constant 0 : index
    %c0_78 = arith.constant 0 : index
    %417 = vector.load %arg10[%c0_77, %c0_78] : memref<128x96xf32, #tpu.memory_space<vmem>>, vector<128x96xf32>
    %c0_79 = arith.constant 0 : index
    %c0_80 = arith.constant 0 : index
    %418 = vector.load %arg11[%c0_79, %c0_80] : memref<32x96xf32, #tpu.memory_space<vmem>>, vector<32x96xf32>
    %c0_81 = arith.constant 0 : index
    %c0_82 = arith.constant 0 : index
    %419 = vector.load %arg13[%c0_81, %c0_82] : memref<32x32xf32, #tpu.memory_space<vmem>>, vector<32x32xf32>
    %c0_83 = arith.constant 0 : index
    %c0_84 = arith.constant 0 : index
    %420 = vector.load %arg14[%c0_83, %c0_84] : memref<32x128xf32, #tpu.memory_space<vmem>>, vector<32x128xf32>
    %c0_85 = arith.constant 0 : index
    %c0_86 = arith.constant 0 : index
    %421 = vector.load %arg12[%c0_85, %c0_86] : memref<1x96xf32, #tpu.memory_space<vmem>>, vector<1x96xf32>
    %422 = vector.shape_cast %421 : vector<1x96xf32> to vector<1x96xf32>
    %423 = vector.broadcast %422 : vector<1x96xf32> to vector<2x96xf32>
    %c0_87 = arith.constant 0 : index
    %c0_88 = arith.constant 0 : index
    %424 = vector.load %arg15[%c0_87, %c0_88] : memref<1x128xf32, #tpu.memory_space<vmem>>, vector<1x128xf32>
    %425 = vector.shape_cast %424 : vector<1x128xf32> to vector<1x128xf32>
    %426 = vector.broadcast %425 : vector<1x128xf32> to vector<2x128xf32>
    %427 = tpu.iota {dimensions = array<i32: 1>} : vector<2x128xi32>
    %428 = arith.sitofp %427 : vector<2x128xi32> to vector<2x128xf32>
    %c3_i32 = arith.constant 3 : i32
    %429 = vector.broadcast %c3_i32 : i32 to vector<2x1xi32>
    %430 = vector.broadcast %429 : vector<2x1xi32> to vector<2x128xi32>
    %431 = arith.cmpi eq, %430, %427 : vector<2x128xi32>
    %432 = arith.extui %431 : vector<2x128xi1> to vector<2x128xi32>
    %433 = arith.sitofp %432 : vector<2x128xi32> to vector<2x128xf32>
    %cst_89 = arith.constant dense<0.000000e+00> : vector<2x96xf32>
    %434 = tpu.matmul %433, %417, %cst_89 {dimension_numbers = #tpu.dot_dimension_numbers<[1], [0], [0], [1], [0, 0, 1, 1], [], []>} : vector<2x128xf32>, vector<128x96xf32>, vector<2x96xf32> -> vector<2x96xf32>
    %cst_90 = arith.constant dense<0.000000e+00> : vector<2x96xf32>
    %435 = tpu.matmul %402, %418, %cst_90 {dimension_numbers = #tpu.dot_dimension_numbers<[1], [0], [0], [1], [0, 0, 1, 1], [], []>} : vector<2x32xf32>, vector<32x96xf32>, vector<2x96xf32> -> vector<2x96xf32>
    %436 = arith.addf %435, %423 : vector<2x96xf32>
    %437 = vector.extract_strided_slice %434 {offsets = [0, 0], sizes = [2, 64], strides = [1, 1]} : vector<2x96xf32> to vector<2x64xf32>
    %438 = vector.extract_strided_slice %436 {offsets = [0, 0], sizes = [2, 64], strides = [1, 1]} : vector<2x96xf32> to vector<2x64xf32>
    %439 = arith.addf %437, %438 : vector<2x64xf32>
    %440 = arith.negf %439 : vector<2x64xf32>
    %441 = math.exp %440 : vector<2x64xf32>
    %cst_91 = arith.constant 1.000000e+00 : f32
    %442 = vector.broadcast %cst_91 : f32 to vector<2x64xf32>
    %443 = arith.addf %442, %441 : vector<2x64xf32>
    %444 = arith.divf %442, %443 : vector<2x64xf32>
    %445 = vector.extract_strided_slice %444 {offsets = [0, 0], sizes = [2, 32], strides = [1, 1]} : vector<2x64xf32> to vector<2x32xf32>
    %446 = vector.extract_strided_slice %444 {offsets = [0, 32], sizes = [2, 32], strides = [1, 1]} : vector<2x64xf32> to vector<2x32xf32>
    %447 = vector.extract_strided_slice %434 {offsets = [0, 64], sizes = [2, 32], strides = [1, 1]} : vector<2x96xf32> to vector<2x32xf32>
    %448 = vector.extract_strided_slice %436 {offsets = [0, 64], sizes = [2, 32], strides = [1, 1]} : vector<2x96xf32> to vector<2x32xf32>
    %449 = arith.mulf %445, %448 : vector<2x32xf32>
    %450 = arith.addf %447, %449 : vector<2x32xf32>
    %451 = math.tanh %450 : vector<2x32xf32>
    %cst_92 = arith.constant 1.000000e+00 : f32
    %452 = vector.broadcast %cst_92 : f32 to vector<2x32xf32>
    %453 = arith.subf %452, %446 : vector<2x32xf32>
    %454 = arith.mulf %453, %451 : vector<2x32xf32>
    %455 = arith.mulf %446, %402 : vector<2x32xf32>
    %456 = arith.addf %454, %455 : vector<2x32xf32>
    %cst_93 = arith.constant dense<0.000000e+00> : vector<2x32xf32>
    %457 = tpu.matmul %456, %419, %cst_93 {dimension_numbers = #tpu.dot_dimension_numbers<[1], [0], [0], [1], [0, 0, 1, 1], [], []>} : vector<2x32xf32>, vector<32x32xf32>, vector<2x32xf32> -> vector<2x32xf32>
    %458 = math.tanh %457 : vector<2x32xf32>
    %cst_94 = arith.constant dense<0.000000e+00> : vector<2x128xf32>
    %459 = tpu.matmul %458, %420, %cst_94 {dimension_numbers = #tpu.dot_dimension_numbers<[1], [0], [0], [1], [0, 0, 1, 1], [], []>} : vector<2x32xf32>, vector<32x128xf32>, vector<2x128xf32> -> vector<2x128xf32>
    %460 = arith.addf %459, %426 : vector<2x128xf32>
    %c0_95 = arith.constant 0 : index
    %c0_96 = arith.constant 0 : index
    %461 = vector.load %arg16[%c0_95, %c0_96] : memref<12x128xf32, #tpu.memory_space<vmem>>, vector<2x128xf32>
    tpu.vector_store %arg16[%c0_95, %c0_96], %460 {strides = array<i32>} : memref<12x128xf32, #tpu.memory_space<vmem>>, vector<2x128xf32>,
    %cst_97 = arith.constant dense<0xFF800000> : vector<2xf32>
    %462 = vector.multi_reduction <maximumf>, %460, %cst_97 [1] : vector<2x128xf32> to vector<2xf32>
    %463 = vector.shape_cast %462 : vector<2xf32> to vector<2x1xf32>
    %464 = vector.broadcast %463 : vector<2x1xf32> to vector<2x128xf32>
    %465 = arith.cmpf oeq, %460, %464 : vector<2x128xf32>
    %cst_98 = arith.constant 1.280000e+02 : f32
    %466 = vector.broadcast %cst_98 : f32 to vector<2x128xf32>
    %467 = arith.select %465, %428, %466 : vector<2x128xi1>, vector<2x128xf32>
    %cst_99 = arith.constant dense<0x7F800000> : vector<2xf32>
    %468 = vector.multi_reduction <minimumf>, %467, %cst_99 [1] : vector<2x128xf32> to vector<2xf32>
    %469 = vector.shape_cast %468 : vector<2xf32> to vector<2x1xf32>
    %470 = arith.fptosi %469 : vector<2x1xf32> to vector<2x1xi32>
    %471 = vector.broadcast %470 : vector<2x1xi32> to vector<2x128xi32>
    %472 = arith.cmpi eq, %471, %427 : vector<2x128xi32>
    %473 = arith.extui %472 : vector<2x128xi1> to vector<2x128xi32>
    %474 = arith.sitofp %473 : vector<2x128xi32> to vector<2x128xf32>
    %cst_100 = arith.constant dense<0.000000e+00> : vector<2x96xf32>
    %475 = tpu.matmul %474, %417, %cst_100 {dimension_numbers = #tpu.dot_dimension_numbers<[1], [0], [0], [1], [0, 0, 1, 1], [], []>} : vector<2x128xf32>, vector<128x96xf32>, vector<2x96xf32> -> vector<2x96xf32>
    %cst_101 = arith.constant dense<0.000000e+00> : vector<2x96xf32>
    %476 = tpu.matmul %456, %418, %cst_101 {dimension_numbers = #tpu.dot_dimension_numbers<[1], [0], [0], [1], [0, 0, 1, 1], [], []>} : vector<2x32xf32>, vector<32x96xf32>, vector<2x96xf32> -> vector<2x96xf32>
    %477 = arith.addf %476, %423 : vector<2x96xf32>
    %478 = vector.extract_strided_slice %475 {offsets = [0, 0], sizes = [2, 64], strides = [1, 1]} : vector<2x96xf32> to vector<2x64xf32>
    %479 = vector.extract_strided_slice %477 {offsets = [0, 0], sizes = [2, 64], strides = [1, 1]} : vector<2x96xf32> to vector<2x64xf32>
    %480 = arith.addf %478, %479 : vector<2x64xf32>
    %481 = arith.negf %480 : vector<2x64xf32>
    %482 = math.exp %481 : vector<2x64xf32>
    %cst_102 = arith.constant 1.000000e+00 : f32
    %483 = vector.broadcast %cst_102 : f32 to vector<2x64xf32>
    %484 = arith.addf %483, %482 : vector<2x64xf32>
    %485 = arith.divf %483, %484 : vector<2x64xf32>
    %486 = vector.extract_strided_slice %485 {offsets = [0, 0], sizes = [2, 32], strides = [1, 1]} : vector<2x64xf32> to vector<2x32xf32>
    %487 = vector.extract_strided_slice %485 {offsets = [0, 32], sizes = [2, 32], strides = [1, 1]} : vector<2x64xf32> to vector<2x32xf32>
    %488 = vector.extract_strided_slice %475 {offsets = [0, 64], sizes = [2, 32], strides = [1, 1]} : vector<2x96xf32> to vector<2x32xf32>
    %489 = vector.extract_strided_slice %477 {offsets = [0, 64], sizes = [2, 32], strides = [1, 1]} : vector<2x96xf32> to vector<2x32xf32>
    %490 = arith.mulf %486, %489 : vector<2x32xf32>
    %491 = arith.addf %488, %490 : vector<2x32xf32>
    %492 = math.tanh %491 : vector<2x32xf32>
    %cst_103 = arith.constant 1.000000e+00 : f32
    %493 = vector.broadcast %cst_103 : f32 to vector<2x32xf32>
    %494 = arith.subf %493, %487 : vector<2x32xf32>
    %495 = arith.mulf %494, %492 : vector<2x32xf32>
    %496 = arith.mulf %487, %456 : vector<2x32xf32>
    %497 = arith.addf %495, %496 : vector<2x32xf32>
    %cst_104 = arith.constant dense<0.000000e+00> : vector<2x32xf32>
    %498 = tpu.matmul %497, %419, %cst_104 {dimension_numbers = #tpu.dot_dimension_numbers<[1], [0], [0], [1], [0, 0, 1, 1], [], []>} : vector<2x32xf32>, vector<32x32xf32>, vector<2x32xf32> -> vector<2x32xf32>
    %499 = math.tanh %498 : vector<2x32xf32>
    %cst_105 = arith.constant dense<0.000000e+00> : vector<2x128xf32>
    %500 = tpu.matmul %499, %420, %cst_105 {dimension_numbers = #tpu.dot_dimension_numbers<[1], [0], [0], [1], [0, 0, 1, 1], [], []>} : vector<2x32xf32>, vector<32x128xf32>, vector<2x128xf32> -> vector<2x128xf32>
    %501 = arith.addf %500, %426 : vector<2x128xf32>
    %c2 = arith.constant 2 : index
    %c0_106 = arith.constant 0 : index
    %502 = vector.load %arg16[%c2, %c0_106] : memref<12x128xf32, #tpu.memory_space<vmem>>, vector<2x128xf32>
    tpu.vector_store %arg16[%c2, %c0_106], %501 {strides = array<i32>} : memref<12x128xf32, #tpu.memory_space<vmem>>, vector<2x128xf32>,
    %cst_107 = arith.constant dense<0xFF800000> : vector<2xf32>
    %503 = vector.multi_reduction <maximumf>, %501, %cst_107 [1] : vector<2x128xf32> to vector<2xf32>
    %504 = vector.shape_cast %503 : vector<2xf32> to vector<2x1xf32>
    %505 = vector.broadcast %504 : vector<2x1xf32> to vector<2x128xf32>
    %506 = arith.cmpf oeq, %501, %505 : vector<2x128xf32>
    %cst_108 = arith.constant 1.280000e+02 : f32
    %507 = vector.broadcast %cst_108 : f32 to vector<2x128xf32>
    %508 = arith.select %506, %428, %507 : vector<2x128xi1>, vector<2x128xf32>
    %cst_109 = arith.constant dense<0x7F800000> : vector<2xf32>
    %509 = vector.multi_reduction <minimumf>, %508, %cst_109 [1] : vector<2x128xf32> to vector<2xf32>
    %510 = vector.shape_cast %509 : vector<2xf32> to vector<2x1xf32>
    %511 = arith.fptosi %510 : vector<2x1xf32> to vector<2x1xi32>
    %512 = vector.broadcast %511 : vector<2x1xi32> to vector<2x128xi32>
    %513 = arith.cmpi eq, %512, %427 : vector<2x128xi32>
    %514 = arith.extui %513 : vector<2x128xi1> to vector<2x128xi32>
    %515 = arith.sitofp %514 : vector<2x128xi32> to vector<2x128xf32>
    %cst_110 = arith.constant dense<0.000000e+00> : vector<2x96xf32>
    %516 = tpu.matmul %515, %417, %cst_110 {dimension_numbers = #tpu.dot_dimension_numbers<[1], [0], [0], [1], [0, 0, 1, 1], [], []>} : vector<2x128xf32>, vector<128x96xf32>, vector<2x96xf32> -> vector<2x96xf32>
    %cst_111 = arith.constant dense<0.000000e+00> : vector<2x96xf32>
    %517 = tpu.matmul %497, %418, %cst_111 {dimension_numbers = #tpu.dot_dimension_numbers<[1], [0], [0], [1], [0, 0, 1, 1], [], []>} : vector<2x32xf32>, vector<32x96xf32>, vector<2x96xf32> -> vector<2x96xf32>
    %518 = arith.addf %517, %423 : vector<2x96xf32>
    %519 = vector.extract_strided_slice %516 {offsets = [0, 0], sizes = [2, 64], strides = [1, 1]} : vector<2x96xf32> to vector<2x64xf32>
    %520 = vector.extract_strided_slice %518 {offsets = [0, 0], sizes = [2, 64], strides = [1, 1]} : vector<2x96xf32> to vector<2x64xf32>
    %521 = arith.addf %519, %520 : vector<2x64xf32>
    %522 = arith.negf %521 : vector<2x64xf32>
    %523 = math.exp %522 : vector<2x64xf32>
    %cst_112 = arith.constant 1.000000e+00 : f32
    %524 = vector.broadcast %cst_112 : f32 to vector<2x64xf32>
    %525 = arith.addf %524, %523 : vector<2x64xf32>
    %526 = arith.divf %524, %525 : vector<2x64xf32>
    %527 = vector.extract_strided_slice %526 {offsets = [0, 0], sizes = [2, 32], strides = [1, 1]} : vector<2x64xf32> to vector<2x32xf32>
    %528 = vector.extract_strided_slice %526 {offsets = [0, 32], sizes = [2, 32], strides = [1, 1]} : vector<2x64xf32> to vector<2x32xf32>
    %529 = vector.extract_strided_slice %516 {offsets = [0, 64], sizes = [2, 32], strides = [1, 1]} : vector<2x96xf32> to vector<2x32xf32>
    %530 = vector.extract_strided_slice %518 {offsets = [0, 64], sizes = [2, 32], strides = [1, 1]} : vector<2x96xf32> to vector<2x32xf32>
    %531 = arith.mulf %527, %530 : vector<2x32xf32>
    %532 = arith.addf %529, %531 : vector<2x32xf32>
    %533 = math.tanh %532 : vector<2x32xf32>
    %cst_113 = arith.constant 1.000000e+00 : f32
    %534 = vector.broadcast %cst_113 : f32 to vector<2x32xf32>
    %535 = arith.subf %534, %528 : vector<2x32xf32>
    %536 = arith.mulf %535, %533 : vector<2x32xf32>
    %537 = arith.mulf %528, %497 : vector<2x32xf32>
    %538 = arith.addf %536, %537 : vector<2x32xf32>
    %cst_114 = arith.constant dense<0.000000e+00> : vector<2x32xf32>
    %539 = tpu.matmul %538, %419, %cst_114 {dimension_numbers = #tpu.dot_dimension_numbers<[1], [0], [0], [1], [0, 0, 1, 1], [], []>} : vector<2x32xf32>, vector<32x32xf32>, vector<2x32xf32> -> vector<2x32xf32>
    %540 = math.tanh %539 : vector<2x32xf32>
    %cst_115 = arith.constant dense<0.000000e+00> : vector<2x128xf32>
    %541 = tpu.matmul %540, %420, %cst_115 {dimension_numbers = #tpu.dot_dimension_numbers<[1], [0], [0], [1], [0, 0, 1, 1], [], []>} : vector<2x32xf32>, vector<32x128xf32>, vector<2x128xf32> -> vector<2x128xf32>
    %542 = arith.addf %541, %426 : vector<2x128xf32>
    %c4 = arith.constant 4 : index
    %c0_116 = arith.constant 0 : index
    %543 = vector.load %arg16[%c4, %c0_116] : memref<12x128xf32, #tpu.memory_space<vmem>>, vector<2x128xf32>
    tpu.vector_store %arg16[%c4, %c0_116], %542 {strides = array<i32>} : memref<12x128xf32, #tpu.memory_space<vmem>>, vector<2x128xf32>,
    %cst_117 = arith.constant dense<0xFF800000> : vector<2xf32>
    %544 = vector.multi_reduction <maximumf>, %542, %cst_117 [1] : vector<2x128xf32> to vector<2xf32>
    %545 = vector.shape_cast %544 : vector<2xf32> to vector<2x1xf32>
    %546 = vector.broadcast %545 : vector<2x1xf32> to vector<2x128xf32>
    %547 = arith.cmpf oeq, %542, %546 : vector<2x128xf32>
    %cst_118 = arith.constant 1.280000e+02 : f32
    %548 = vector.broadcast %cst_118 : f32 to vector<2x128xf32>
    %549 = arith.select %547, %428, %548 : vector<2x128xi1>, vector<2x128xf32>
    %cst_119 = arith.constant dense<0x7F800000> : vector<2xf32>
    %550 = vector.multi_reduction <minimumf>, %549, %cst_119 [1] : vector<2x128xf32> to vector<2xf32>
    %551 = vector.shape_cast %550 : vector<2xf32> to vector<2x1xf32>
    %552 = arith.fptosi %551 : vector<2x1xf32> to vector<2x1xi32>
    %553 = vector.broadcast %552 : vector<2x1xi32> to vector<2x128xi32>
    %554 = arith.cmpi eq, %553, %427 : vector<2x128xi32>
    %555 = arith.extui %554 : vector<2x128xi1> to vector<2x128xi32>
    %556 = arith.sitofp %555 : vector<2x128xi32> to vector<2x128xf32>
    %cst_120 = arith.constant dense<0.000000e+00> : vector<2x96xf32>
    %557 = tpu.matmul %556, %417, %cst_120 {dimension_numbers = #tpu.dot_dimension_numbers<[1], [0], [0], [1], [0, 0, 1, 1], [], []>} : vector<2x128xf32>, vector<128x96xf32>, vector<2x96xf32> -> vector<2x96xf32>
    %cst_121 = arith.constant dense<0.000000e+00> : vector<2x96xf32>
    %558 = tpu.matmul %538, %418, %cst_121 {dimension_numbers = #tpu.dot_dimension_numbers<[1], [0], [0], [1], [0, 0, 1, 1], [], []>} : vector<2x32xf32>, vector<32x96xf32>, vector<2x96xf32> -> vector<2x96xf32>
    %559 = arith.addf %558, %423 : vector<2x96xf32>
    %560 = vector.extract_strided_slice %557 {offsets = [0, 0], sizes = [2, 64], strides = [1, 1]} : vector<2x96xf32> to vector<2x64xf32>
    %561 = vector.extract_strided_slice %559 {offsets = [0, 0], sizes = [2, 64], strides = [1, 1]} : vector<2x96xf32> to vector<2x64xf32>
    %562 = arith.addf %560, %561 : vector<2x64xf32>
    %563 = arith.negf %562 : vector<2x64xf32>
    %564 = math.exp %563 : vector<2x64xf32>
    %cst_122 = arith.constant 1.000000e+00 : f32
    %565 = vector.broadcast %cst_122 : f32 to vector<2x64xf32>
    %566 = arith.addf %565, %564 : vector<2x64xf32>
    %567 = arith.divf %565, %566 : vector<2x64xf32>
    %568 = vector.extract_strided_slice %567 {offsets = [0, 0], sizes = [2, 32], strides = [1, 1]} : vector<2x64xf32> to vector<2x32xf32>
    %569 = vector.extract_strided_slice %567 {offsets = [0, 32], sizes = [2, 32], strides = [1, 1]} : vector<2x64xf32> to vector<2x32xf32>
    %570 = vector.extract_strided_slice %557 {offsets = [0, 64], sizes = [2, 32], strides = [1, 1]} : vector<2x96xf32> to vector<2x32xf32>
    %571 = vector.extract_strided_slice %559 {offsets = [0, 64], sizes = [2, 32], strides = [1, 1]} : vector<2x96xf32> to vector<2x32xf32>
    %572 = arith.mulf %568, %571 : vector<2x32xf32>
    %573 = arith.addf %570, %572 : vector<2x32xf32>
    %574 = math.tanh %573 : vector<2x32xf32>
    %cst_123 = arith.constant 1.000000e+00 : f32
    %575 = vector.broadcast %cst_123 : f32 to vector<2x32xf32>
    %576 = arith.subf %575, %569 : vector<2x32xf32>
    %577 = arith.mulf %576, %574 : vector<2x32xf32>
    %578 = arith.mulf %569, %538 : vector<2x32xf32>
    %579 = arith.addf %577, %578 : vector<2x32xf32>
    %cst_124 = arith.constant dense<0.000000e+00> : vector<2x32xf32>
    %580 = tpu.matmul %579, %419, %cst_124 {dimension_numbers = #tpu.dot_dimension_numbers<[1], [0], [0], [1], [0, 0, 1, 1], [], []>} : vector<2x32xf32>, vector<32x32xf32>, vector<2x32xf32> -> vector<2x32xf32>
    %581 = math.tanh %580 : vector<2x32xf32>
    %cst_125 = arith.constant dense<0.000000e+00> : vector<2x128xf32>
    %582 = tpu.matmul %581, %420, %cst_125 {dimension_numbers = #tpu.dot_dimension_numbers<[1], [0], [0], [1], [0, 0, 1, 1], [], []>} : vector<2x32xf32>, vector<32x128xf32>, vector<2x128xf32> -> vector<2x128xf32>
    %583 = arith.addf %582, %426 : vector<2x128xf32>
    %c6 = arith.constant 6 : index
    %c0_126 = arith.constant 0 : index
    %584 = vector.load %arg16[%c6, %c0_126] : memref<12x128xf32, #tpu.memory_space<vmem>>, vector<2x128xf32>
    tpu.vector_store %arg16[%c6, %c0_126], %583 {strides = array<i32>} : memref<12x128xf32, #tpu.memory_space<vmem>>, vector<2x128xf32>,
    %cst_127 = arith.constant dense<0xFF800000> : vector<2xf32>
    %585 = vector.multi_reduction <maximumf>, %583, %cst_127 [1] : vector<2x128xf32> to vector<2xf32>
    %586 = vector.shape_cast %585 : vector<2xf32> to vector<2x1xf32>
    %587 = vector.broadcast %586 : vector<2x1xf32> to vector<2x128xf32>
    %588 = arith.cmpf oeq, %583, %587 : vector<2x128xf32>
    %cst_128 = arith.constant 1.280000e+02 : f32
    %589 = vector.broadcast %cst_128 : f32 to vector<2x128xf32>
    %590 = arith.select %588, %428, %589 : vector<2x128xi1>, vector<2x128xf32>
    %cst_129 = arith.constant dense<0x7F800000> : vector<2xf32>
    %591 = vector.multi_reduction <minimumf>, %590, %cst_129 [1] : vector<2x128xf32> to vector<2xf32>
    %592 = vector.shape_cast %591 : vector<2xf32> to vector<2x1xf32>
    %593 = arith.fptosi %592 : vector<2x1xf32> to vector<2x1xi32>
    %594 = vector.broadcast %593 : vector<2x1xi32> to vector<2x128xi32>
    %595 = arith.cmpi eq, %594, %427 : vector<2x128xi32>
    %596 = arith.extui %595 : vector<2x128xi1> to vector<2x128xi32>
    %597 = arith.sitofp %596 : vector<2x128xi32> to vector<2x128xf32>
    %cst_130 = arith.constant dense<0.000000e+00> : vector<2x96xf32>
    %598 = tpu.matmul %597, %417, %cst_130 {dimension_numbers = #tpu.dot_dimension_numbers<[1], [0], [0], [1], [0, 0, 1, 1], [], []>} : vector<2x128xf32>, vector<128x96xf32>, vector<2x96xf32> -> vector<2x96xf32>
    %cst_131 = arith.constant dense<0.000000e+00> : vector<2x96xf32>
    %599 = tpu.matmul %579, %418, %cst_131 {dimension_numbers = #tpu.dot_dimension_numbers<[1], [0], [0], [1], [0, 0, 1, 1], [], []>} : vector<2x32xf32>, vector<32x96xf32>, vector<2x96xf32> -> vector<2x96xf32>
    %600 = arith.addf %599, %423 : vector<2x96xf32>
    %601 = vector.extract_strided_slice %598 {offsets = [0, 0], sizes = [2, 64], strides = [1, 1]} : vector<2x96xf32> to vector<2x64xf32>
    %602 = vector.extract_strided_slice %600 {offsets = [0, 0], sizes = [2, 64], strides = [1, 1]} : vector<2x96xf32> to vector<2x64xf32>
    %603 = arith.addf %601, %602 : vector<2x64xf32>
    %604 = arith.negf %603 : vector<2x64xf32>
    %605 = math.exp %604 : vector<2x64xf32>
    %cst_132 = arith.constant 1.000000e+00 : f32
    %606 = vector.broadcast %cst_132 : f32 to vector<2x64xf32>
    %607 = arith.addf %606, %605 : vector<2x64xf32>
    %608 = arith.divf %606, %607 : vector<2x64xf32>
    %609 = vector.extract_strided_slice %608 {offsets = [0, 0], sizes = [2, 32], strides = [1, 1]} : vector<2x64xf32> to vector<2x32xf32>
    %610 = vector.extract_strided_slice %608 {offsets = [0, 32], sizes = [2, 32], strides = [1, 1]} : vector<2x64xf32> to vector<2x32xf32>
    %611 = vector.extract_strided_slice %598 {offsets = [0, 64], sizes = [2, 32], strides = [1, 1]} : vector<2x96xf32> to vector<2x32xf32>
    %612 = vector.extract_strided_slice %600 {offsets = [0, 64], sizes = [2, 32], strides = [1, 1]} : vector<2x96xf32> to vector<2x32xf32>
    %613 = arith.mulf %609, %612 : vector<2x32xf32>
    %614 = arith.addf %611, %613 : vector<2x32xf32>
    %615 = math.tanh %614 : vector<2x32xf32>
    %cst_133 = arith.constant 1.000000e+00 : f32
    %616 = vector.broadcast %cst_133 : f32 to vector<2x32xf32>
    %617 = arith.subf %616, %610 : vector<2x32xf32>
    %618 = arith.mulf %617, %615 : vector<2x32xf32>
    %619 = arith.mulf %610, %579 : vector<2x32xf32>
    %620 = arith.addf %618, %619 : vector<2x32xf32>
    %cst_134 = arith.constant dense<0.000000e+00> : vector<2x32xf32>
    %621 = tpu.matmul %620, %419, %cst_134 {dimension_numbers = #tpu.dot_dimension_numbers<[1], [0], [0], [1], [0, 0, 1, 1], [], []>} : vector<2x32xf32>, vector<32x32xf32>, vector<2x32xf32> -> vector<2x32xf32>
    %622 = math.tanh %621 : vector<2x32xf32>
    %cst_135 = arith.constant dense<0.000000e+00> : vector<2x128xf32>
    %623 = tpu.matmul %622, %420, %cst_135 {dimension_numbers = #tpu.dot_dimension_numbers<[1], [0], [0], [1], [0, 0, 1, 1], [], []>} : vector<2x32xf32>, vector<32x128xf32>, vector<2x128xf32> -> vector<2x128xf32>
    %624 = arith.addf %623, %426 : vector<2x128xf32>
    %c8 = arith.constant 8 : index
    %c0_136 = arith.constant 0 : index
    %625 = vector.load %arg16[%c8, %c0_136] : memref<12x128xf32, #tpu.memory_space<vmem>>, vector<2x128xf32>
    tpu.vector_store %arg16[%c8, %c0_136], %624 {strides = array<i32>} : memref<12x128xf32, #tpu.memory_space<vmem>>, vector<2x128xf32>,
    %cst_137 = arith.constant dense<0xFF800000> : vector<2xf32>
    %626 = vector.multi_reduction <maximumf>, %624, %cst_137 [1] : vector<2x128xf32> to vector<2xf32>
    %627 = vector.shape_cast %626 : vector<2xf32> to vector<2x1xf32>
    %628 = vector.broadcast %627 : vector<2x1xf32> to vector<2x128xf32>
    %629 = arith.cmpf oeq, %624, %628 : vector<2x128xf32>
    %cst_138 = arith.constant 1.280000e+02 : f32
    %630 = vector.broadcast %cst_138 : f32 to vector<2x128xf32>
    %631 = arith.select %629, %428, %630 : vector<2x128xi1>, vector<2x128xf32>
    %cst_139 = arith.constant dense<0x7F800000> : vector<2xf32>
    %632 = vector.multi_reduction <minimumf>, %631, %cst_139 [1] : vector<2x128xf32> to vector<2xf32>
    %633 = vector.shape_cast %632 : vector<2xf32> to vector<2x1xf32>
    %634 = arith.fptosi %633 : vector<2x1xf32> to vector<2x1xi32>
    %635 = vector.broadcast %634 : vector<2x1xi32> to vector<2x128xi32>
    %636 = arith.cmpi eq, %635, %427 : vector<2x128xi32>
    %637 = arith.extui %636 : vector<2x128xi1> to vector<2x128xi32>
    %638 = arith.sitofp %637 : vector<2x128xi32> to vector<2x128xf32>
    %cst_140 = arith.constant dense<0.000000e+00> : vector<2x96xf32>
    %639 = tpu.matmul %638, %417, %cst_140 {dimension_numbers = #tpu.dot_dimension_numbers<[1], [0], [0], [1], [0, 0, 1, 1], [], []>} : vector<2x128xf32>, vector<128x96xf32>, vector<2x96xf32> -> vector<2x96xf32>
    %cst_141 = arith.constant dense<0.000000e+00> : vector<2x96xf32>
    %640 = tpu.matmul %620, %418, %cst_141 {dimension_numbers = #tpu.dot_dimension_numbers<[1], [0], [0], [1], [0, 0, 1, 1], [], []>} : vector<2x32xf32>, vector<32x96xf32>, vector<2x96xf32> -> vector<2x96xf32>
    %641 = arith.addf %640, %423 : vector<2x96xf32>
    %642 = vector.extract_strided_slice %639 {offsets = [0, 0], sizes = [2, 64], strides = [1, 1]} : vector<2x96xf32> to vector<2x64xf32>
    %643 = vector.extract_strided_slice %641 {offsets = [0, 0], sizes = [2, 64], strides = [1, 1]} : vector<2x96xf32> to vector<2x64xf32>
    %644 = arith.addf %642, %643 : vector<2x64xf32>
    %645 = arith.negf %644 : vector<2x64xf32>
    %646 = math.exp %645 : vector<2x64xf32>
    %cst_142 = arith.constant 1.000000e+00 : f32
    %647 = vector.broadcast %cst_142 : f32 to vector<2x64xf32>
    %648 = arith.addf %647, %646 : vector<2x64xf32>
    %649 = arith.divf %647, %648 : vector<2x64xf32>
    %650 = vector.extract_strided_slice %649 {offsets = [0, 0], sizes = [2, 32], strides = [1, 1]} : vector<2x64xf32> to vector<2x32xf32>
    %651 = vector.extract_strided_slice %649 {offsets = [0, 32], sizes = [2, 32], strides = [1, 1]} : vector<2x64xf32> to vector<2x32xf32>
    %652 = vector.extract_strided_slice %639 {offsets = [0, 64], sizes = [2, 32], strides = [1, 1]} : vector<2x96xf32> to vector<2x32xf32>
    %653 = vector.extract_strided_slice %641 {offsets = [0, 64], sizes = [2, 32], strides = [1, 1]} : vector<2x96xf32> to vector<2x32xf32>
    %654 = arith.mulf %650, %653 : vector<2x32xf32>
    %655 = arith.addf %652, %654 : vector<2x32xf32>
    %656 = math.tanh %655 : vector<2x32xf32>
    %cst_143 = arith.constant 1.000000e+00 : f32
    %657 = vector.broadcast %cst_143 : f32 to vector<2x32xf32>
    %658 = arith.subf %657, %651 : vector<2x32xf32>
    %659 = arith.mulf %658, %656 : vector<2x32xf32>
    %660 = arith.mulf %651, %620 : vector<2x32xf32>
    %661 = arith.addf %659, %660 : vector<2x32xf32>
    %cst_144 = arith.constant dense<0.000000e+00> : vector<2x32xf32>
    %662 = tpu.matmul %661, %419, %cst_144 {dimension_numbers = #tpu.dot_dimension_numbers<[1], [0], [0], [1], [0, 0, 1, 1], [], []>} : vector<2x32xf32>, vector<32x32xf32>, vector<2x32xf32> -> vector<2x32xf32>
    %663 = math.tanh %662 : vector<2x32xf32>
    %cst_145 = arith.constant dense<0.000000e+00> : vector<2x128xf32>
    %664 = tpu.matmul %663, %420, %cst_145 {dimension_numbers = #tpu.dot_dimension_numbers<[1], [0], [0], [1], [0, 0, 1, 1], [], []>} : vector<2x32xf32>, vector<32x128xf32>, vector<2x128xf32> -> vector<2x128xf32>
    %665 = arith.addf %664, %426 : vector<2x128xf32>
    %c10 = arith.constant 10 : index
    %c0_146 = arith.constant 0 : index
    %666 = vector.load %arg16[%c10, %c0_146] : memref<12x128xf32, #tpu.memory_space<vmem>>, vector<2x128xf32>
    tpu.vector_store %arg16[%c10, %c0_146], %665 {strides = array<i32>} : memref<12x128xf32, #tpu.memory_space<vmem>>, vector<2x128xf32>,
    %c0_147 = arith.constant 0 : index
    %c0_148 = arith.constant 0 : index
    %667 = vector.load %arg17[%c0_147, %c0_148] : memref<2x32xf32, #tpu.memory_space<vmem>>, vector<2x32xf32>
    tpu.vector_store %arg17[%c0_147, %c0_148], %661 {strides = array<i32>} : memref<2x32xf32, #tpu.memory_space<vmem>>, vector<2x32xf32>,
    return
  }
}

</mosaic_0001>

<bundles_post_ra>
// kernel: rvae_forward.1
= control target key start
LH: loop header
LB: loop body
LE: loop exit
PB: predicated region body
PF: predicated region fallthrough
CT: control target
= control target key end

     0   :  { %s6489_s0 = inlined_call_operand.vmem [shape: s32[16,1], index: 0, kind: input, shape index: {}]   ;;  %s6490_s1 = inlined_call_operand.vmem [shape: f32[128,96], index: 1, kind: input, shape index: {}]   ;;  %s6491_s2 = inlined_call_operand.vmem [shape: f32[1,96], index: 2, kind: input, shape index: {}]   ;;  %s6492_s3 = inlined_call_operand.vmem [shape: f32[16,48], index: 3, kind: input, shape index: {}]   ;;  %s6493_s4 = inlined_call_operand.vmem [shape: f32[1,48], index: 4, kind: input, shape index: {}]   ;;  %s6494_s5 = inlined_call_operand.vmem [shape: f32[16,48], index: 5, kind: input, shape index: {}]   ;;  %s6495_s6 = inlined_call_operand.vmem [shape: f32[1,48], index: 6, kind: input, shape index: {}]   ;;  %s6496_s7 = inlined_call_operand.vmem [shape: f32[32,64], index: 7, kind: input, shape index: {}]   ;;  %s6497_s8 = inlined_call_operand.vmem [shape: f32[1,64], index: 8, kind: input, shape index: {}]   ;;  %s6498_s9 = inlined_call_operand.vmem [shape: f32[2,32], index: 9, kind: input, shape index: {}]   ;;  %s6499_s10 = inlined_call_operand.vmem [shape: f32[128,96], index: 10, kind: input, shape index: {}]   ;;  %s6500_s11 = inlined_call_operand.vmem [shape: f32[32,96], index: 11, kind: input, shape index: {}]   ;;  %s6501_s12 = inlined_call_operand.vmem [shape: f32[1,96], index: 12, kind: input, shape index: {}]   ;;  %s6502_s13 = inlined_call_operand.vmem [shape: f32[32,32], index: 13, kind: input, shape index: {}]   ;;  %s6503_s14 = inlined_call_operand.vmem [shape: f32[32,128], index: 14, kind: input, shape index: {}]   ;;  %s6504_s15 = inlined_call_operand.vmem [shape: f32[1,128], index: 15, kind: input, shape index: {}]   ;;  %s6505_s16 = inlined_call_operand.vmem [shape: f32[12,128], index: 16, kind: output, shape index: {0}]   ;;  %s6506_s17 = inlined_call_operand.hbm [shape: f32[2,32], index: 17, kind: output, shape index: {1}]   ;;  %s6507_s18 = inlined_call_operand.hbm [shape: f32[1,1], index: 18, kind: output, shape index: {2}]  }
   0x1   :  { %6510 = sst [smem:[#allocation8_spill]] %s6489_s0 }
   0x2   :  { %6511 = sst [smem:[#allocation9_spill]] %s6490_s1 }
   0x3   :  { %6512 = sst [smem:[#allocation10_spill]] %s6491_s2 }
   0x4   :  { %24 = vsyncpa [#allocation3], 0  ;;  %s6513_s29 = sld [smem:[#allocation8_spill]]  ;;  %v172_v1 = vld [vmem:[%s6492_s3] sm:$0xff]  ;;  %v173_v2 = vld [vmem:[%s6492_s3 + $0x8] sm:$0xff]  ;;  %v5523_v3 = vmov 0  }
   0x5   :  { %5328 = vset.pattern.permute.xlu0 %v5523_v3  ;;  %v5524_v4 = vmov 0.0|0.0   ;;  %v5642_v5 = vpack.c.bf16 %v173_v2, %v172_v1  ;;  %v174_v6 = vld [vmem:[%s6494_s5] sm:$0xff]  ;;  %v175_v7 = vld [vmem:[%s6494_s5 + $0x8] sm:$0xff]  ;;  %vm5525_vm0 = vmmov 0   ;;  %v5526_v8 = vmov 0.0   ;;  %s6514_s24 = sld [smem:[#allocation9_spill]] }
   0x6   :  { %4996 = vmatprep.subr.bf16.mxu1 %v5524_v4  ;;  %4437 = vmatprep.mubr.msk.f32.mxu1 %vm5525_vm0, %v5526_v8  ;;  %v5665_v13 = vpack.c.bf16 %v175_v7, %v174_v6 }
   0x7   :  { %4998 = vmatpush3.bf16.msra.mxu1 %v5642_v5 }
   0x8   :  { %4999 = vmatprep.subr.bf16.mxu1 %v5524_v4 }
   0xa   :  { %v58_v0 = vld [vmem:[%s6513_s29] sm:$0xff]  ;;  %v59_v12 = vld [vmem:[%s6513_s29 + $0x8] sm:$0xff]  ;;  %4438 = vmatmul.mubr.f32.vlgmr.msra.gmra.mrb[0].mxu1 %v5526_v8 }
   0xb   :  { %63 = vperm.xlu0 %5328, %v58_v0   ;;  %v74_v9 = vld [vmem:[%s6514_s24] sm:$0xff]  ;;  %v75_v10 = vld [vmem:[%s6514_s24 + $0x8] sm:$0xff]  ;;  %v76_v11 = vld [vmem:[%s6514_s24 + $0x10] sm:$0xff]  ;;  %5001 = vmatpush3.bf16.msra.mxu1 %v5665_v13 }
   0xc   :  { %v4964_v14 = vpack.c.bf16 %v75_v10, %v74_v9  ;;  %v77_v15 = vld [vmem:[%s6514_s24 + $0x18] sm:$0xff]  ;;  %v78_v17 = vld [vmem:[%s6514_s24 + $0x20] sm:$0xff]  ;;  %v79_v18 = vld [vmem:[%s6514_s24 + $0x28] sm:$0xff]  ;;  %4444 = vmatprep.mubr.msk.f32.mxu1 %vm5525_vm0, %v5526_v8 }
   0xd   :  { %v4968_v16 = vpack.c.bf16 %v77_v15, %v76_v11 }
   0xe   :  { %4965 = vmatprep.subr.bf16.mxu0 %v4964_v14 }
   0xf   :  { %66 = vperm.xlu0 %5328, %v59_v12  }
  0x10   :  { %25 = vsyncpa [#allocation5], 0  ;;  %4967 = vmatpush3.bf16.msra.mxu0 %v4964_v14  ;;  %5002 = vmatprep.subr.bf16.mxu1 %v5524_v4  ;;  %v4972_v19 = vpack.c.bf16 %v79_v18, %v78_v17  ;;  %v80_v20 = vld [vmem:[%s6514_s24 + $0x30] sm:$0xff]  ;;  %v81_v21 = vld [vmem:[%s6514_s24 + $0x38] sm:$0xff]  ;;  %v60_v35 = vlaneseq  ;;  %v5527_v38 = vmov 1.0   ;;  %s5528_s28 = smov 48  }
  0x11   :  { %4969 = vmatprep.subr.bf16.mxu0 %v4968_v16  ;;  %4445 = vmatmul.mubr.f32.vlgmr.msra.gmra.mrb[2].mxu1 %v5526_v8  ;;  %v4976_v22 = vpack.c.bf16 %v81_v21, %v80_v20  ;;  %v82_v23 = vld [vmem:[%s6514_s24 + $0x40] sm:$0xff]  ;;  %v83_v24 = vld [vmem:[%s6514_s24 + $0x48] sm:$0xff]  ;;  %v84_v26 = vld [vmem:[%s6514_s24 + $0x50] sm:$0xff]  ;;  %s5529_s5 = smov 16   ;;  %s6515_s19 = sld [smem:[#allocation10_spill]]  ;;  %vm190_vm3 = vcmask 130048  }
  0x12   :  { %5004 = vmatpush3.bf16.msra.mxu1 %v5642_v5  ;;  %4451 = vmatprep.mubr.msk.f32.mxu1 %vm5525_vm0, %v5526_v8  ;;  %v4980_v25 = vpack.c.bf16 %v83_v24, %v82_v23  ;;  %v85_v27 = vld [vmem:[%s6514_s24 + $0x58] sm:$0xff]  ;;  %v86_v29 = vld [vmem:[%s6514_s24 + $0x60] sm:$0xff]  ;;  %v87_v30 = vld [vmem:[%s6514_s24 + $0x68] sm:$0xff]  ;;  %v5718_v36 = vand.u32 127, %v60_v35  ;;  %s5532_s1 = smov 112   ;;  %s5533_s20 = smov 64  }
  0x13   :  { %5005 = vmatprep.subr.bf16.mxu1 %v5524_v4  ;;  %v4984_v28 = vpack.c.bf16 %v85_v27, %v84_v26  ;;  %v4988_v31 = vpack.c.bf16 %v87_v30, %v86_v29  ;;  %v88_v32 = vld [vmem:[%s6514_s24 + $0x70] sm:$0xff]  ;;  %v89_v33 = vld [vmem:[%s6514_s24 + $0x78] sm:$0xff]  ;;  %v5731_v42 = vld [vmem:[%s6495_s6] ss:$0 sm:$0xff]  ;;  %s5530_s6 = smov 96   ;;  %s5534_s26 = smov 80  }
  0x14   :  { %4971 = vmatpush3.bf16.msra.mxu0 %v4968_v16  ;;  %v4992_v34 = vpack.c.bf16 %v89_v33, %v88_v32  ;;  %v5737_v46 = vld [vmem:[%s6493_s4] ss:$0 sm:$0xff]  ;;  %s5531_s4 = smov 32   ;;  %vm1901_vm4 = vcmask 261120   ;;  %vm2058_vm5 = vcmp.eq.s32.totalorder %v5718_v36, 3  ;;  %vm2383_vm6 = vcmask 1041408  }
  0x15   :  { %4973 = vmatprep.subr.bf16.mxu0 %v4972_v19  ;;  %s5535_s22 = smov [#allocation2]   ;;  %s5536_s3 = smov [#allocation4]  }
  0x16   :  { %s4034_s2 = sshll.u32 %s5535_s22, 4  ;;  %s4044_s23 = sshll.u32 %s5536_s3, 4  ;;  %s4035_s2 = int_to_ptr.vmem [resolvable:$true] %s4034_s2  ;;  %s4045_s23 = int_to_ptr.vmem [resolvable:$true] %s4044_s23 }
  0x17   :  { %v4060_v49 = vld [vmem:[%s6515_s19] ss:$0 sm:$0xff]  ;;  %s5475_s24 = scalar_lea.vmem %s4035_s2, 32  ;;  %p5480_p1 = scmp.lt.s32.totalorder %s4035_s2, %s4035_s2 }
  0x18   :  { %4975 = vmatpush3.bf16.msra.mxu0 %v4972_v19  ;;  %p5476_p0 = scmp.ne.s32.totalorder %s4035_s2, %s5475_s24  ;;  %p5481_p2 = scmp.lt.s32.totalorder %s5475_s24, %s5475_s24 }
  0x19   :  { %4977 = vmatprep.subr.bf16.mxu0 %v4976_v22 }
  0x1a   :  { %p5482_p3 = por %p5481_p2, %p5480_p1 }
  0x1c   :  { %4979 = vmatpush3.bf16.msra.mxu0 %v4976_v22  ;;  %p5483_p4 = pnand %p5482_p3, %p5476_p0 }
  0x1d   :  { %4981 = vmatprep.subr.bf16.mxu0 %v4980_v25 }
  0x20   :  { %4983 = vmatpush3.bf16.msra.mxu0 %v4980_v25 }
  0x21   :  { %4985 = vmatprep.subr.bf16.mxu0 %v4984_v28 }
  0x24   :  { %4987 = vmatpush3.bf16.msra.mxu0 %v4984_v28 }
  0x25   :  { %4989 = vmatprep.subr.bf16.mxu0 %v4988_v31 }
  0x28   :  { %4991 = vmatpush3.bf16.msra.mxu0 %v4988_v31 }
  0x29   :  { %4993 = vmatprep.subr.bf16.mxu0 %v4992_v34 }
  0x2c   :  { %4995 = vmatpush3.bf16.msra.mxu0 %v4992_v34 }
  0x2d   :  { %5026 = vmatprep.subr.bf16.mxu0 %v5524_v4 }
  0x8a   :  { %v64_v37 = vpop.permute.xlu0 %63 }
  0x8b   :  { %vm68_vm1 = vcmp.eq.s32.totalorder %v64_v37, %v5718_v36 }
  0x8c   :  { %4430 = vmatprep.mubr.msk.f32.mxu0 %vm68_vm1, %v5527_v38 }
  0x8e   :  { %v67_v39 = vpop.permute.xlu0 %66 }
  0x8f   :  { %vm69_vm2 = vcmp.eq.s32.totalorder %v67_v39, %v5718_v36 }
  0x90   :  { %4431 = vmatmul.mubr.msk.f32.vlgmr.msra.gmra.mrb[0].mxu0 %vm69_vm2, %v5527_v38  ;;  %vm1997_vm2 = vcmask 254976  }
  0x91   :  { %5028 = vmatpush3.bf16.msra.mxu0 %v5642_v5  ;;  %4507 = vmatprep.mubr.msk.f32.mxu0 %vm5525_vm0, %v5526_v8 }
  0x92   :  { %5032 = vmatprep.subr.bf16.mxu0 %v5524_v4 }
  0xdd   :  { %v260_v40 = vpop.f32.mrb[0].mxu1 }
  0xde   :  { %v4439_v41 = vpop.f32.mrb[1].mxu1  ;;  %v261_v48 = vadd.f32 %v5737_v46, %v260_v40 }
  0xe4   :  { %v330_v43 = vpop.f32.mrb[2].mxu1 }
  0xe5   :  { %v331_v44 = vadd.f32 %v5731_v42, %v330_v43  ;;  %v4446_v45 = vpop.f32.mrb[3].mxu1 }
  0xe7   :  { %v361_v47 = vrot.slane %v331_v44, 2 }
  0xe9   :  { %362 = vrot.lane.b32.xlu1 %v361_v47, %s5528_s28  ;;  %372 = vrot.lane.b32.xlu0 %v361_v47, %s5529_s5 }
  0xed   :  { %342 = vrot.lane.b32.xlu1 %v261_v48, %s5530_s6 }
 0x15b   :  { %v363_v53 = vpop.permute.xlu1 %362  ;;  %v373_v0 = vpop.permute.xlu0 %372 }
 0x15f   :  { %v343_v2 = vpop.permute.xlu1 %342 }
 0x163   :  { %v4432_v50 = vpop.f32.mrb[0].mxu0 }
 0x164   :  { %v5746_v51 = vadd.f32 %v4432_v50, %v4060_v49  ;;  %v163_v52 = vpop.f32.mrb[1].mxu0 }
 0x165   :  { %v5748_v54 = vadd.f32 %v4060_v49, %v163_v52 }
 0x166   :  { %v365_v55 = vadd.f32 %v363_v53, %v5746_v51 }
 0x167   :  { %v334_v56 = vadd.f32 %v261_v48, %v5748_v54 }
 0x168   :  { %v4066_v57 = vmul.f32 -1.442695, %v365_v55 }
 0x169   :  { %v4065_v58 = vmul.f32 -1.442695, %v334_v56 }
 0x16a   :  { %5329 = vpow2.f32 %v4066_v57 }
 0x16b   :  { %5331 = vpow2.f32 %v4065_v58 }
 0x174   :  { %v5330_v59 = vpop.eup %5329 }
 0x175   :  { %v5332_v60 = vpop.eup %5331  ;;  %v369_v61 = vadd.f32 1.0, %v5330_v59 }
 0x176   :  { %v338_v62 = vadd.f32 1.0, %v5332_v60 }
 0x177   :  { %5333 = vrcp.f32 %v369_v61 }
 0x178   :  { %5335 = vrcp.f32 %v338_v62 }
 0x181   :  { %v5334_v63 = vpop.eup %5333 }
 0x182   :  { %v5336_v1 = vpop.eup %5335  ;;  %v375_v3 = vmul.f32 %v5334_v63, %v373_v0  ;;  %v382_v15 = vsub.f32 1.0, %v5334_v63  ;;  %v388_v18 = vmul.f32 0.0, %v5334_v63 }
 0x183   :  { %v345_v6 = vmul.f32 %v5336_v1, %v343_v2  ;;  %v352_v17 = vsub.f32 1.0, %v5336_v1  ;;  %v358_v21 = vmul.f32 0.0, %v5336_v1 }
 0x184   :  { %377 = vrot.lane.b32.xlu0 %v375_v3, %s5531_s4 }
 0x185   :  { %347 = vrot.lane.b32.xlu1 %v345_v6, %s5531_s4 }
 0x1f6   :  { %v378_v7 = vpop.permute.xlu0 %377 }
 0x1f7   :  { %v380_v9 = vadd.f32 %v378_v7, %v5746_v51  ;;  %v348_v10 = vpop.permute.xlu1 %347 }
 0x1f8   :  { %v350_v11 = vadd.f32 %v348_v10, %v5748_v54 }
 0x1f9   :  { %5337 = vtanh.f32 %v380_v9 }
 0x1fa   :  { %5339 = vtanh.f32 %v350_v11 }
 0x203   :  { %v5338_v12 = vpop.eup %5337 }
 0x204   :  { %v5340_v14 = vpop.eup %5339  ;;  %384 = vrot.lane.b32.xlu0 %v5338_v12, %s5532_s1 }
 0x205   :  { %354 = vrot.lane.b32.xlu1 %v5340_v14, %s5532_s1 }
 0x276   :  { %v385_v16 = vpop.permute.xlu0 %384 }
 0x277   :  { %v387_v19 = vmul.f32 %v385_v16, %v382_v15  ;;  %v355_v20 = vpop.permute.xlu1 %354 }
 0x278   :  { %v357_v22 = vmul.f32 %v355_v20, %v352_v17 }
 0x279   :  { %v389_v23 = vadd.f32 %v388_v18, %v387_v19 }
 0x27a   :  { %v5758_v24 = vadd.f32 %v358_v21, %v357_v22 }
 0x27b   :  { %v466_v25 = vrot.slane %v389_v23, 6  ;;  %v599_v53 = vrot.slane %v389_v23, 2 }
 0x27c   :  { %391 = vrot.lane.b32.xlu1 %v5758_v24, %s5532_s1  ;;  %v567_v1 = vrot.slane %v5758_v24, 6 }
 0x27d   :  { %467 = vrot.lane.b32.xlu0 %v466_v25, %s5533_s20 }
 0x2ee   :  { %v392_v26 = vpop.permute.xlu1 %391 }
 0x2ef   :  { %4452 = vmatmul.mubr.msk.f32.vlgmr.msra.gmra.mrb[4].mxu1 %vm190_vm3, %v392_v26  ;;  %v468_v27 = vpop.permute.xlu0 %467 }
 0x2f0   :  { %5007 = vmatpush3.bf16.msra.mxu1 %v5665_v13  ;;  %4458 = vmatprep.mubr.msk.f32.mxu1 %vm5525_vm0, %v5526_v8 }
 0x2f1   :  { %5008 = vmatprep.subr.bf16.mxu1 %v5524_v4 }
 0x2f3   :  { %4459 = vmatmul.mubr.msk.f32.vlgmr.msra.gmra.mrb[6].mxu1 %vm190_vm3, %v468_v27 }
 0x2f4   :  { %5010 = vmatpush3.bf16.msra.mxu1 %v5642_v5  ;;  %4465 = vmatprep.mubr.msk.f32.mxu1 %vm5525_vm0, %v5526_v8 }
 0x2f5   :  { %5011 = vmatprep.subr.bf16.mxu1 %v5524_v4 }
 0x3c2   :  { %v461_v28 = vpop.f32.mrb[4].mxu1 }
 0x3c3   :  { %v462_v29 = vadd.f32 %v5737_v46, %v461_v28  ;;  %v4453_v30 = vpop.f32.mrb[5].mxu1 }
 0x3c5   :  { %v542_v31 = vrot.slane %v462_v29, 6 }
 0x3c6   :  { %v537_v32 = vpop.f32.mrb[6].mxu1 }
 0x3c7   :  { %v538_v33 = vadd.f32 %v5731_v42, %v537_v32  ;;  %551 = vrot.lane.b32.xlu0 %v542_v31, %s5530_s6  ;;  %v4460_v34 = vpop.f32.mrb[7].mxu1  ;;  %v544_v37 = vadd.f32 %v542_v31, %v5748_v54 }
 0x3c9   :  { %v572_v35 = vrot.slane %v538_v33, 4  ;;  %v4069_v39 = vmul.f32 -1.442695, %v544_v37 }
 0x3cb   :  { %573 = vrot.lane.b32.xlu1 %v572_v35, %s5528_s28  ;;  %5341 = vpow2.f32 %v4069_v39 }
 0x3cf   :  { %583 = vrot.lane.b32.xlu1 %v572_v35, %s5529_s5 }
 0x3d5   :  { %v5342_v40 = vpop.eup %5341 }
 0x3d6   :  { %v548_v41 = vadd.f32 1.0, %v5342_v40 }
 0x3d8   :  { %5343 = vrcp.f32 %v548_v41 }
 0x3e2   :  { %v5344_v43 = vpop.eup %5343 }
 0x3e3   :  { %v561_v2 = vsub.f32 1.0, %v5344_v43  ;;  %v569_v6 = vmul.f32 %v5344_v43, %v567_v1 }
 0x439   :  { %v552_v44 = vpop.permute.xlu0 %551 }
 0x43a   :  { %v554_v45 = vmul.f32 %v5344_v43, %v552_v44 }
 0x43c   :  { %556 = vrot.lane.b32.xlu0 %v554_v45, %s5531_s4 }
 0x43d   :  { %v574_v47 = vpop.permute.xlu1 %573 }
 0x43e   :  { %v576_v48 = vadd.f32 %v574_v47, %v5746_v51 }
 0x440   :  { %v4070_v49 = vmul.f32 -1.442695, %v576_v48 }
 0x441   :  { %v584_v56 = vpop.permute.xlu1 %583 }
 0x442   :  { %5345 = vpow2.f32 %v4070_v49 }
 0x44c   :  { %v5346_v50 = vpop.eup %5345 }
 0x44d   :  { %v580_v52 = vadd.f32 1.0, %v5346_v50 }
 0x44f   :  { %5347 = vrcp.f32 %v580_v52 }
 0x459   :  { %v5348_v55 = vpop.eup %5347 }
 0x45a   :  { %v586_v57 = vmul.f32 %v5348_v55, %v584_v56  ;;  %v601_v58 = vmul.f32 %v5348_v55, %v599_v53  ;;  %v593_v11 = vsub.f32 1.0, %v5348_v55 }
 0x45c   :  { %588 = vrot.lane.b32.xlu1 %v586_v57, %s5531_s4 }
 0x4ae   :  { %v557_v59 = vpop.permute.xlu0 %556 }
 0x4af   :  { %v559_v60 = vadd.f32 %v557_v59, %v5748_v54 }
 0x4b1   :  { %5349 = vtanh.f32 %v559_v60 }
 0x4bb   :  { %v5350_v61 = vpop.eup %5349 }
 0x4bc   :  { %563 = vrot.lane.b32.xlu0 %v5350_v61, %s5532_s1 }
 0x4ce   :  { %v589_v62 = vpop.permute.xlu1 %588 }
 0x4cf   :  { %v591_v63 = vadd.f32 %v589_v62, %v5746_v51 }
 0x4d1   :  { %5351 = vtanh.f32 %v591_v63 }
 0x4db   :  { %v5352_v0 = vpop.eup %5351 }
 0x4dc   :  { %595 = vrot.lane.b32.xlu1 %v5352_v0, %s5532_s1 }
 0x52e   :  { %v564_v3 = vpop.permute.xlu0 %563 }
 0x52f   :  { %v566_v7 = vmul.f32 %v564_v3, %v561_v2 }
 0x531   :  { %v5787_v9 = vadd.f32 %v569_v6, %v566_v7 }
 0x533   :  { %v604_v10 = vrot.slane %v5787_v9, 2  ;;  %v781_v56 = vrot.slane %v5787_v9, 6 }
 0x535   :  { %605 = vrot.lane.b32.xlu0 %v604_v10, %s5532_s1 }
 0x54e   :  { %v596_v12 = vpop.permute.xlu1 %595 }
 0x54f   :  { %v598_v14 = vmul.f32 %v596_v12, %v593_v11 }
 0x551   :  { %v602_v15 = vadd.f32 %v601_v58, %v598_v14 }
 0x553   :  { %v680_v16 = vrot.slane %v602_v15, 4  ;;  %v813_v41 = vrot.slane %v602_v15, 2 }
 0x555   :  { %681 = vrot.lane.b32.xlu1 %v680_v16, %s5533_s20 }
 0x5a7   :  { %v606_v17 = vpop.permute.xlu0 %605 }
 0x5a8   :  { %4466 = vmatmul.mubr.msk.f32.vlgmr.msra.gmra.mrb[8].mxu1 %vm190_vm3, %v606_v17 }
 0x5a9   :  { %5013 = vmatpush3.bf16.msra.mxu1 %v5665_v13  ;;  %4472 = vmatprep.mubr.msk.f32.mxu1 %vm5525_vm0, %v5526_v8 }
 0x5aa   :  { %5014 = vmatprep.subr.bf16.mxu1 %v5524_v4 }
 0x5c7   :  { %v682_v18 = vpop.permute.xlu1 %681 }
 0x5c8   :  { %4473 = vmatmul.mubr.msk.f32.vlgmr.msra.gmra.mrb[10].mxu1 %vm190_vm3, %v682_v18 }
 0x5c9   :  { %5016 = vmatpush3.bf16.msra.mxu1 %v5642_v5  ;;  %4479 = vmatprep.mubr.msk.f32.mxu1 %vm5525_vm0, %v5526_v8 }
 0x5ca   :  { %5017 = vmatprep.subr.bf16.mxu1 %v5524_v4 }
 0x67b   :  { %v675_v19 = vpop.f32.mrb[8].mxu1 }
 0x67c   :  { %v676_v20 = vadd.f32 %v5737_v46, %v675_v19  ;;  %v4467_v21 = vpop.f32.mrb[9].mxu1 }
 0x67e   :  { %v756_v22 = vrot.slane %v676_v20, 4 }
 0x680   :  { %765 = vrot.lane.b32.xlu1 %v756_v22, %s5530_s6  ;;  %v758_v27 = vadd.f32 %v756_v22, %v5748_v54 }
 0x682   :  { %v4073_v28 = vmul.f32 -1.442695, %v758_v27 }
 0x684   :  { %5353 = vpow2.f32 %v4073_v28 }
 0x68e   :  { %v5354_v29 = vpop.eup %5353 }
 0x68f   :  { %v762_v30 = vadd.f32 1.0, %v5354_v29 }
 0x691   :  { %5355 = vrcp.f32 %v762_v30 }
 0x69b   :  { %v751_v23 = vpop.f32.mrb[10].mxu1  ;;  %v5356_v31 = vpop.eup %5355 }
 0x69c   :  { %v752_v24 = vadd.f32 %v5731_v42, %v751_v23  ;;  %v4474_v25 = vpop.f32.mrb[11].mxu1  ;;  %v775_v57 = vsub.f32 1.0, %v5356_v31  ;;  %v783_v59 = vmul.f32 %v5356_v31, %v781_v56 }
 0x69e   :  { %v786_v26 = vrot.slane %v752_v24, 6 }
 0x6a0   :  { %787 = vrot.lane.b32.xlu0 %v786_v26, %s5528_s28 }
 0x6a4   :  { %797 = vrot.lane.b32.xlu0 %v786_v26, %s5529_s5 }
 0x6f2   :  { %v766_v32 = vpop.permute.xlu1 %765 }
 0x6f3   :  { %v768_v33 = vmul.f32 %v5356_v31, %v766_v32 }
 0x6f5   :  { %770 = vrot.lane.b32.xlu1 %v768_v33, %s5531_s4 }
 0x712   :  { %v788_v34 = vpop.permute.xlu0 %787 }
 0x713   :  { %v790_v35 = vadd.f32 %v788_v34, %v5746_v51 }
 0x715   :  { %v4074_v37 = vmul.f32 -1.442695, %v790_v35 }
 0x716   :  { %v798_v44 = vpop.permute.xlu0 %797 }
 0x717   :  { %5357 = vpow2.f32 %v4074_v37 }
 0x721   :  { %v5358_v39 = vpop.eup %5357 }
 0x722   :  { %v794_v40 = vadd.f32 1.0, %v5358_v39 }
 0x724   :  { %5359 = vrcp.f32 %v794_v40 }
 0x72e   :  { %v5360_v43 = vpop.eup %5359 }
 0x72f   :  { %v800_v45 = vmul.f32 %v5360_v43, %v798_v44  ;;  %v815_v47 = vmul.f32 %v5360_v43, %v813_v41  ;;  %v807_v63 = vsub.f32 1.0, %v5360_v43 }
 0x731   :  { %802 = vrot.lane.b32.xlu0 %v800_v45, %s5531_s4 }
 0x767   :  { %v771_v48 = vpop.permute.xlu1 %770 }
 0x768   :  { %v773_v49 = vadd.f32 %v771_v48, %v5748_v54 }
 0x76a   :  { %5361 = vtanh.f32 %v773_v49 }
 0x774   :  { %v5362_v50 = vpop.eup %5361 }
 0x775   :  { %777 = vrot.lane.b32.xlu1 %v5362_v50, %s5532_s1 }
 0x7a3   :  { %v803_v52 = vpop.permute.xlu0 %802 }
 0x7a4   :  { %v805_v53 = vadd.f32 %v803_v52, %v5746_v51 }
 0x7a6   :  { %5363 = vtanh.f32 %v805_v53 }
 0x7b0   :  { %v5364_v55 = vpop.eup %5363 }
 0x7b1   :  { %809 = vrot.lane.b32.xlu0 %v5364_v55, %s5532_s1 }
 0x7e7   :  { %v778_v58 = vpop.permute.xlu1 %777 }
 0x7e8   :  { %v780_v60 = vmul.f32 %v778_v58, %v775_v57 }
 0x7ea   :  { %v5816_v61 = vadd.f32 %v783_v59, %v780_v60 }
 0x7ec   :  { %v818_v62 = vrot.slane %v5816_v61, 4  ;;  %v995_v40 = vrot.slane %v5816_v61, 6 }
 0x7ee   :  { %819 = vrot.lane.b32.xlu1 %v818_v62, %s5532_s1 }
 0x823   :  { %v810_v0 = vpop.permute.xlu0 %809 }
 0x824   :  { %v812_v1 = vmul.f32 %v810_v0, %v807_v63 }
 0x826   :  { %v5820_v2 = vadd.f32 %v815_v47, %v812_v1 }
 0x828   :  { %v894_v3 = vrot.slane %v5820_v2, 2 }
 0x82a   :  { %895 = vrot.lane.b32.xlu0 %v894_v3, %s5533_s20 }
 0x860   :  { %v820_v6 = vpop.permute.xlu1 %819 }
 0x861   :  { %4480 = vmatmul.mubr.msk.f32.vlgmr.msra.gmra.mrb[12].mxu1 %vm190_vm3, %v820_v6 }
 0x862   :  { %5019 = vmatpush3.bf16.msra.mxu1 %v5665_v13  ;;  %4486 = vmatprep.mubr.msk.f32.mxu1 %vm5525_vm0, %v5526_v8 }
 0x863   :  { %5020 = vmatprep.subr.bf16.mxu1 %v5524_v4 }
 0x89c   :  { %v896_v7 = vpop.permute.xlu0 %895 }
 0x89d   :  { %4487 = vmatmul.mubr.msk.f32.vlgmr.msra.gmra.mrb[14].mxu1 %vm190_vm3, %v896_v7 }
 0x89e   :  { %5022 = vmatpush3.bf16.msra.mxu1 %v5642_v5  ;;  %4493 = vmatprep.mubr.msk.f32.mxu1 %vm5525_vm0, %v5526_v8 }
 0x89f   :  { %5023 = vmatprep.subr.bf16.mxu1 %v5524_v4 }
 0x934   :  { %v889_v9 = vpop.f32.mrb[12].mxu1 }
 0x935   :  { %v890_v10 = vadd.f32 %v5737_v46, %v889_v9  ;;  %v4481_v11 = vpop.f32.mrb[13].mxu1 }
 0x937   :  { %v970_v12 = vrot.slane %v890_v10, 2 }
 0x939   :  { %979 = vrot.lane.b32.xlu0 %v970_v12, %s5530_s6  ;;  %v972_v17 = vadd.f32 %v970_v12, %v5748_v54 }
 0x93b   :  { %v4077_v18 = vmul.f32 -1.442695, %v972_v17 }
 0x93d   :  { %5365 = vpow2.f32 %v4077_v18 }
 0x947   :  { %v5366_v19 = vpop.eup %5365 }
 0x948   :  { %v976_v20 = vadd.f32 1.0, %v5366_v19 }
 0x94a   :  { %5367 = vrcp.f32 %v976_v20 }
 0x954   :  { %v5368_v21 = vpop.eup %5367 }
 0x955   :  { %v989_v41 = vsub.f32 1.0, %v5368_v21  ;;  %v997_v44 = vmul.f32 %v5368_v21, %v995_v40 }
 0x970   :  { %v965_v14 = vpop.f32.mrb[14].mxu1 }
 0x971   :  { %v966_v15 = vadd.f32 %v5731_v42, %v965_v14  ;;  %v4488_v16 = vpop.f32.mrb[15].mxu1 }
 0x973   :  { %1000 = vrot.lane.b32.xlu1 %v966_v15, %s5528_s28 }
 0x977   :  { %1010 = vrot.lane.b32.xlu1 %v966_v15, %s5529_s5 }
 0x9ab   :  { %v980_v22 = vpop.permute.xlu0 %979 }
 0x9ac   :  { %v982_v23 = vmul.f32 %v5368_v21, %v980_v22 }
 0x9ae   :  { %984 = vrot.lane.b32.xlu0 %v982_v23, %s5531_s4 }
 0x9e5   :  { %v1001_v24 = vpop.permute.xlu1 %1000 }
 0x9e6   :  { %v1003_v25 = vadd.f32 %v1001_v24, %v5746_v51 }
 0x9e8   :  { %v4078_v26 = vmul.f32 -1.442695, %v1003_v25 }
 0x9e9   :  { %v1011_v30 = vpop.permute.xlu1 %1010 }
 0x9ea   :  { %5369 = vpow2.f32 %v4078_v26 }
 0x9f4   :  { %v5370_v27 = vpop.eup %5369 }
 0x9f5   :  { %v1007_v28 = vadd.f32 1.0, %v5370_v27 }
 0x9f7   :  { %5371 = vrcp.f32 %v1007_v28 }
 0xa01   :  { %v5372_v29 = vpop.eup %5371 }
 0xa02   :  { %v1013_v31 = vmul.f32 %v5372_v29, %v1011_v30  ;;  %v1020_v49 = vsub.f32 1.0, %v5372_v29  ;;  %v1027_v52 = vmul.f32 %v5372_v29, %v894_v3 }
 0xa04   :  { %1015 = vrot.lane.b32.xlu1 %v1013_v31, %s5531_s4 }
 0xa20   :  { %v985_v32 = vpop.permute.xlu0 %984 }
 0xa21   :  { %v987_v33 = vadd.f32 %v985_v32, %v5748_v54 }
 0xa23   :  { %5373 = vtanh.f32 %v987_v33 }
 0xa2d   :  { %v5374_v34 = vpop.eup %5373 }
 0xa2e   :  { %991 = vrot.lane.b32.xlu0 %v5374_v34, %s5532_s1 }
 0xa76   :  { %v1016_v35 = vpop.permute.xlu1 %1015 }
 0xa77   :  { %v1018_v37 = vadd.f32 %v1016_v35, %v5746_v51 }
 0xa79   :  { %5375 = vtanh.f32 %v1018_v37 }
 0xa83   :  { %v5376_v39 = vpop.eup %5375 }
 0xa84   :  { %1022 = vrot.lane.b32.xlu1 %v5376_v39, %s5532_s1 }
 0xaa0   :  { %v992_v43 = vpop.permute.xlu0 %991 }
 0xaa1   :  { %v994_v45 = vmul.f32 %v992_v43, %v989_v41 }
 0xaa3   :  { %v5850_v47 = vadd.f32 %v997_v44, %v994_v45 }
 0xaa5   :  { %v1030_v48 = vrot.slane %v5850_v47, 6 }
 0xaa7   :  { %1031 = vrot.lane.b32.xlu0 %v1030_v48, %s5532_s1 }
 0xaf6   :  { %v1023_v50 = vpop.permute.xlu1 %1022 }
 0xaf7   :  { %v1025_v53 = vmul.f32 %v1023_v50, %v1020_v49 }
 0xaf9   :  { %v1028_v55 = vadd.f32 %v1027_v52, %v1025_v53 }
 0xafb   :  { %1106 = vrot.lane.b32.xlu1 %v1028_v55, %s5533_s20  ;;  %v1235_v18 = vrot.slane %v1028_v55, 2 }
 0xb19   :  { %v1032_v56 = vpop.permute.xlu0 %1031 }
 0xb1a   :  { %4494 = vmatmul.mubr.msk.f32.vlgmr.msra.gmra.mrb[16].mxu1 %vm190_vm3, %v1032_v56 }
 0xb1b   :  { %5025 = vmatpush3.bf16.msra.mxu1 %v5665_v13  ;;  %4500 = vmatprep.mubr.msk.f32.mxu1 %vm5525_vm0, %v5526_v8 }
 0xb1c   :  { %5029 = vmatprep.subr.bf16.mxu1 %v5524_v4 }
 0xb6d   :  { %v1107_v57 = vpop.permute.xlu1 %1106 }
 0xb6e   :  { %4501 = vmatmul.mubr.msk.f32.vlgmr.msra.gmra.mrb[18].mxu1 %vm190_vm3, %v1107_v57 }
 0xb6f   :  { %5031 = vmatpush3.bf16.msra.mxu1 %v5665_v13  ;;  %4514 = vmatprep.mubr.msk.f32.mxu1 %vm5525_vm0, %v5526_v8 }
 0xb70   :  { %5035 = vmatprep.subr.bf16.mxu1 %v5524_v4 }
 0xbed   :  { %v1101_v58 = vpop.f32.mrb[16].mxu1 }
 0xbee   :  { %v4495_v59 = vpop.f32.mrb[17].mxu1  ;;  %v1102_v0 = vadd.f32 %v5737_v46, %v1101_v58 }
 0xbf0   :  { %v1180_v1 = vadd.f32 %v1102_v0, %v5746_v51 }
 0xbf2   :  { %v4081_v2 = vmul.f32 -1.442695, %v1180_v1 }
 0xbf4   :  { %5377 = vpow2.f32 %v4081_v2 }
 0xbfe   :  { %v5378_v3 = vpop.eup %5377 }
 0xbff   :  { %v1184_v6 = vadd.f32 1.0, %v5378_v3 }
 0xc01   :  { %5379 = vrcp.f32 %v1184_v6 }
 0xc0b   :  { %v5380_v12 = vpop.eup %5379 }
 0xc0c   :  { %v1198_v32 = vsub.f32 1.0, %v5380_v12  ;;  %v1205_v37 = vmul.f32 %v5380_v12, %v1030_v48 }
 0xc41   :  { %v1176_v60 = vpop.f32.mrb[18].mxu1 }
 0xc42   :  { %v1177_v61 = vadd.f32 %v5731_v42, %v1176_v60  ;;  %v4502_v62 = vpop.f32.mrb[19].mxu1 }
 0xc44   :  { %v1208_v63 = vrot.slane %v1177_v61, 2 }
 0xc46   :  { %1219 = vrot.lane.b32.xlu1 %v1208_v63, %s5529_s5  ;;  %1209 = vrot.lane.b32.xlu0 %v1208_v63, %s5528_s28 }
 0xc4a   :  { %1188 = vrot.lane.b32.xlu1 %v1102_v0, %s5530_s6 }
 0xcb8   :  { %v1220_v7 = vpop.permute.xlu1 %1219  ;;  %v1210_v9 = vpop.permute.xlu0 %1209 }
 0xcb9   :  { %v1212_v10 = vadd.f32 %v1210_v9, %v5748_v54 }
 0xcbb   :  { %v4082_v11 = vmul.f32 -1.442695, %v1212_v10 }
 0xcbc   :  { %v1189_v14 = vpop.permute.xlu1 %1188 }
 0xcbd   :  { %5381 = vpow2.f32 %v4082_v11  ;;  %v1191_v15 = vmul.f32 %v5380_v12, %v1189_v14 }
 0xcbf   :  { %1193 = vrot.lane.b32.xlu1 %v1191_v15, %s5531_s4 }
 0xcc7   :  { %v5382_v16 = vpop.eup %5381 }
 0xcc8   :  { %v1216_v17 = vadd.f32 1.0, %v5382_v16 }
 0xcca   :  { %5383 = vrcp.f32 %v1216_v17 }
 0xcd4   :  { %v5384_v19 = vpop.eup %5383 }
 0xcd5   :  { %v1222_v20 = vmul.f32 %v5384_v19, %v1220_v7  ;;  %v1237_v21 = vmul.f32 %v5384_v19, %v1235_v18  ;;  %v1229_v28 = vsub.f32 1.0, %v5384_v19 }
 0xcd7   :  { %1224 = vrot.lane.b32.xlu0 %v1222_v20, %s5531_s4 }
 0xd31   :  { %v1194_v22 = vpop.permute.xlu1 %1193 }
 0xd32   :  { %v1196_v23 = vadd.f32 %v1194_v22, %v5746_v51 }
 0xd34   :  { %5385 = vtanh.f32 %v1196_v23 }
 0xd3e   :  { %v5386_v24 = vpop.eup %5385 }
 0xd3f   :  { %1200 = vrot.lane.b32.xlu1 %v5386_v24, %s5532_s1 }
 0xd49   :  { %v1225_v25 = vpop.permute.xlu0 %1224 }
 0xd4a   :  { %v1227_v26 = vadd.f32 %v1225_v25, %v5748_v54 }
 0xd4c   :  { %5387 = vtanh.f32 %v1227_v26 }
 0xd56   :  { %v5388_v27 = vpop.eup %5387 }
 0xd57   :  { %1231 = vrot.lane.b32.xlu0 %v5388_v27, %s5532_s1 }
 0xdb1   :  { %v1201_v31 = vpop.permute.xlu1 %1200 }
 0xdb2   :  { %v1203_v34 = vmul.f32 %v1201_v31, %v1198_v32 }
 0xdb4   :  { %v1206_v39 = vadd.f32 %v1205_v37, %v1203_v34 }
 0xdb6   :  { %v1416_v17 = vrot.slane %v1206_v39, 6 }
 0xdc9   :  { %v1232_v29 = vpop.permute.xlu0 %1231 }
 0xdca   :  { %v1234_v30 = vmul.f32 %v1232_v29, %v1229_v28 }
 0xdcc   :  { %v1238_v33 = vadd.f32 %v1237_v21, %v1234_v30 }
 0xdce   :  { %v1315_v35 = vrot.slane %v1238_v33, 6  ;;  %v1448_v2 = vrot.slane %v1238_v33, 2 }
 0xdd0   :  { %1316 = vrot.lane.b32.xlu0 %v1315_v35, %s5533_s20 }
 0xdd4   :  { %1240 = vrot.lane.b32.xlu0 %v1206_v39, %s5532_s1 }
 0xe42   :  { %v1317_v40 = vpop.permute.xlu0 %1316 }
 0xe43   :  { %4515 = vmatmul.mubr.msk.f32.vlgmr.msra.gmra.mrb[20].mxu1 %vm190_vm3, %v1317_v40 }
 0xe44   :  { %5037 = vmatpush3.bf16.msra.mxu1 %v5665_v13  ;;  %4528 = vmatprep.mubr.msk.f32.mxu1 %vm5525_vm0, %v5526_v8 }
 0xe45   :  { %5041 = vmatprep.subr.bf16.mxu1 %v5524_v4 }
 0xe46   :  { %v1241_v41 = vpop.permute.xlu0 %1240 }
 0xe47   :  { %4508 = vmatmul.mubr.msk.f32.vlgmr.msra.gmra.mrb[2].mxu0 %vm190_vm3, %v1241_v41 }
 0xe48   :  { %5034 = vmatpush3.bf16.msra.mxu0 %v5642_v5  ;;  %4521 = vmatprep.mubr.msk.f32.mxu0 %vm5525_vm0, %v5526_v8 }
 0xe49   :  { %5038 = vmatprep.subr.bf16.mxu0 %v5524_v4 }
 0xf16   :  { %v1386_v43 = vpop.f32.mrb[20].mxu1 }
 0xf17   :  { %v1387_v44 = vadd.f32 %v5731_v42, %v1386_v43  ;;  %v4516_v45 = vpop.f32.mrb[21].mxu1 }
 0xf19   :  { %v1421_v47 = vrot.slane %v1387_v44, 4 }
 0xf1a   :  { %v1310_v48 = vpop.f32.mrb[2].mxu0 }
 0xf1b   :  { %v1311_v49 = vadd.f32 %v5737_v46, %v1310_v48  ;;  %v4509_v50 = vpop.f32.mrb[3].mxu0  ;;  %1432 = vrot.lane.b32.xlu0 %v1421_v47, %s5529_s5  ;;  %1422 = vrot.lane.b32.xlu1 %v1421_v47, %s5528_s28 }
 0xf1d   :  { %v1391_v52 = vrot.slane %v1311_v49, 6 }
 0xf1f   :  { %1400 = vrot.lane.b32.xlu1 %v1391_v52, %s5530_s6  ;;  %v1393_v53 = vadd.f32 %v1391_v52, %v5746_v51 }
 0xf21   :  { %v4085_v55 = vmul.f32 -1.442695, %v1393_v53 }
 0xf23   :  { %5389 = vpow2.f32 %v4085_v55 }
 0xf2d   :  { %v5390_v56 = vpop.eup %5389 }
 0xf2e   :  { %v1397_v57 = vadd.f32 1.0, %v5390_v56 }
 0xf30   :  { %5391 = vrcp.f32 %v1397_v57 }
 0xf3a   :  { %v5392_v61 = vpop.eup %5391 }
 0xf3b   :  { %v1410_v18 = vsub.f32 1.0, %v5392_v61  ;;  %v1418_v20 = vmul.f32 %v5392_v61, %v1416_v17 }
 0xf8d   :  { %v1423_v58 = vpop.permute.xlu1 %1422  ;;  %v1433_v6 = vpop.permute.xlu0 %1432 }
 0xf8e   :  { %v1425_v59 = vadd.f32 %v1423_v58, %v5748_v54 }
 0xf90   :  { %v4086_v60 = vmul.f32 -1.442695, %v1425_v59 }
 0xf91   :  { %v1401_v62 = vpop.permute.xlu1 %1400 }
 0xf92   :  { %5393 = vpow2.f32 %v4086_v60  ;;  %v1403_v63 = vmul.f32 %v5392_v61, %v1401_v62 }
 0xf94   :  { %1405 = vrot.lane.b32.xlu1 %v1403_v63, %s5531_s4 }
 0xf9c   :  { %v5394_v0 = vpop.eup %5393 }
 0xf9d   :  { %v1429_v1 = vadd.f32 1.0, %v5394_v0 }
 0xf9f   :  { %5395 = vrcp.f32 %v1429_v1 }
 0xfa9   :  { %v5396_v3 = vpop.eup %5395 }
 0xfaa   :  { %v1435_v7 = vmul.f32 %v5396_v3, %v1433_v6  ;;  %v1450_v9 = vmul.f32 %v5396_v3, %v1448_v2  ;;  %v1442_v24 = vsub.f32 1.0, %v5396_v3 }
 0xfac   :  { %1437 = vrot.lane.b32.xlu0 %v1435_v7, %s5531_s4 }
0x1006   :  { %v1406_v10 = vpop.permute.xlu1 %1405 }
0x1007   :  { %v1408_v11 = vadd.f32 %v1406_v10, %v5746_v51 }
0x1009   :  { %5397 = vtanh.f32 %v1408_v11 }
0x1013   :  { %v5398_v12 = vpop.eup %5397 }
0x1014   :  { %1412 = vrot.lane.b32.xlu1 %v5398_v12, %s5532_s1 }
0x101e   :  { %v1438_v14 = vpop.permute.xlu0 %1437 }
0x101f   :  { %v1440_v15 = vadd.f32 %v1438_v14, %v5748_v54 }
0x1021   :  { %5399 = vtanh.f32 %v1440_v15 }
0x102b   :  { %v5400_v16 = vpop.eup %5399 }
0x102c   :  { %1444 = vrot.lane.b32.xlu0 %v5400_v16, %s5532_s1 }
0x1086   :  { %v1413_v19 = vpop.permute.xlu1 %1412 }
0x1087   :  { %v1415_v21 = vmul.f32 %v1413_v19, %v1410_v18 }
0x1089   :  { %v5909_v22 = vadd.f32 %v1418_v20, %v1415_v21 }
0x108b   :  { %v1453_v23 = vrot.slane %v5909_v22, 2  ;;  %v1630_v2 = vrot.slane %v5909_v22, 6 }
0x108d   :  { %1454 = vrot.lane.b32.xlu1 %v1453_v23, %s5532_s1 }
0x109e   :  { %v1445_v25 = vpop.permute.xlu0 %1444 }
0x109f   :  { %v1447_v26 = vmul.f32 %v1445_v25, %v1442_v24 }
0x10a1   :  { %v1451_v27 = vadd.f32 %v1450_v9, %v1447_v26 }
0x10a3   :  { %v1529_v28 = vrot.slane %v1451_v27, 4  ;;  %v1662_v55 = vrot.slane %v1451_v27, 2 }
0x10a5   :  { %1530 = vrot.lane.b32.xlu0 %v1529_v28, %s5533_s20 }
0x10ff   :  { %v1455_v29 = vpop.permute.xlu1 %1454 }
0x1100   :  { %4522 = vmatmul.mubr.msk.f32.vlgmr.msra.gmra.mrb[4].mxu0 %vm190_vm3, %v1455_v29 }
0x1101   :  { %5040 = vmatpush3.bf16.msra.mxu0 %v5642_v5  ;;  %4535 = vmatprep.mubr.msk.f32.mxu0 %vm5525_vm0, %v5526_v8 }
0x1102   :  { %5044 = vmatprep.subr.bf16.mxu0 %v5524_v4 }
0x1117   :  { %v1531_v30 = vpop.permute.xlu0 %1530 }
0x1118   :  { %4529 = vmatmul.mubr.msk.f32.vlgmr.msra.gmra.mrb[22].mxu1 %vm190_vm3, %v1531_v30 }
0x1119   :  { %5043 = vmatpush3.bf16.msra.mxu1 %v5665_v13  ;;  %4542 = vmatprep.mubr.msk.f32.mxu1 %vm5525_vm0, %v5526_v8 }
0x111a   :  { %5050 = vmatprep.subr.bf16.mxu1 %v5524_v4 }
0x11d3   :  { %v1524_v31 = vpop.f32.mrb[4].mxu0 }
0x11d4   :  { %v4523_v32 = vpop.f32.mrb[5].mxu0  ;;  %v1525_v35 = vadd.f32 %v5737_v46, %v1524_v31 }
0x11d6   :  { %v1605_v39 = vrot.slane %v1525_v35, 4 }
0x11d8   :  { %v1607_v13 = vadd.f32 %v1605_v39, %v5746_v51 }
0x11da   :  { %v4089_v40 = vmul.f32 -1.442695, %v1607_v13 }
0x11dc   :  { %5401 = vpow2.f32 %v4089_v40 }
0x11e6   :  { %v5402_v41 = vpop.eup %5401 }
0x11e7   :  { %v1611_v43 = vadd.f32 1.0, %v5402_v41 }
0x11e9   :  { %5403 = vrcp.f32 %v1611_v43 }
0x11eb   :  { %v1600_v33 = vpop.f32.mrb[22].mxu1 }
0x11ec   :  { %v1601_v5 = vadd.f32 %v5731_v42, %v1600_v33  ;;  %v4530_v34 = vpop.f32.mrb[23].mxu1 }
0x11ee   :  { %v1635_v37 = vrot.slane %v1601_v5, 6 }
0x11f0   :  { %1646 = vrot.lane.b32.xlu1 %v1635_v37, %s5529_s5  ;;  %1636 = vrot.lane.b32.xlu0 %v1635_v37, %s5528_s28 }
0x11f3   :  { %v5404_v48 = vpop.eup %5403 }
0x11f4   :  { %1614 = vrot.lane.b32.xlu0 %v1605_v39, %s5530_s6  ;;  %v1624_v3 = vsub.f32 1.0, %v5404_v48  ;;  %v1632_v7 = vmul.f32 %v5404_v48, %v1630_v2 }
0x1262   :  { %v1637_v44 = vpop.permute.xlu0 %1636  ;;  %v1647_v57 = vpop.permute.xlu1 %1646 }
0x1263   :  { %v1639_v45 = vadd.f32 %v1637_v44, %v5748_v54 }
0x1265   :  { %v4090_v47 = vmul.f32 -1.442695, %v1639_v45 }
0x1266   :  { %v1615_v49 = vpop.permute.xlu0 %1614 }
0x1267   :  { %5405 = vpow2.f32 %v4090_v47  ;;  %v1617_v50 = vmul.f32 %v5404_v48, %v1615_v49  ;;  %v1888_v48 = vld [vmem:[%s6496_s7] sm:$0xff]  ;;  %v1889_v49 = vld [vmem:[%s6496_s7 + $0x8] sm:$0xff] }
0x1269   :  { %1619 = vrot.lane.b32.xlu0 %v1617_v50, %s5531_s4 }
0x1271   :  { %v5406_v52 = vpop.eup %5405 }
0x1272   :  { %v1643_v53 = vadd.f32 1.0, %v5406_v52 }
0x1274   :  { %5407 = vrcp.f32 %v1643_v53 }
0x127e   :  { %v5408_v56 = vpop.eup %5407 }
0x127f   :  { %v1649_v58 = vmul.f32 %v5408_v56, %v1647_v57  ;;  %v1664_v59 = vmul.f32 %v5408_v56, %v1662_v55  ;;  %v1656_v12 = vsub.f32 1.0, %v5408_v56  ;;  %v1890_v57 = vld [vmem:[%s6496_s7 + $0x10] sm:$0xff] }
0x1281   :  { %1651 = vrot.lane.b32.xlu1 %v1649_v58, %s5531_s4  ;;  %v1891_v58 = vld [vmem:[%s6496_s7 + $0x18] sm:$0xff] }
0x12db   :  { %v1620_v60 = vpop.permute.xlu0 %1619 }
0x12dc   :  { %v1622_v61 = vadd.f32 %v1620_v60, %v5746_v51 }
0x12de   :  { %5409 = vtanh.f32 %v1622_v61 }
0x12e8   :  { %v5410_v62 = vpop.eup %5409 }
0x12e9   :  { %1626 = vrot.lane.b32.xlu0 %v5410_v62, %s5532_s1 }
0x12f3   :  { %v1652_v63 = vpop.permute.xlu1 %1651 }
0x12f4   :  { %v1654_v0 = vadd.f32 %v1652_v63, %v5748_v54 }
0x12f6   :  { %5411 = vtanh.f32 %v1654_v0 }
0x1300   :  { %v5412_v1 = vpop.eup %5411 }
0x1301   :  { %1658 = vrot.lane.b32.xlu1 %v5412_v1, %s5532_s1 }
0x135b   :  { %v1627_v6 = vpop.permute.xlu0 %1626 }
0x135c   :  { %v1629_v9 = vmul.f32 %v1627_v6, %v1624_v3 }
0x135e   :  { %v5938_v10 = vadd.f32 %v1632_v7, %v1629_v9  ;;  %v2015_v9 = vld [vmem:[%s6499_s10] sm:$0xff] }
0x1360   :  { %v1667_v11 = vrot.slane %v5938_v10, 4  ;;  %v1844_v50 = vrot.slane %v5938_v10, 6  ;;  %v2016_v10 = vld [vmem:[%s6499_s10 + $0x8] sm:$0xff] }
0x1362   :  { %1668 = vrot.lane.b32.xlu0 %v1667_v11, %s5532_s1  ;;  %v2017_v11 = vld [vmem:[%s6499_s10 + $0x10] sm:$0xff] }
0x1373   :  { %v1659_v14 = vpop.permute.xlu1 %1658 }
0x1374   :  { %v1661_v15 = vmul.f32 %v1659_v14, %v1656_v12  ;;  %v5998_v12 = vpack.c.bf16 %v2016_v10, %v2015_v9  ;;  %v2018_v14 = vld [vmem:[%s6499_s10 + $0x18] sm:$0xff] }
0x1375   :  { %v2038_v9 = vld [vmem:[%s6502_s13 + $0x18] sm:$0xff] }
0x1376   :  { %v5942_v16 = vadd.f32 %v1664_v59, %v1661_v15  ;;  %v5048_v59 = vpack.c.bf16 %v1891_v58, %v1890_v57  ;;  %v6004_v15 = vpack.c.bf16 %v2018_v14, %v2017_v11 }
0x1378   :  { %v1743_v17 = vrot.slane %v5942_v16, 2  ;;  %v2019_v16 = vld [vmem:[%s6499_s10 + $0x20] sm:$0xff] }
0x137a   :  { %1744 = vrot.lane.b32.xlu1 %v1743_v17, %s5533_s20 }
0x13d4   :  { %v1669_v18 = vpop.permute.xlu0 %1668 }
0x13d5   :  { %4536 = vmatmul.mubr.msk.f32.vlgmr.msra.gmra.mrb[6].mxu0 %vm190_vm3, %v1669_v18  ;;  %v2031_v18 = vld [vmem:[%s6500_s11] sm:$0xff] }
0x13d6   :  { %4553 = vmatprep.mubr.msk.f32.mxu0 %vm5525_vm0, %v5526_v8 }
0x13ec   :  { %v1745_v19 = vpop.permute.xlu1 %1744 }
0x13ed   :  { %4543 = vmatmul.mubr.msk.f32.vlgmr.msra.gmra.mrb[24].mxu1 %vm190_vm3, %v1745_v19  ;;  %v2032_v19 = vld [vmem:[%s6500_s11 + $0x8] sm:$0xff] }
0x13ee   :  { %4588 = vmatprep.mubr.msk.f32.mxu1 %vm5525_vm0, %v5526_v8  ;;  %5052 = vmatpush3.bf16.msra.mxu1 %v5998_v12 }
0x13ef   :  { %5053 = vmatprep.subr.bf16.mxu1 %v5524_v4 }
0x13f2   :  { %5055 = vmatpush3.bf16.msra.mxu1 %v6004_v15 }
0x13f3   :  { %5056 = vmatprep.subr.bf16.mxu1 %v5524_v4 }
0x14a8   :  { %v1738_v20 = vpop.f32.mrb[6].mxu0 }
0x14a9   :  { %v4537_v21 = vpop.f32.mrb[7].mxu0  ;;  %v1739_v23 = vadd.f32 %v5737_v46, %v1738_v20  ;;  %v6019_v20 = vpack.c.bf16 %v2032_v19, %v2031_v18 }
0x14ab   :  { %v1819_v26 = vrot.slane %v1739_v23, 2  ;;  %v2022_v23 = vld [vmem:[%s6499_s10 + $0x38] sm:$0xff] }
0x14ad   :  { %v1821_v27 = vadd.f32 %v1819_v26, %v5746_v51 }
0x14af   :  { %v4093_v28 = vmul.f32 -1.442695, %v1821_v27 }
0x14b1   :  { %5413 = vpow2.f32 %v4093_v28  ;;  %v2025_v28 = vld [vmem:[%s6499_s10 + $0x50] sm:$0xff] }
0x14bb   :  { %v5414_v29 = vpop.eup %5413 }
0x14bc   :  { %v1825_v30 = vadd.f32 1.0, %v5414_v29  ;;  %v2026_v29 = vld [vmem:[%s6499_s10 + $0x58] sm:$0xff] }
0x14be   :  { %5415 = vrcp.f32 %v1825_v30  ;;  %v6054_v30 = vpack.c.bf16 %v2026_v29, %v2025_v28  ;;  %v2041_v28 = vld [vmem:[%s6503_s14 + $0x10] sm:$0xff] }
0x14c0   :  { %v1814_v22 = vpop.f32.mrb[24].mxu1 }
0x14c1   :  { %v1815_v24 = vadd.f32 %v5731_v42, %v1814_v22  ;;  %v4544_v25 = vpop.f32.mrb[25].mxu1  ;;  %v2021_v22 = vld [vmem:[%s6499_s10 + $0x30] sm:$0xff] }
0x14c2   :  { %v2023_v25 = vld [vmem:[%s6499_s10 + $0x40] sm:$0xff] }
0x14c3   :  { %1859 = vrot.lane.b32.xlu0 %v1815_v24, %s5529_s5  ;;  %1849 = vrot.lane.b32.xlu1 %v1815_v24, %s5528_s28  ;;  %v6034_v24 = vpack.c.bf16 %v2022_v23, %v2021_v22 }
0x14c7   :  { %1828 = vrot.lane.b32.xlu1 %v1819_v26, %s5530_s6  ;;  %v2024_v26 = vld [vmem:[%s6499_s10 + $0x48] sm:$0xff] }
0x14c8   :  { %v5416_v42 = vpop.eup %5415  ;;  %v6044_v27 = vpack.c.bf16 %v2024_v26, %v2023_v25  ;;  %v2039_v25 = vld [vmem:[%s6503_s14] sm:$0xff]  ;;  %v2040_v26 = vld [vmem:[%s6503_s14 + $0x8] sm:$0xff] }
0x14c9   :  { %v1838_v52 = vsub.f32 1.0, %v5416_v42  ;;  %v1846_v53 = vmul.f32 %v5416_v42, %v1844_v50  ;;  %v6167_v29 = vpack.c.bf16 %v2040_v26, %v2039_v25 }
0x1535   :  { %v1850_v31 = vpop.permute.xlu1 %1849  ;;  %v1860_v39 = vpop.permute.xlu0 %1859 }
0x1536   :  { %v1852_v46 = vadd.f32 %v1850_v31, %v5748_v54  ;;  %v2027_v31 = vld [vmem:[%s6499_s10 + $0x60] sm:$0xff] }
0x1538   :  { %v4094_v32 = vmul.f32 -1.442695, %v1852_v46  ;;  %v2028_v46 = vld [vmem:[%s6499_s10 + $0x68] sm:$0xff] }
0x1539   :  { %v1829_v33 = vpop.permute.xlu1 %1828 }
0x153a   :  { %5417 = vpow2.f32 %v4094_v32  ;;  %v1831_v5 = vmul.f32 %v5416_v42, %v1829_v33  ;;  %v6064_v32 = vpack.c.bf16 %v2028_v46, %v2027_v31  ;;  %v4095_v42 = vld [vmem:[%s6497_s8] ss:$0 sm:$0xff]  ;;  %v2042_v31 = vld [vmem:[%s6503_s14 + $0x18] sm:$0xff] }
0x153b   :  { %v6173_v46 = vpack.c.bf16 %v2042_v31, %v2041_v28 }
0x153c   :  { %1833 = vrot.lane.b32.xlu1 %v1831_v5, %s5531_s4 }
0x1544   :  { %v5418_v34 = vpop.eup %5417 }
0x1545   :  { %v1856_v35 = vadd.f32 1.0, %v5418_v34 }
0x1547   :  { %5419 = vrcp.f32 %v1856_v35 }
0x1551   :  { %v5420_v37 = vpop.eup %5419 }
0x1552   :  { %v1862_v13 = vmul.f32 %v5420_v37, %v1860_v39  ;;  %v1869_v60 = vsub.f32 1.0, %v5420_v37  ;;  %v1876_v62 = vmul.f32 %v5420_v37, %v1743_v17  ;;  %v2020_v17 = vld [vmem:[%s6499_s10 + $0x28] sm:$0xff]  ;;  %v2033_v37 = vld [vmem:[%s6500_s11 + $0x10] sm:$0xff]  ;;  %v2034_v39 = vld [vmem:[%s6500_s11 + $0x18] sm:$0xff] }
0x1553   :  { %v6022_v21 = vpack.c.bf16 %v2020_v17, %v2019_v16 }
0x1554   :  { %1864 = vrot.lane.b32.xlu0 %v1862_v13, %s5531_s4  ;;  %v6081_v13 = vpack.c.bf16 %v2034_v39, %v2033_v37  ;;  %v6200_v39 = vld [vmem:[%s6504_s15] ss:$0 sm:$0xff] }
0x1555   :  { %5058 = vmatpush3.bf16.msra.mxu1 %v6022_v21 }
0x1556   :  { %5059 = vmatprep.subr.bf16.mxu1 %v5524_v4 }
0x1559   :  { %5061 = vmatpush3.bf16.msra.mxu1 %v6034_v24 }
0x155a   :  { %5062 = vmatprep.subr.bf16.mxu1 %v5524_v4 }
0x155d   :  { %5064 = vmatpush3.bf16.msra.mxu1 %v6044_v27 }
0x155e   :  { %5065 = vmatprep.subr.bf16.mxu1 %v5524_v4 }
0x1561   :  { %5067 = vmatpush3.bf16.msra.mxu1 %v6054_v30 }
0x1562   :  { %5068 = vmatprep.subr.bf16.mxu1 %v5524_v4 }
0x1565   :  { %5070 = vmatpush3.bf16.msra.mxu1 %v6064_v32 }
0x1566   :  { %5071 = vmatprep.subr.bf16.mxu1 %v5524_v4 }
0x15ae   :  { %v1834_v40 = vpop.permute.xlu1 %1833 }
0x15af   :  { %v1836_v41 = vadd.f32 %v1834_v40, %v5746_v51  ;;  %v5045_v51 = vpack.c.bf16 %v1889_v49, %v1888_v48 }
0x15b1   :  { %5421 = vtanh.f32 %v1836_v41  ;;  %5046 = vmatpush3.bf16.msra.mxu0 %v5045_v51  ;;  %v2029_v41 = vld [vmem:[%s6499_s10 + $0x70] sm:$0xff] }
0x15b2   :  { %5047 = vmatprep.subr.bf16.mxu0 %v5524_v4 }
0x15b5   :  { %5049 = vmatpush3.bf16.msra.mxu0 %v5048_v59 }
0x15b6   :  { %5074 = vmatprep.subr.bf16.mxu0 %v5524_v4 }
0x15bb   :  { %v5422_v43 = vpop.eup %5421 }
0x15bc   :  { %1840 = vrot.lane.b32.xlu1 %v5422_v43, %s5532_s1  ;;  %v2030_v43 = vld [vmem:[%s6499_s10 + $0x78] sm:$0xff] }
0x15c6   :  { %v1865_v44 = vpop.permute.xlu0 %1864 }
0x15c7   :  { %v1867_v45 = vadd.f32 %v1865_v44, %v5748_v54  ;;  %v6090_v44 = vpack.c.bf16 %v2030_v43, %v2029_v41 }
0x15c9   :  { %5423 = vtanh.f32 %v1867_v45  ;;  %5073 = vmatpush3.bf16.msra.mxu1 %v6090_v44 }
0x15ca   :  { %5116 = vmatprep.subr.bf16.mxu1 %v5524_v4 }
0x15cc   :  { %4589 = vmatmul.mubr.msk.f32.vlgmr.msra.gmra.mrb[26].mxu1 %vm2058_vm5, %v5527_v38 }
0x15cd   :  { %5118 = vmatpush3.bf16.msra.mxu1 %v6019_v20  ;;  %4667 = vmatprep.mubr.msk.f32.mxu1 %vm5525_vm0, %v5526_v8 }
0x15ce   :  { %5119 = vmatprep.subr.bf16.mxu1 %v5524_v4 }
0x15d1   :  { %5121 = vmatpush3.bf16.msra.mxu1 %v6081_v13 }
0x15d2   :  { %5122 = vmatprep.subr.bf16.mxu1 %v5524_v4 }
0x15d3   :  { %v5424_v47 = vpop.eup %5423 }
0x15d4   :  { %1871 = vrot.lane.b32.xlu0 %v5424_v47, %s5532_s1  ;;  %v1977_v47 = vld [vmem:[%s6498_s9] sm:$0x3] }
0x162e   :  { %v1841_v54 = vpop.permute.xlu1 %1840 }
0x162f   :  { %v1843_v55 = vmul.f32 %v1841_v54, %v1838_v52  ;;  %v6117_v54 = vld [vmem:[%s6501_s12] ss:$0 sm:$0xff] }
0x1631   :  { %v1847_v56 = vadd.f32 %v1846_v53, %v1843_v55 }
0x1633   :  { %1879 = vrot.lane.b32.xlu0 %v1847_v56, %s5532_s1 }
0x1646   :  { %v1872_v61 = vpop.permute.xlu0 %1871 }
0x1647   :  { %v1874_v63 = vmul.f32 %v1872_v61, %v1869_v60 }
0x1649   :  { %v1877_v0 = vadd.f32 %v1876_v62, %v1874_v63 }
0x164b   :  { %v1883_v1 = vrot.slane %v1877_v0, 2 }
0x164d   :  { %1884 = vrot.lane.b32.xlu1 %v1883_v1, %s5534_s26 }
0x169f   :  { %v2127_v50 = vpop.f32.mrb[26].mxu1 }
0x16a0   :  { %v4590_v52 = vpop.f32.mrb[27].mxu1 }
0x16a5   :  { %v1880_v2 = vpop.permute.xlu0 %1879 }
0x16bf   :  { %v1885_v3 = vpop.permute.xlu1 %1884 }
0x16c0   :  { %v1887_v6 = vsel %vm190_vm3, %v1880_v2, %v1885_v3  ;;  %v2035_v2 = vld [vmem:[%s6502_s13] sm:$0xff]  ;;  %v2036_v3 = vld [vmem:[%s6502_s13 + $0x8] sm:$0xff] }
0x16c1   :  { %v1900_v7 = vrot.slane %v1887_v6, 6  ;;  %v2037_v6 = vld [vmem:[%s6502_s13 + $0x10] sm:$0xff] }
0x16c2   :  { %v6138_v10 = vpack.c.bf16 %v2038_v9, %v2037_v6 }
0x16c3   :  { %4554 = vmatmul.mubr.msk.f32.vlgmr.msra.gmra.mrb[8].mxu0 %vm1901_vm4, %v1900_v7  ;;  %v6132_v7 = vpack.c.bf16 %v2036_v3, %v2035_v2 }
0x16c4   :  { %4599 = vmatprep.mubr.msk.f32.mxu0 %vm5525_vm0, %v5526_v8  ;;  %5076 = vmatpush3.bf16.msra.mxu0 %v6019_v20 }
0x16c5   :  { %5077 = vmatprep.subr.bf16.mxu0 %v5524_v4 }
0x16c8   :  { %5079 = vmatpush3.bf16.msra.mxu0 %v6081_v13 }
0x16c9   :  { %5080 = vmatprep.subr.bf16.mxu0 %v5524_v4 }
0x1796   :  { %v1970_v33 = vpop.f32.mrb[8].mxu0 }
0x1797   :  { %v6072_v5 = vadd.f32 %v4095_v42, %v1970_v33  ;;  %v4555_v34 = vpop.f32.mrb[9].mxu0 }
0x1799   :  { %v1974_v35 = vmul.f32 0.5, %v6072_v5 }
0x179b   :  { %v1975_v40 = vmul.f32 1.442695, %v1974_v35 }
0x179d   :  { %5425 = vpow2.f32 %v1975_v40 }
0x17a7   :  { %v6102_v45 = vpop.eup %5425 }
0x17a8   :  { %1979 = vrot.lane.b32.xlu0 %v6102_v45, %s5530_s6 }
0x181a   :  { %v1980_v48 = vpop.permute.xlu0 %1979 }
0x181b   :  { %v1982_v49 = vmul.f32 %v1980_v48, %v1977_v47 }
0x181d   :  { %v1983_v51 = vadd.f32 %v1982_v49, %v6072_v5  ;;  %v6210_v49 = vcvt.s32.f32 %v5718_v36 }
0x181f   :  { %4600 = vmatmul.mubr.msk.f32.vlgmr.msra.gmra.mrb[10].mxu0 %vm1901_vm4, %v1983_v51 }
0x1820   :  { %4610 = vmatprep.mubr.msk.f32.mxu0 %vm5525_vm0, %v5526_v8  ;;  %5082 = vmatpush3.bf16.msra.mxu0 %v6132_v7 }
0x1821   :  { %5083 = vmatprep.subr.bf16.mxu0 %v5524_v4 }
0x1824   :  { %5085 = vmatpush3.bf16.msra.mxu0 %v6138_v10 }
0x1825   :  { %5086 = vmatprep.subr.bf16.mxu0 %v5524_v4 }
0x18f2   :  { %v2200_v53 = vpop.f32.mrb[10].mxu0 }
0x18f3   :  { %v2201_v55 = vadd.f32 %v6117_v54, %v2200_v53  ;;  %v4601_v56 = vpop.f32.mrb[11].mxu0 }
0x18f5   :  { %v2204_v57 = vadd.f32 %v2201_v55, %v2127_v50  ;;  %2212 = vrot.lane.b32.xlu1 %v2201_v55, %s5533_s20 }
0x18f7   :  { %v4102_v58 = vmul.f32 -1.442695, %v2204_v57 }
0x18f9   :  { %5427 = vpow2.f32 %v4102_v58 }
0x1903   :  { %v5428_v59 = vpop.eup %5427 }
0x1904   :  { %v2208_v60 = vadd.f32 1.0, %v5428_v59 }
0x1906   :  { %5429 = vrcp.f32 %v2208_v60 }
0x1910   :  { %v5430_v61 = vpop.eup %5429 }
0x1911   :  { %v2222_v16 = vsub.f32 1.0, %v5430_v61 }
0x1967   :  { %v2213_v62 = vpop.permute.xlu1 %2212 }
0x1968   :  { %v2215_v63 = vmul.f32 %v5430_v61, %v2213_v62 }
0x196a   :  { %2217 = vrot.lane.b32.xlu0 %v2215_v63, %s5533_s20 }
0x196e   :  { %2228 = vrot.lane.b32.xlu0 %v1983_v51, %s5531_s4 }
0x19dc   :  { %v2218_v0 = vpop.permute.xlu0 %2217 }
0x19dd   :  { %v2220_v1 = vadd.f32 %v2218_v0, %v2127_v50 }
0x19df   :  { %5431 = vtanh.f32 %v2220_v1 }
0x19e0   :  { %v2229_v14 = vpop.permute.xlu0 %2228 }
0x19e1   :  { %v2231_v18 = vmul.f32 %v5430_v61, %v2229_v14 }
0x19e9   :  { %v5432_v11 = vpop.eup %5431 }
0x19ea   :  { %2224 = vrot.lane.b32.xlu1 %v5432_v11, %s5530_s6 }
0x1a5c   :  { %v2225_v17 = vpop.permute.xlu1 %2224 }
0x1a5d   :  { %v2227_v19 = vmul.f32 %v2225_v17, %v2222_v16 }
0x1a5f   :  { %v6144_v22 = vadd.f32 %v2231_v18, %v2227_v19 }
0x1a61   :  { %2234 = vrot.lane.b32.xlu1 %v6144_v22, %s5530_s6 }
0x1ad3   :  { %v2235_v23 = vpop.permute.xlu1 %2234 }
0x1ad4   :  { %4611 = vmatmul.mubr.msk.f32.vlgmr.msra.gmra.mrb[12].mxu0 %vm1901_vm4, %v2235_v23  ;;  %4668 = vmatmul.mubr.msk.f32.vlgmr.msra.gmra.mrb[28].mxu1 %vm1901_vm4, %v2235_v23 }
0x1ad5   :  { %4621 = vmatprep.mubr.msk.f32.mxu0 %vm5525_vm0, %v5526_v8  ;;  %5124 = vmatpush3.bf16.msra.mxu1 %v6132_v7 }
0x1ad6   :  { %5125 = vmatprep.subr.bf16.mxu1 %v5524_v4  ;;  %4678 = vmatprep.mubr.msk.f32.mxu1 %vm5525_vm0, %v5526_v8 }
0x1ad7   :  { %5088 = vmatpush3.bf16.msra.mxu0 %v6167_v29 }
0x1ad8   :  { %5089 = vmatprep.subr.bf16.mxu0 %v5524_v4 }
0x1ad9   :  { %5127 = vmatpush3.bf16.msra.mxu1 %v6138_v10 }
0x1ada   :  { %5128 = vmatprep.subr.bf16.mxu1 %v5524_v4 }
0x1adb   :  { %5091 = vmatpush3.bf16.msra.mxu0 %v6173_v46 }
0x1adc   :  { %5092 = vmatprep.subr.bf16.mxu0 %v5524_v4 }
0x1ba7   :  { %v2304_v42 = vpop.f32.mrb[12].mxu0  ;;  %v2532_v33 = vpop.f32.mrb[28].mxu1 }
0x1ba8   :  { %5433 = vtanh.f32 %v2304_v42  ;;  %v4612_v34 = vpop.f32.mrb[13].mxu0  ;;  %v4669_v35 = vpop.f32.mrb[29].mxu1  ;;  %v2533_v48 = vadd.f32 %v6117_v54, %v2532_v33 }
0x1bb2   :  { %v5434_v37 = vpop.eup %5433 }
0x1bb3   :  { %4622 = vmatmul.mubr.msk.f32.vlgmr.msra.gmra.mrb[14].mxu0 %vm1901_vm4, %v5434_v37 }
0x1bb4   :  { %5094 = vmatpush3.bf16.msra.mxu0 %v5998_v12  ;;  %4656 = vmatprep.mubr.msk.f32.mxu0 %vm5525_vm0, %v5526_v8 }
0x1bb5   :  { %5095 = vmatprep.subr.bf16.mxu0 %v5524_v4 }
0x1bb8   :  { %5097 = vmatpush3.bf16.msra.mxu0 %v6004_v15 }
0x1bb9   :  { %5098 = vmatprep.subr.bf16.mxu0 %v5524_v4 }
0x1bbc   :  { %5100 = vmatpush3.bf16.msra.mxu0 %v6022_v21 }
0x1bbd   :  { %5101 = vmatprep.subr.bf16.mxu0 %v5524_v4 }
0x1bc0   :  { %5103 = vmatpush3.bf16.msra.mxu0 %v6034_v24 }
0x1bc1   :  { %5104 = vmatprep.subr.bf16.mxu0 %v5524_v4 }
0x1bc4   :  { %5106 = vmatpush3.bf16.msra.mxu0 %v6044_v27 }
0x1bc5   :  { %5107 = vmatprep.subr.bf16.mxu0 %v5524_v4 }
0x1bc8   :  { %5109 = vmatpush3.bf16.msra.mxu0 %v6054_v30 }
0x1bc9   :  { %5110 = vmatprep.subr.bf16.mxu0 %v5524_v4 }
0x1bcc   :  { %5112 = vmatpush3.bf16.msra.mxu0 %v6064_v32 }
0x1bcd   :  { %5113 = vmatprep.subr.bf16.mxu0 %v5524_v4 }
0x1bd0   :  { %5115 = vmatpush3.bf16.msra.mxu0 %v6090_v44 }
0x1bd1   :  { %5158 = vmatprep.subr.bf16.mxu0 %v5524_v4 }
0x1c86   :  { %v2378_v40 = vpop.f32.mrb[14].mxu0 }
0x1c87   :  { %v2379_v41 = vadd.f32 %v6200_v39, %v2378_v40  ;;  %v4623_v43 = vpop.f32.mrb[15].mxu0 }
0x1c89   :  { %2382 = vst [vmem:[%s6505_s16] sm:$0x3] %v2379_v41  ;;  %v2384_v47 = vsel %vm2383_vm6, %v2379_v41, -inf }
0x1c8a   :  { %2385 = vmax.xlane.f32.xlu0 %v2384_v47 }
0x1ca0   :  { %2544 = vrot.lane.b32.xlu0 %v2533_v48, %s5533_s20 }
0x1d17   :  { %v2386_v51 = vpop.xlane.xlu0 %2385 }
0x1d18   :  { %vm2387_vm7 = vcmp.eq.f32.partialorder %v2379_v41, %v2386_v51 }
0x1d19   :  { %v2388_v50 = vsel %vm2387_vm7, %v6210_v49, 128.0 }
0x1d1a   :  { %v2389_v52 = vsel %vm2383_vm6, %v2388_v50, inf }
0x1d1b   :  { %2390 = vmin.xlane.f32.xlu1 %v2389_v52  ;;  %v2545_v0 = vpop.permute.xlu0 %2544 }
0x1da8   :  { %v2391_v53 = vpop.xlane.xlu1 %2390 }
0x1da9   :  { %v5304_v55 = vtrunc.f32 %v2391_v53 }
0x1dab   :  { %v5305_v56 = vcvt.f32.s32 %v5304_v55 }
0x1dad   :  { %vm2393_vm8 = vcmp.eq.s32.totalorder %v5305_v56, %v5718_v36 }
0x1dae   :  { %4657 = vmatmul.mubr.msk.f32.vlgmr.msra.gmra.mrb[16].mxu0 %vm2393_vm8, %v5527_v38 }
0x1daf   :  { %5160 = vmatpush3.bf16.msra.mxu0 %v6019_v20  ;;  %4735 = vmatprep.mubr.msk.f32.mxu0 %vm5525_vm0, %v5526_v8 }
0x1db0   :  { %5161 = vmatprep.subr.bf16.mxu0 %v5524_v4 }
0x1db3   :  { %5163 = vmatpush3.bf16.msra.mxu0 %v6081_v13 }
0x1db4   :  { %5164 = vmatprep.subr.bf16.mxu0 %v5524_v4 }
0x1e81   :  { %v2462_v57 = vpop.f32.mrb[16].mxu0 }
0x1e82   :  { %v2536_v58 = vadd.f32 %v2533_v48, %v2462_v57  ;;  %v4658_v59 = vpop.f32.mrb[17].mxu0 }
0x1e84   :  { %v4108_v60 = vmul.f32 -1.442695, %v2536_v58 }
0x1e86   :  { %5435 = vpow2.f32 %v4108_v60 }
0x1e90   :  { %v5436_v61 = vpop.eup %5435 }
0x1e91   :  { %v2540_v62 = vadd.f32 1.0, %v5436_v61 }
0x1e93   :  { %5437 = vrcp.f32 %v2540_v62 }
0x1e9d   :  { %v5438_v63 = vpop.eup %5437 }
0x1e9e   :  { %v2547_v1 = vmul.f32 %v5438_v63, %v2545_v0  ;;  %v2554_v9 = vsub.f32 1.0, %v5438_v63  ;;  %v2560_v14 = vmul.f32 %v5438_v63, %v6144_v22 }
0x1ea0   :  { %2549 = vrot.lane.b32.xlu1 %v2547_v1, %s5533_s20 }
0x1f12   :  { %v2550_v2 = vpop.permute.xlu1 %2549 }
0x1f13   :  { %v2552_v3 = vadd.f32 %v2550_v2, %v2462_v57 }
0x1f15   :  { %5439 = vtanh.f32 %v2552_v3 }
0x1f1f   :  { %v5440_v6 = vpop.eup %5439 }
0x1f20   :  { %2556 = vrot.lane.b32.xlu0 %v5440_v6, %s5530_s6 }
0x1f92   :  { %v2557_v11 = vpop.permute.xlu0 %2556 }
0x1f93   :  { %v2559_v16 = vmul.f32 %v2557_v11, %v2554_v9 }
0x1f95   :  { %v6225_v17 = vadd.f32 %v2560_v14, %v2559_v16 }
0x1f97   :  { %2563 = vrot.lane.b32.xlu1 %v6225_v17, %s5530_s6 }
0x2009   :  { %v2564_v18 = vpop.permute.xlu1 %2563 }
0x200a   :  { %4679 = vmatmul.mubr.msk.f32.vlgmr.msra.gmra.mrb[30].mxu1 %vm1901_vm4, %v2564_v18  ;;  %4736 = vmatmul.mubr.msk.f32.vlgmr.msra.gmra.mrb[18].mxu0 %vm1901_vm4, %v2564_v18 }
0x200b   :  { %5130 = vmatpush3.bf16.msra.mxu1 %v6167_v29  ;;  %4689 = vmatprep.mubr.msk.f32.mxu1 %vm5525_vm0, %v5526_v8 }
0x200c   :  { %5131 = vmatprep.subr.bf16.mxu1 %v5524_v4  ;;  %5166 = vmatpush3.bf16.msra.mxu0 %v6132_v7 }
0x200d   :  { %5167 = vmatprep.subr.bf16.mxu0 %v5524_v4  ;;  %4746 = vmatprep.mubr.msk.f32.mxu0 %vm5525_vm0, %v5526_v8 }
0x200f   :  { %5133 = vmatpush3.bf16.msra.mxu1 %v6173_v46 }
0x2010   :  { %5134 = vmatprep.subr.bf16.mxu1 %v5524_v4  ;;  %5169 = vmatpush3.bf16.msra.mxu0 %v6138_v10 }
0x2011   :  { %5170 = vmatprep.subr.bf16.mxu0 %v5524_v4 }
0x20dd   :  { %v2633_v19 = vpop.f32.mrb[30].mxu1  ;;  %v2860_v22 = vpop.f32.mrb[18].mxu0 }
0x20de   :  { %5441 = vtanh.f32 %v2633_v19  ;;  %v4680_v23 = vpop.f32.mrb[31].mxu1  ;;  %v4737_v25 = vpop.f32.mrb[19].mxu0  ;;  %v2861_v34 = vadd.f32 %v6117_v54, %v2860_v22 }
0x20e8   :  { %v5442_v26 = vpop.eup %5441 }
0x20e9   :  { %4690 = vmatmul.mubr.msk.f32.vlgmr.msra.gmra.mrb[32].mxu1 %vm1901_vm4, %v5442_v26 }
0x20ea   :  { %5136 = vmatpush3.bf16.msra.mxu1 %v5998_v12  ;;  %4724 = vmatprep.mubr.msk.f32.mxu1 %vm5525_vm0, %v5526_v8 }
0x20eb   :  { %5137 = vmatprep.subr.bf16.mxu1 %v5524_v4 }
0x20ee   :  { %5139 = vmatpush3.bf16.msra.mxu1 %v6004_v15 }
0x20ef   :  { %5140 = vmatprep.subr.bf16.mxu1 %v5524_v4 }
0x20f2   :  { %5142 = vmatpush3.bf16.msra.mxu1 %v6022_v21 }
0x20f3   :  { %5143 = vmatprep.subr.bf16.mxu1 %v5524_v4 }
0x20f6   :  { %5145 = vmatpush3.bf16.msra.mxu1 %v6034_v24 }
0x20f7   :  { %5146 = vmatprep.subr.bf16.mxu1 %v5524_v4 }
0x20fa   :  { %5148 = vmatpush3.bf16.msra.mxu1 %v6044_v27 }
0x20fb   :  { %5149 = vmatprep.subr.bf16.mxu1 %v5524_v4 }
0x20fe   :  { %5151 = vmatpush3.bf16.msra.mxu1 %v6054_v30 }
0x20ff   :  { %5152 = vmatprep.subr.bf16.mxu1 %v5524_v4 }
0x2102   :  { %5154 = vmatpush3.bf16.msra.mxu1 %v6064_v32 }
0x2103   :  { %5155 = vmatprep.subr.bf16.mxu1 %v5524_v4 }
0x2106   :  { %5157 = vmatpush3.bf16.msra.mxu1 %v6090_v44 }
0x2107   :  { %5200 = vmatprep.subr.bf16.mxu1 %v5524_v4 }
0x21bc   :  { %v2707_v28 = vpop.f32.mrb[32].mxu1 }
0x21bd   :  { %v2708_v31 = vadd.f32 %v6200_v39, %v2707_v28  ;;  %v4691_v42 = vpop.f32.mrb[33].mxu1 }
0x21bf   :  { %2711 = vst [vmem:[%s6505_s16 + $0x2] sm:$0x3] %v2708_v31  ;;  %v2712_v33 = vsel %vm2383_vm6, %v2708_v31, -inf }
0x21c0   :  { %2713 = vmax.xlane.f32.xlu0 %v2712_v33 }
0x21d6   :  { %2872 = vrot.lane.b32.xlu0 %v2861_v34, %s5533_s20 }
0x224d   :  { %v2714_v35 = vpop.xlane.xlu0 %2713 }
0x224e   :  { %vm2715_vm9 = vcmp.eq.f32.partialorder %v2708_v31, %v2714_v35 }
0x224f   :  { %v2716_v37 = vsel %vm2715_vm9, %v6210_v49, 128.0 }
0x2250   :  { %v2717_v40 = vsel %vm2383_vm6, %v2716_v37, inf }
0x2251   :  { %2718 = vmin.xlane.f32.xlu1 %v2717_v40  ;;  %v2873_v57 = vpop.permute.xlu0 %2872 }
0x22de   :  { %v2719_v41 = vpop.xlane.xlu1 %2718 }
0x22df   :  { %v5306_v43 = vtrunc.f32 %v2719_v41 }
0x22e1   :  { %v5307_v47 = vcvt.f32.s32 %v5306_v43 }
0x22e3   :  { %vm2721_vm10 = vcmp.eq.s32.totalorder %v5307_v47, %v5718_v36 }
0x22e4   :  { %4725 = vmatmul.mubr.msk.f32.vlgmr.msra.gmra.mrb[34].mxu1 %vm2721_vm10, %v5527_v38 }
0x22e5   :  { %5202 = vmatpush3.bf16.msra.mxu1 %v6019_v20  ;;  %4803 = vmatprep.mubr.msk.f32.mxu1 %vm5525_vm0, %v5526_v8 }
0x22e6   :  { %5203 = vmatprep.subr.bf16.mxu1 %v5524_v4 }
0x22e9   :  { %5205 = vmatpush3.bf16.msra.mxu1 %v6081_v13 }
0x22ea   :  { %5206 = vmatprep.subr.bf16.mxu1 %v5524_v4 }
0x23b7   :  { %v2790_v48 = vpop.f32.mrb[34].mxu1 }
0x23b8   :  { %v2864_v51 = vadd.f32 %v2861_v34, %v2790_v48  ;;  %v4726_v50 = vpop.f32.mrb[35].mxu1 }
0x23ba   :  { %v4114_v52 = vmul.f32 -1.442695, %v2864_v51 }
0x23bc   :  { %5443 = vpow2.f32 %v4114_v52 }
0x23c6   :  { %v5444_v53 = vpop.eup %5443 }
0x23c7   :  { %v2868_v55 = vadd.f32 1.0, %v5444_v53 }
0x23c9   :  { %5445 = vrcp.f32 %v2868_v55 }
0x23d3   :  { %v5446_v56 = vpop.eup %5445 }
0x23d4   :  { %v2875_v58 = vmul.f32 %v5446_v56, %v2873_v57  ;;  %v2882_v62 = vsub.f32 1.0, %v5446_v56  ;;  %v2888_v0 = vmul.f32 %v5446_v56, %v6225_v17 }
0x23d6   :  { %2877 = vrot.lane.b32.xlu1 %v2875_v58, %s5533_s20 }
0x2448   :  { %v2878_v59 = vpop.permute.xlu1 %2877 }
0x2449   :  { %v2880_v60 = vadd.f32 %v2878_v59, %v2790_v48 }
0x244b   :  { %5447 = vtanh.f32 %v2880_v60 }
0x2455   :  { %v5448_v61 = vpop.eup %5447 }
0x2456   :  { %2884 = vrot.lane.b32.xlu0 %v5448_v61, %s5530_s6 }
0x24c8   :  { %v2885_v63 = vpop.permute.xlu0 %2884 }
0x24c9   :  { %v2887_v1 = vmul.f32 %v2885_v63, %v2882_v62 }
0x24cb   :  { %v6282_v2 = vadd.f32 %v2888_v0, %v2887_v1 }
0x24cd   :  { %2891 = vrot.lane.b32.xlu1 %v6282_v2, %s5530_s6 }
0x253f   :  { %v2892_v3 = vpop.permute.xlu1 %2891 }
0x2540   :  { %4747 = vmatmul.mubr.msk.f32.vlgmr.msra.gmra.mrb[20].mxu0 %vm1901_vm4, %v2892_v3  ;;  %4804 = vmatmul.mubr.msk.f32.vlgmr.msra.gmra.mrb[36].mxu1 %vm1901_vm4, %v2892_v3 }
0x2541   :  { %5172 = vmatpush3.bf16.msra.mxu0 %v6167_v29  ;;  %4757 = vmatprep.mubr.msk.f32.mxu0 %vm5525_vm0, %v5526_v8 }
0x2542   :  { %5173 = vmatprep.subr.bf16.mxu0 %v5524_v4  ;;  %5208 = vmatpush3.bf16.msra.mxu1 %v6132_v7 }
0x2543   :  { %5209 = vmatprep.subr.bf16.mxu1 %v5524_v4  ;;  %4814 = vmatprep.mubr.msk.f32.mxu1 %vm5525_vm0, %v5526_v8 }
0x2545   :  { %5175 = vmatpush3.bf16.msra.mxu0 %v6173_v46 }
0x2546   :  { %5176 = vmatprep.subr.bf16.mxu0 %v5524_v4  ;;  %5211 = vmatpush3.bf16.msra.mxu1 %v6138_v10 }
0x2547   :  { %5212 = vmatprep.subr.bf16.mxu1 %v5524_v4 }
0x2613   :  { %v2961_v6 = vpop.f32.mrb[20].mxu0  ;;  %v3188_v9 = vpop.f32.mrb[36].mxu1 }
0x2614   :  { %5449 = vtanh.f32 %v2961_v6  ;;  %v4748_v11 = vpop.f32.mrb[21].mxu0  ;;  %v4805_v14 = vpop.f32.mrb[37].mxu1  ;;  %v3189_v23 = vadd.f32 %v6117_v54, %v3188_v9 }
0x261e   :  { %v5450_v16 = vpop.eup %5449 }
0x261f   :  { %4758 = vmatmul.mubr.msk.f32.vlgmr.msra.gmra.mrb[22].mxu0 %vm1901_vm4, %v5450_v16 }
0x2620   :  { %5178 = vmatpush3.bf16.msra.mxu0 %v5998_v12  ;;  %4792 = vmatprep.mubr.msk.f32.mxu0 %vm5525_vm0, %v5526_v8 }
0x2621   :  { %5179 = vmatprep.subr.bf16.mxu0 %v5524_v4 }
0x2624   :  { %5181 = vmatpush3.bf16.msra.mxu0 %v6004_v15 }
0x2625   :  { %5182 = vmatprep.subr.bf16.mxu0 %v5524_v4 }
0x2628   :  { %5184 = vmatpush3.bf16.msra.mxu0 %v6022_v21 }
0x2629   :  { %5185 = vmatprep.subr.bf16.mxu0 %v5524_v4 }
0x262c   :  { %5187 = vmatpush3.bf16.msra.mxu0 %v6034_v24 }
0x262d   :  { %5188 = vmatprep.subr.bf16.mxu0 %v5524_v4 }
0x2630   :  { %5190 = vmatpush3.bf16.msra.mxu0 %v6044_v27 }
0x2631   :  { %5191 = vmatprep.subr.bf16.mxu0 %v5524_v4 }
0x2634   :  { %5193 = vmatpush3.bf16.msra.mxu0 %v6054_v30 }
0x2635   :  { %5194 = vmatprep.subr.bf16.mxu0 %v5524_v4 }
0x2638   :  { %5196 = vmatpush3.bf16.msra.mxu0 %v6064_v32 }
0x2639   :  { %5197 = vmatprep.subr.bf16.mxu0 %v5524_v4 }
0x263c   :  { %5199 = vmatpush3.bf16.msra.mxu0 %v6090_v44 }
0x263d   :  { %5242 = vmatprep.subr.bf16.mxu0 %v5524_v4 }
0x26f2   :  { %v3035_v17 = vpop.f32.mrb[22].mxu0 }
0x26f3   :  { %v3036_v18 = vadd.f32 %v6200_v39, %v3035_v17  ;;  %v4759_v19 = vpop.f32.mrb[23].mxu0 }
0x26f5   :  { %3039 = vst [vmem:[%s6505_s16 + $0x4] sm:$0x3] %v3036_v18  ;;  %v3040_v22 = vsel %vm2383_vm6, %v3036_v18, -inf }
0x26f6   :  { %3041 = vmax.xlane.f32.xlu0 %v3040_v22 }
0x270c   :  { %3200 = vrot.lane.b32.xlu0 %v3189_v23, %s5533_s20 }
0x2783   :  { %v3042_v25 = vpop.xlane.xlu0 %3041 }
0x2784   :  { %vm3043_vm11 = vcmp.eq.f32.partialorder %v3036_v18, %v3042_v25 }
0x2785   :  { %v3044_v26 = vsel %vm3043_vm11, %v6210_v49, 128.0 }
0x2786   :  { %v3045_v28 = vsel %vm2383_vm6, %v3044_v26, inf }
0x2787   :  { %3046 = vmin.xlane.f32.xlu1 %v3045_v28  ;;  %v3201_v48 = vpop.permute.xlu0 %3200 }
0x2814   :  { %v3047_v31 = vpop.xlane.xlu1 %3046 }
0x2815   :  { %v5308_v42 = vtrunc.f32 %v3047_v31 }
0x2817   :  { %v5309_v33 = vcvt.f32.s32 %v5308_v42 }
0x2819   :  { %vm3049_vm12 = vcmp.eq.s32.totalorder %v5309_v33, %v5718_v36 }
0x281a   :  { %4793 = vmatmul.mubr.msk.f32.vlgmr.msra.gmra.mrb[24].mxu0 %vm3049_vm12, %v5527_v38 }
0x281b   :  { %5244 = vmatpush3.bf16.msra.mxu0 %v6019_v20  ;;  %4871 = vmatprep.mubr.msk.f32.mxu0 %vm5525_vm0, %v5526_v8 }
0x281c   :  { %5245 = vmatprep.subr.bf16.mxu0 %v5524_v4 }
0x281f   :  { %5247 = vmatpush3.bf16.msra.mxu0 %v6081_v13 }
0x2820   :  { %5248 = vmatprep.subr.bf16.mxu0 %v5524_v4 }
0x28ed   :  { %v3118_v34 = vpop.f32.mrb[24].mxu0 }
0x28ee   :  { %v3192_v35 = vadd.f32 %v3189_v23, %v3118_v34  ;;  %v4794_v37 = vpop.f32.mrb[25].mxu0 }
0x28f0   :  { %v4120_v40 = vmul.f32 -1.442695, %v3192_v35 }
0x28f2   :  { %5451 = vpow2.f32 %v4120_v40 }
0x28fc   :  { %v5452_v41 = vpop.eup %5451 }
0x28fd   :  { %v3196_v43 = vadd.f32 1.0, %v5452_v41 }
0x28ff   :  { %5453 = vrcp.f32 %v3196_v43 }
0x2909   :  { %v5454_v47 = vpop.eup %5453 }
0x290a   :  { %v3203_v51 = vmul.f32 %v5454_v47, %v3201_v48  ;;  %v3210_v55 = vsub.f32 1.0, %v5454_v47  ;;  %v3216_v57 = vmul.f32 %v5454_v47, %v6282_v2 }
0x290c   :  { %3205 = vrot.lane.b32.xlu1 %v3203_v51, %s5533_s20 }
0x297e   :  { %v3206_v50 = vpop.permute.xlu1 %3205 }
0x297f   :  { %v3208_v52 = vadd.f32 %v3206_v50, %v3118_v34 }
0x2981   :  { %5455 = vtanh.f32 %v3208_v52 }
0x298b   :  { %v5456_v53 = vpop.eup %5455 }
0x298c   :  { %3212 = vrot.lane.b32.xlu0 %v5456_v53, %s5530_s6 }
0x29fe   :  { %v3213_v56 = vpop.permute.xlu0 %3212 }
0x29ff   :  { %v3215_v58 = vmul.f32 %v3213_v56, %v3210_v55 }
0x2a01   :  { %v6339_v59 = vadd.f32 %v3216_v57, %v3215_v58 }
0x2a03   :  { %3219 = vrot.lane.b32.xlu1 %v6339_v59, %s5530_s6 }
0x2a75   :  { %v3220_v60 = vpop.permute.xlu1 %3219 }
0x2a76   :  { %4815 = vmatmul.mubr.msk.f32.vlgmr.msra.gmra.mrb[38].mxu1 %vm1901_vm4, %v3220_v60  ;;  %4872 = vmatmul.mubr.msk.f32.vlgmr.msra.gmra.mrb[26].mxu0 %vm1901_vm4, %v3220_v60 }
0x2a77   :  { %5214 = vmatpush3.bf16.msra.mxu1 %v6167_v29  ;;  %4825 = vmatprep.mubr.msk.f32.mxu1 %vm5525_vm0, %v5526_v8 }
0x2a78   :  { %5215 = vmatprep.subr.bf16.mxu1 %v5524_v4  ;;  %5250 = vmatpush3.bf16.msra.mxu0 %v6132_v7 }
0x2a79   :  { %5251 = vmatprep.subr.bf16.mxu0 %v5524_v4  ;;  %4882 = vmatprep.mubr.msk.f32.mxu0 %vm5525_vm0, %v5526_v8 }
0x2a7b   :  { %5217 = vmatpush3.bf16.msra.mxu1 %v6173_v46 }
0x2a7c   :  { %5218 = vmatprep.subr.bf16.mxu1 %v5524_v4  ;;  %5253 = vmatpush3.bf16.msra.mxu0 %v6138_v10 }
0x2a7d   :  { %5254 = vmatprep.subr.bf16.mxu0 %v5524_v4 }
0x2b49   :  { %v3289_v61 = vpop.f32.mrb[38].mxu1  ;;  %v3516_v62 = vpop.f32.mrb[26].mxu0 }
0x2b4a   :  { %5457 = vtanh.f32 %v3289_v61  ;;  %v4816_v63 = vpop.f32.mrb[39].mxu1  ;;  %v4873_v0 = vpop.f32.mrb[27].mxu0  ;;  %v3517_v11 = vadd.f32 %v6117_v54, %v3516_v62 }
0x2b54   :  { %v5458_v1 = vpop.eup %5457 }
0x2b55   :  { %4826 = vmatmul.mubr.msk.f32.vlgmr.msra.gmra.mrb[40].mxu1 %vm1901_vm4, %v5458_v1 }
0x2b56   :  { %5220 = vmatpush3.bf16.msra.mxu1 %v5998_v12  ;;  %4860 = vmatprep.mubr.msk.f32.mxu1 %vm5525_vm0, %v5526_v8 }
0x2b57   :  { %5221 = vmatprep.subr.bf16.mxu1 %v5524_v4 }
0x2b5a   :  { %5223 = vmatpush3.bf16.msra.mxu1 %v6004_v15 }
0x2b5b   :  { %5224 = vmatprep.subr.bf16.mxu1 %v5524_v4 }
0x2b5e   :  { %5226 = vmatpush3.bf16.msra.mxu1 %v6022_v21 }
0x2b5f   :  { %5227 = vmatprep.subr.bf16.mxu1 %v5524_v4 }
0x2b62   :  { %5229 = vmatpush3.bf16.msra.mxu1 %v6034_v24 }
0x2b63   :  { %5230 = vmatprep.subr.bf16.mxu1 %v5524_v4 }
0x2b66   :  { %5232 = vmatpush3.bf16.msra.mxu1 %v6044_v27 }
0x2b67   :  { %5233 = vmatprep.subr.bf16.mxu1 %v5524_v4 }
0x2b6a   :  { %5235 = vmatpush3.bf16.msra.mxu1 %v6054_v30 }
0x2b6b   :  { %5236 = vmatprep.subr.bf16.mxu1 %v5524_v4 }
0x2b6e   :  { %5238 = vmatpush3.bf16.msra.mxu1 %v6064_v32 }
0x2b6f   :  { %5239 = vmatprep.subr.bf16.mxu1 %v5524_v4 }
0x2b72   :  { %5241 = vmatpush3.bf16.msra.mxu1 %v6090_v44 }
0x2b73   :  { %5284 = vmatprep.subr.bf16.mxu1 %v5524_v4 }
0x2c28   :  { %v3363_v2 = vpop.f32.mrb[40].mxu1 }
0x2c29   :  { %v3364_v3 = vadd.f32 %v6200_v39, %v3363_v2  ;;  %v4827_v6 = vpop.f32.mrb[41].mxu1 }
0x2c2b   :  { %3367 = vst [vmem:[%s6505_s16 + $0x6] sm:$0x3] %v3364_v3  ;;  %v3368_v9 = vsel %vm2383_vm6, %v3364_v3, -inf }
0x2c2c   :  { %3369 = vmax.xlane.f32.xlu0 %v3368_v9 }
0x2c42   :  { %3528 = vrot.lane.b32.xlu0 %v3517_v11, %s5533_s20 }
0x2cb9   :  { %v3370_v14 = vpop.xlane.xlu0 %3369 }
0x2cba   :  { %vm3371_vm13 = vcmp.eq.f32.partialorder %v3364_v3, %v3370_v14 }
0x2cbb   :  { %v3372_v16 = vsel %vm3371_vm13, %v6210_v49, 128.0 }
0x2cbc   :  { %v3373_v17 = vsel %vm2383_vm6, %v3372_v16, inf }
0x2cbd   :  { %3374 = vmin.xlane.f32.xlu1 %v3373_v17  ;;  %v3529_v34 = vpop.permute.xlu0 %3528  ;;  %v1990_v17 = vmul.f32 %v6102_v45, %v6102_v45 }
0x2d4a   :  { %v3375_v18 = vpop.xlane.xlu1 %3374 }
0x2d4b   :  { %v5310_v19 = vtrunc.f32 %v3375_v18 }
0x2d4d   :  { %v5311_v22 = vcvt.f32.s32 %v5310_v19 }
0x2d4f   :  { %vm3377_vm14 = vcmp.eq.s32.totalorder %v5311_v22, %v5718_v36 }
0x2d50   :  { %4861 = vmatmul.mubr.msk.f32.vlgmr.msra.gmra.mrb[42].mxu1 %vm3377_vm14, %v5527_v38 }
0x2d51   :  { %5286 = vmatpush3.bf16.msra.mxu1 %v6019_v20  ;;  %4939 = vmatprep.mubr.msk.f32.mxu1 %vm5525_vm0, %v5526_v8 }
0x2d52   :  { %5287 = vmatprep.subr.bf16.mxu1 %v5524_v4 }
0x2d55   :  { %5289 = vmatpush3.bf16.msra.mxu1 %v6081_v13 }
0x2d56   :  { %5290 = vmatprep.subr.bf16.mxu1 %v5524_v4 }
0x2e23   :  { %v3446_v23 = vpop.f32.mrb[42].mxu1 }
0x2e24   :  { %v3520_v25 = vadd.f32 %v3517_v11, %v3446_v23  ;;  %v4862_v26 = vpop.f32.mrb[43].mxu1 }
0x2e26   :  { %v4126_v28 = vmul.f32 -1.442695, %v3520_v25 }
0x2e28   :  { %5459 = vpow2.f32 %v4126_v28 }
0x2e32   :  { %v5460_v31 = vpop.eup %5459 }
0x2e33   :  { %v3524_v42 = vadd.f32 1.0, %v5460_v31 }
0x2e35   :  { %5461 = vrcp.f32 %v3524_v42 }
0x2e3f   :  { %v5462_v33 = vpop.eup %5461 }
0x2e40   :  { %v3531_v20 = vmul.f32 %v5462_v33, %v3529_v34  ;;  %v3538_v13 = vsub.f32 1.0, %v5462_v33  ;;  %v3544_v43 = vmul.f32 %v5462_v33, %v6339_v59 }
0x2e42   :  { %3533 = vrot.lane.b32.xlu1 %v3531_v20, %s5533_s20 }
0x2eb4   :  { %v3534_v35 = vpop.permute.xlu1 %3533 }
0x2eb5   :  { %v3536_v37 = vadd.f32 %v3534_v35, %v3446_v23 }
0x2eb7   :  { %5463 = vtanh.f32 %v3536_v37 }
0x2ec1   :  { %v5464_v40 = vpop.eup %5463 }
0x2ec2   :  { %3540 = vrot.lane.b32.xlu0 %v5464_v40, %s5530_s6 }
0x2f34   :  { %v3541_v41 = vpop.permute.xlu0 %3540 }
0x2f35   :  { %v3543_v47 = vmul.f32 %v3541_v41, %v3538_v13 }
0x2f37   :  { %v6396_v48 = vadd.f32 %v3544_v43, %v3543_v47 }
0x2f39   :  { %3547 = vrot.lane.b32.xlu1 %v6396_v48, %s5530_s6 }
0x2fab   :  { %v3548_v51 = vpop.permute.xlu1 %3547 }
0x2fac   :  { %4883 = vmatmul.mubr.msk.f32.vlgmr.msra.gmra.mrb[28].mxu0 %vm1901_vm4, %v3548_v51  ;;  %4940 = vmatmul.mubr.msk.f32.vlgmr.msra.gmra.mrb[44].mxu1 %vm1901_vm4, %v3548_v51 }
0x2fad   :  { %5256 = vmatpush3.bf16.msra.mxu0 %v6167_v29  ;;  %4893 = vmatprep.mubr.msk.f32.mxu0 %vm5525_vm0, %v5526_v8 }
0x2fae   :  { %5257 = vmatprep.subr.bf16.mxu0 %v5524_v4  ;;  %5292 = vmatpush3.bf16.msra.mxu1 %v6132_v7 }
0x2faf   :  { %5293 = vmatprep.subr.bf16.mxu1 %v5524_v4  ;;  %4950 = vmatprep.mubr.msk.f32.mxu1 %vm5525_vm0, %v5526_v8 }
0x2fb1   :  { %5259 = vmatpush3.bf16.msra.mxu0 %v6173_v46 }
0x2fb2   :  { %5260 = vmatprep.subr.bf16.mxu0 %v5524_v4  ;;  %5295 = vmatpush3.bf16.msra.mxu1 %v6138_v10 }
0x2fb3   :  { %5296 = vmatprep.subr.bf16.mxu1 %v5524_v4 }
0x307f   :  { %v3617_v50 = vpop.f32.mrb[28].mxu0  ;;  %v3844_v52 = vpop.f32.mrb[44].mxu1 }
0x3080   :  { %5465 = vtanh.f32 %v3617_v50  ;;  %v4884_v53 = vpop.f32.mrb[29].mxu0  ;;  %v4941_v55 = vpop.f32.mrb[45].mxu1 }
0x308a   :  { %v5466_v56 = vpop.eup %5465 }
0x308b   :  { %4894 = vmatmul.mubr.msk.f32.vlgmr.msra.gmra.mrb[30].mxu0 %vm1901_vm4, %v5466_v56 }
0x308c   :  { %5262 = vmatpush3.bf16.msra.mxu0 %v5998_v12  ;;  %4928 = vmatprep.mubr.msk.f32.mxu0 %vm5525_vm0, %v5526_v8 }
0x308d   :  { %5263 = vmatprep.subr.bf16.mxu0 %v5524_v4 }
0x3090   :  { %5265 = vmatpush3.bf16.msra.mxu0 %v6004_v15 }
0x3091   :  { %5266 = vmatprep.subr.bf16.mxu0 %v5524_v4 }
0x3094   :  { %5268 = vmatpush3.bf16.msra.mxu0 %v6022_v21 }
0x3095   :  { %5269 = vmatprep.subr.bf16.mxu0 %v5524_v4 }
0x3098   :  { %5271 = vmatpush3.bf16.msra.mxu0 %v6034_v24 }
0x3099   :  { %5272 = vmatprep.subr.bf16.mxu0 %v5524_v4 }
0x309c   :  { %5274 = vmatpush3.bf16.msra.mxu0 %v6044_v27  ;;  %v3845_v27 = vadd.f32 %v6117_v54, %v3844_v52 }
0x309d   :  { %5275 = vmatprep.subr.bf16.mxu0 %v5524_v4 }
0x30a0   :  { %5277 = vmatpush3.bf16.msra.mxu0 %v6054_v30 }
0x30a1   :  { %5278 = vmatprep.subr.bf16.mxu0 %v5524_v4 }
0x30a4   :  { %5280 = vmatpush3.bf16.msra.mxu0 %v6064_v32 }
0x30a5   :  { %5281 = vmatprep.subr.bf16.mxu0 %v5524_v4 }
0x30a8   :  { %5283 = vmatpush3.bf16.msra.mxu0 %v6090_v44 }
0x315e   :  { %v3691_v12 = vpop.f32.mrb[30].mxu0 }
0x315f   :  { %v3692_v15 = vadd.f32 %v6200_v39, %v3691_v12  ;;  %v4895_v21 = vpop.f32.mrb[31].mxu0 }
0x3161   :  { %3695 = vst [vmem:[%s6505_s16 + $0x8] sm:$0x3] %v3692_v15  ;;  %v3696_v24 = vsel %vm2383_vm6, %v3692_v15, -inf }
0x3162   :  { %3697 = vmax.xlane.f32.xlu0 %v3696_v24 }
0x3178   :  { %3856 = vrot.lane.b32.xlu0 %v3845_v27, %s5533_s20 }
0x31ef   :  { %v3698_v30 = vpop.xlane.xlu0 %3697 }
0x31f0   :  { %vm3699_vm15 = vcmp.eq.f32.partialorder %v3692_v15, %v3698_v30 }
0x31f1   :  { %v3700_v32 = vsel %vm3699_vm15, %v6210_v49, 128.0 }
0x31f2   :  { %v3701_v44 = vsel %vm2383_vm6, %v3700_v32, inf }
0x31f3   :  { %3702 = vmin.xlane.f32.xlu1 %v3701_v44  ;;  %v3857_v49 = vpop.permute.xlu0 %3856 }
0x3280   :  { %v3703_v7 = vpop.xlane.xlu1 %3702 }
0x3281   :  { %v5312_v10 = vtrunc.f32 %v3703_v7 }
0x3283   :  { %v5313_v57 = vcvt.f32.s32 %v5312_v10 }
0x3285   :  { %vm3705_vm1 = vcmp.eq.s32.totalorder %v5313_v57, %v5718_v36  ;;  %v1984_v36 = vmul.f32 %v6072_v5, %v6072_v5 }
0x3286   :  { %4929 = vmatmul.mubr.msk.f32.vlgmr.msra.gmra.mrb[32].mxu0 %vm3705_vm1, %v5527_v38 }
0x3359   :  { %v3774_v58 = vpop.f32.mrb[32].mxu0 }
0x335a   :  { %v3848_v59 = vadd.f32 %v3845_v27, %v3774_v58  ;;  %v4930_v60 = vpop.f32.mrb[33].mxu0 }
0x335c   :  { %v4132_v54 = vmul.f32 -1.442695, %v3848_v59 }
0x335e   :  { %5467 = vpow2.f32 %v4132_v54 }
0x3368   :  { %v5468_v61 = vpop.eup %5467 }
0x3369   :  { %v3852_v62 = vadd.f32 1.0, %v5468_v61 }
0x336b   :  { %5469 = vrcp.f32 %v3852_v62 }
0x3375   :  { %v5470_v63 = vpop.eup %5469 }
0x3376   :  { %v3859_v0 = vmul.f32 %v5470_v63, %v3857_v49  ;;  %v3866_v38 = vsub.f32 1.0, %v5470_v63  ;;  %v3872_v9 = vmul.f32 %v5470_v63, %v6396_v48 }
0x3378   :  { %3861 = vrot.lane.b32.xlu1 %v3859_v0, %s5533_s20 }
0x33ea   :  { %v3862_v1 = vpop.permute.xlu1 %3861 }
0x33eb   :  { %v3864_v2 = vadd.f32 %v3862_v1, %v3774_v58 }
0x33ed   :  { %5471 = vtanh.f32 %v3864_v2 }
0x33f7   :  { %v5472_v3 = vpop.eup %5471 }
0x33f8   :  { %3868 = vrot.lane.b32.xlu0 %v5472_v3, %s5530_s6 }
0x33fc   :  { %1986 = vrot.lane.b32.xlu0 %v1984_v36, %s5531_s4 }
0x346a   :  { %v3869_v6 = vpop.permute.xlu0 %3868 }
0x346b   :  { %v3871_v11 = vmul.f32 %v3869_v6, %v3866_v38 }
0x346d   :  { %v3873_v14 = vadd.f32 %v3872_v9, %v3871_v11 }
0x346e   :  { %v1987_v16 = vpop.permute.xlu0 %1986 }
0x346f   :  { %v1989_v18 = vsub.f32 %v6072_v5, %v1987_v16  ;;  %3875 = vrot.lane.b32.xlu1 %v3873_v14, %s5530_s6 }
0x3471   :  { %v1991_v19 = vsub.f32 %v1989_v18, %v1990_v17 }
0x3473   :  { %v1992_v22 = vadd.f32 1.0, %v1991_v19 }
0x3475   :  { %1994 = vrot.lane.b32.xlu1 %v1992_v22, %s5530_s6 }
0x34e1   :  { %v3876_v23 = vpop.permute.xlu1 %3875 }
0x34e2   :  { %4951 = vmatmul.mubr.msk.f32.vlgmr.msra.gmra.mrb[46].mxu1 %vm1901_vm4, %v3876_v23  ;;  %4025 = vst.msk [vmem:[#allocation2] sm:$0x3] %vm1997_vm2, %v3876_v23 }
0x34e3   :  { %5298 = vmatpush3.bf16.msra.mxu1 %v6167_v29  ;;  %4961 = vmatprep.mubr.msk.f32.mxu1 %vm5525_vm0, %v5526_v8  ;;  %vm2013_vm0 = vcmask 0  }
0x34e4   :  { %5299 = vmatprep.subr.bf16.mxu1 %v5524_v4 }
0x34e7   :  { %v1995_v45 = vpop.permute.xlu1 %1994  ;;  %5301 = vmatpush3.bf16.msra.mxu1 %v6173_v46 }
0x34e8   :  { %v1998_v5 = vsel %vm1997_vm2, %v1995_v45, 0.0 }
0x34e9   :  { %1999 = vadd.xlane.f32.xlu0 %v1998_v5 }
0x3576   :  { %v2000_v25 = vpop.xlane.xlu0 %1999 }
0x3577   :  { %v2001_v26 = vrot.slane %v2000_v25, 4 }
0x3579   :  { %v2002_v28 = vadd.f32 %v2001_v26, %v2000_v25 }
0x357b   :  { %v2003_v31 = vrot.slane %v2002_v28, 2 }
0x357d   :  { %v2004_v42 = vadd.f32 %v2003_v31, %v2002_v28 }
0x357f   :  { %v2005_v33 = vrot.slane %v2004_v42, 1 }
0x3581   :  { %v2006_v34 = vadd.f32 %v2005_v33, %v2004_v42 }
0x3583   :  { %5302 = vpush %v2006_v34 }
0x35b4   :  { %s5303_s6 = spop %5302 }
0x35b5   :  { %s2008_s4 = smul.f32 -0.5, %s5303_s6  ;;  %v3945_v29 = vpop.f32.mrb[46].mxu1 }
0x35b6   :  { %5473 = vtanh.f32 %v3945_v29  ;;  %v4952_v8 = vpop.f32.mrb[47].mxu1 }
0x35b7   :  { %s2011_s20 = smul.f32 0.03125, %s2008_s4 }
0x35b9   :  { %v2012_v4 = vstv %s2011_s20 }
0x35ba   :  { %2014 = vst.msk [vmem:[#allocation4] sm:$0x1] %vm2013_vm0, %v2012_v4 }
0x35c0   :  { %v5474_v46 = vpop.eup %5473 }
0x35c1   :  { %4962 = vmatmul.mubr.msk.f32.vlgmr.msra.gmra.mrb[48].mxu1 %vm1901_vm4, %v5474_v46 }
0x35c2   :  { %5486 = shalt.err (!%p5483_p4)
}
0x35c3   :  { %s5487_s26 = scalar_lea.hbm %s6506_s17, 32 }
0x35c4   :  { %p5488_p5 = scmp.ne.s32.totalorder %s6506_s17, %s5487_s26  ;;  %p5491_p6 = scmp.lt.u32.totalorder %s5487_s26, %s6506_s17 }
0x35c6   :  { %p5493_p7 = pnand %p5491_p6, %p5488_p5 }
0x35c8   :  { %5496 = shalt.err (!%p5493_p7)
}
0x35c9   :  { %4037 = dma.vmem_to_hbm [thread:$0]  %s4035_s2, 32, %s6506_s17, [#allocation3]  }
0x35ca   :  { %s5497_s0 = scalar_lea.vmem %s4045_s23, 16  ;;  %s5501_s8 = scalar_lea.vmem %s4045_s23, 32 }
0x35cb   :  { %p5498_p8 = scmp.ne.s32.totalorder %s4045_s23, %s5497_s0  ;;  %p5502_p9 = scmp.lt.s32.totalorder %s4045_s23, %s4045_s23 }
0x35cc   :  { %p5503_p10 = scmp.lt.s32.totalorder %s5501_s8, %s5497_s0 }
0x35ce   :  { %p5504_p11 = por %p5503_p10, %p5502_p9 }
0x35d0   :  { %p5505_p12 = pnand %p5504_p11, %p5498_p8 }
0x35d2   :  { %5508 = shalt.err (!%p5505_p12)
}
0x35d3   :  { %s5509_s10 = scalar_lea.hbm %s6507_s18, 16 }
0x35d4   :  { %p5510_p13 = scmp.ne.s32.totalorder %s6507_s18, %s5509_s10  ;;  %p5513_p0 = scmp.lt.u32.totalorder %s5509_s10, %s6507_s18 }
0x35d6   :  { %p5515_p1 = pnand %p5513_p0, %p5510_p13 }
0x35d8   :  { %5518 = shalt.err (!%p5515_p1)
}
0x35d9   :  { %4047 = dma.vmem_to_hbm [thread:$0]  %s4045_s23, 16, %s6507_s18, [#allocation5]  }
0x3694   :  { %v4019_v20 = vpop.f32.mrb[48].mxu1 }
0x3695   :  { %v4020_v35 = vadd.f32 %v6200_v39, %v4019_v20  ;;  %v4963_v37 = vpop.f32.mrb[49].mxu1 }
0x3697   :  { %4023 = vst [vmem:[%s6505_s16 + $0xa] sm:$0x3] %v4020_v35 }
0x3698   :  { %5519 = dma.done.wait [#allocation3], 32  }
0x3699   :  { %5520 = vsyncadd [#allocation3], 4294967264 }
0x369a   :  { %5521 = dma.done.wait [#allocation5], 16  }
0x369b   :  { %5522 = vsyncadd [#allocation5], 4294967280 }
0x369c   :  { %4056 = vsyncpa [#allocation3], 1 }
0x369d   :  { %4057 = vsyncpa [#allocation5], 1 }

</bundles_post_ra>
